<compile_context>
chip_gen: v7x
topology: tpu7x:2x2x1
jax: 0.10.0
libtpu: 0.0.40
codegen_flags: <defaults>
</compile_context>

<pallas_src>
import math
import functools

import jax
import jax.numpy as jnp
from jax.experimental import pallas as pl
from jax.experimental.pallas import tpu as pltpu


def _round_up(x, m):
    return -(-x // m) * m


_TM, _TN, _TK = 512, 512, 512            # matmul tiles (keep _TN == _TK: see linear_ln)
_TROW = 256                              # layernorm row tile
_VMEM_LIMIT = 64 * 1024 * 1024


def _row_dims(M, tile):
    """Row padding / row-tile choice.  Prefer >=2 row blocks so the 'parallel'
    grid axis can shard across the 2 TensorCores on v7x."""
    if M <= tile:
        Mp = _round_up(M, 8)
        bm = Mp // 2 if (Mp >= 16 and Mp % 16 == 0) else Mp
    else:
        Mp = _round_up(M, tile)
        bm = tile
    return Mp, bm


def _col_dims(N, tile):
    if N <= tile:
        Np = _round_up(N, 128)
        bn = Np
    else:
        Np = _round_up(N, tile)
        bn = tile
    return Np, bn


def _tile_from_padded(Xp, tile):
    return Xp if Xp <= tile else tile


# ---------------------------------------------------------------------------
# Tiled linear: y = x @ w + b  [+ gelu]      (bf16 in/out, f32 accumulation)
# ---------------------------------------------------------------------------

def _linear_kernel(x_ref, w_ref, b_ref, o_ref, acc_ref, *, gelu):
    k = pl.program_id(2)

    @pl.when(k == 0)
    def _init():
        acc_ref[...] = jnp.zeros_like(acc_ref)

    acc_ref[...] += jnp.dot(x_ref[...], w_ref[...],
                            preferred_element_type=jnp.float32)

    @pl.when(k == pl.num_programs(2) - 1)
    def _finalize():
        # f32 scratch accumulator is kept (output is bf16, so we cannot
        # accumulate directly into o_ref without losing precision).
        y = acc_ref[...] + b_ref[...]
        if gelu:
            # TODO(synk): HF DeBERTa uses exact erf GELU; tanh approximation here.
            y = jax.nn.gelu(y, approximate=True)
        o_ref[...] = y.astype(o_ref.dtype)


def linear(x, w_pad, b_pad, n=None, *, gelu=False, out_dtype=jnp.bfloat16):
    """x: (M, K); w_pad: (Kp, Np) bf16 pre-padded; b_pad: (1, Np) f32.

    Returns (M, n) (or (M, Np) if n is None -> padded columns kept, they are
    exactly zero and feed zero-padded K rows of the next matmul)."""
    M, K = x.shape
    Kp, Np = w_pad.shape
    assert K <= Kp
    bk = _tile_from_padded(Kp, _TK)
    bn = _tile_from_padded(Np, _TN)
    Mp, bm = _row_dims(M, _TM)

    xp = jnp.pad(x, ((0, Mp - M), (0, Kp - K))).astype(jnp.bfloat16)

    out = pl.pallas_call(
        functools.partial(_linear_kernel, gelu=gelu),
        out_shape=jax.ShapeDtypeStruct((Mp, Np), out_dtype),
        grid_spec=pltpu.PrefetchScalarGridSpec(
            num_scalar_prefetch=0,
            grid=(Mp // bm, Np // bn, Kp // bk),
            in_specs=[pl.BlockSpec((bm, bk), lambda i, j, k: (i, k)),
                      pl.BlockSpec((bk, bn), lambda i, j, k: (k, j)),
                      pl.BlockSpec((1, bn), lambda i, j, k: (0, j))],
            out_specs=pl.BlockSpec((bm, bn), lambda i, j, k: (i, j)),
            scratch_shapes=[pltpu.VMEM((bm, bn), jnp.float32)]),
        compiler_params=pltpu.CompilerParams(
            dimension_semantics=("parallel", "parallel", "arbitrary"),
            vmem_limit_bytes=_VMEM_LIMIT),
    )(xp, w_pad, b_pad)

    out = out[:M]
    if n is not None and n != Np:
        out = out[:, :n]
    return out


# ---------------------------------------------------------------------------
# Fused linear + residual-add + LayerNorm (bn = full H, LN in the k-epilogue)
# ---------------------------------------------------------------------------

def _linear_ln_kernel(x_ref, w_ref, b_ref, r_ref, g_ref, be_ref, o_ref, acc_ref,
                      *, eps, inv_h):
    k = pl.program_id(1)

    @pl.when(k == 0)
    def _init():
        acc_ref[...] = jnp.zeros_like(acc_ref)

    acc_ref[...] += jnp.dot(x_ref[...], w_ref[...],
                            preferred_element_type=jnp.float32)

    @pl.when(k == pl.num_programs(1) - 1)
    def _finalize():
        y = acc_ref[...] + b_ref[...] + r_ref[...].astype(jnp.float32)
        # Padded columns of y are exactly zero (zero-padded w/b/residual), so
        # sums over the padded row equal sums over the true H columns.
        mean = jnp.sum(y, axis=-1, keepdims=True) * inv_h
        var = jnp.maximum(
            jnp.sum(y * y, axis=-1, keepdims=True) * inv_h - mean * mean, 0.0)
        xhat = (y - mean) * jax.lax.rsqrt(var + eps)
        # gamma/beta padded with zeros -> padded output columns are zero.
        o_ref[...] = (xhat * g_ref[...] + be_ref[...]).astype(o_ref.dtype)


def linear_ln(x, w_pad, b_pad, residual, gamma_pad, beta_pad, h_dim, *, eps=1e-7):
    """LayerNorm(x @ w + b + residual) with the whole output row (Np = padded H)
    resident in VMEM at the last K step.  bf16 in / bf16 out."""
    M, K = x.shape
    Kp, Np = w_pad.shape
    assert K <= Kp            # holds while _TN == _TK (padded FFN intermediate)
    bk = _tile_from_padded(Kp, _TK)
    Mp, bm = _row_dims(M, _TM)

    xp = jnp.pad(x, ((0, Mp - M), (0, Kp - K))).astype(jnp.bfloat16)
    rp = jnp.pad(residual,
                 ((0, Mp - residual.shape[0]), (0, Np - residual.shape[1]))
                 ).astype(jnp.bfloat16)

    out = pl.pallas_call(
        functools.partial(_linear_ln_kernel, eps=eps, inv_h=1.0 / h_dim),
        out_shape=jax.ShapeDtypeStruct((Mp, Np), jnp.bfloat16),
        grid_spec=pltpu.PrefetchScalarGridSpec(
            num_scalar_prefetch=0,
            grid=(Mp // bm, Kp // bk),
            in_specs=[pl.BlockSpec((bm, bk), lambda i, k: (i, k)),
                      pl.BlockSpec((bk, Np), lambda i, k: (k, 0)),
                      pl.BlockSpec((1, Np), lambda i, k: (0, 0)),
                      pl.BlockSpec((bm, Np), lambda i, k: (i, 0)),
                      pl.BlockSpec((1, Np), lambda i, k: (0, 0)),
                      pl.BlockSpec((1, Np), lambda i, k: (0, 0))],
            out_specs=pl.BlockSpec((bm, Np), lambda i, k: (i, 0)),
            scratch_shapes=[pltpu.VMEM((bm, Np), jnp.float32)]),
        compiler_params=pltpu.CompilerParams(
            dimension_semantics=("parallel", "arbitrary"),
            vmem_limit_bytes=_VMEM_LIMIT),
    )(xp, w_pad, b_pad, rp, gamma_pad, beta_pad)
    return out[:M, :h_dim]


# ---------------------------------------------------------------------------
# Standalone row-tiled LayerNorm (embedding LN): f32 in -> bf16 out
# ---------------------------------------------------------------------------

def _layernorm_kernel(x_ref, g_ref, b_ref, o_ref, *, eps):
    x = x_ref[...].astype(jnp.float32)
    mean = jnp.mean(x, axis=-1, keepdims=True)
    var = jnp.mean(jnp.square(x - mean), axis=-1, keepdims=True)
    xhat = (x - mean) * jax.lax.rsqrt(var + eps)
    o_ref[...] = (xhat * g_ref[...] + b_ref[...]).astype(o_ref.dtype)


def layernorm(x, gamma, beta, *, eps=1e-7):
    M, H = x.shape
    Mp, bm = _row_dims(M, _TROW)
    xp = jnp.pad(x, ((0, Mp - M), (0, 0)))
    out = pl.pallas_call(
        functools.partial(_layernorm_kernel, eps=eps),
        out_shape=jax.ShapeDtypeStruct((Mp, H), jnp.bfloat16),
        grid_spec=pltpu.PrefetchScalarGridSpec(
            num_scalar_prefetch=0,
            grid=(Mp // bm,),
            in_specs=[pl.BlockSpec((bm, H), lambda i: (i, 0)),
                      pl.BlockSpec((1, H), lambda i: (0, 0)),
                      pl.BlockSpec((1, H), lambda i: (0, 0))],
            out_specs=pl.BlockSpec((bm, H), lambda i: (i, 0))),
        compiler_params=pltpu.CompilerParams(
            dimension_semantics=("parallel",)),
    )(xp, gamma, beta)
    return out[:M]


# ---------------------------------------------------------------------------
# Flash-style attention, all heads per grid step, lane-dense (tq, heads*D) output
# ---------------------------------------------------------------------------

_TQ = 256
_TKV = 256
_FLASH_SINGLE_TILE_MAX_S = 256     # keep tiles <=256 (v5e-friendly)


def _flash_attn_kernel(q_ref, k_ref, v_ref, m_ref, o_ref,
                       m_sc, l_sc, acc_sc, *, scale, n_heads):
    ki = pl.program_id(2)

    @pl.when(ki == 0)
    def _init():
        m_sc[...] = jnp.full_like(m_sc, -1e30)
        l_sc[...] = jnp.zeros_like(l_sc)
        acc_sc[...] = jnp.zeros_like(acc_sc)

    q = q_ref[0] * scale                       # (h, tq, D) bf16, scale folded into q
    kk = k_ref[0]                              # (h, tkv, D) bf16
    # QK^T without an explicit transpose: contract the D axes, batch over heads.
    s = jax.lax.dot_general(q, kk, (((2,), (2,)), ((0,), (0,))),
                            preferred_element_type=jnp.float32)  # (h, tq, tkv)
    s = s + m_ref[0]                           # (1, tkv) additive mask, broadcast

    m_prev = m_sc[...]                                        # (h, tq, 1)
    m_cur = jnp.maximum(m_prev, jnp.max(s, axis=-1, keepdims=True))
    alpha = jnp.exp(m_prev - m_cur)
    p = jnp.exp(s - m_cur)
    l_sc[...] = alpha * l_sc[...] + jnp.sum(p, axis=-1, keepdims=True)
    acc_sc[...] = alpha * acc_sc[...] + jax.lax.dot_general(
        p.astype(v_ref.dtype), v_ref[0], (((2,), (1,)), ((0,), (0,))),
        preferred_element_type=jnp.float32)                   # (h, tq, D)
    m_sc[...] = m_cur

    @pl.when(ki == pl.num_programs(2) - 1)
    def _finalize():
        inv_l = pl.reciprocal(l_sc[...], approx=True)
        ctx = acc_sc[...] * inv_l                             # (h, tq, D) f32
        if n_heads == 1:
            merged = ctx[0]
        else:
            merged = jnp.concatenate([ctx[h] for h in range(n_heads)], axis=-1)
        o_ref[0] = merged.astype(o_ref.dtype)                 # (tq, h*D) lane-dense


def flash_attention(q, k, v, add_mask):
    """q,k,v: (B, heads, S, D) bf16; add_mask: (B, S) additive (0 / -1e9).
    Returns (B, S, heads*D) bf16 (heads already merged, lane-dense)."""
    B, n_heads, S, D = q.shape
    H = n_heads * D
    scale = 1.0 / math.sqrt(D)

    if S <= _FLASH_SINGLE_TILE_MAX_S:
        Sp = _round_up(S, 8)
        tq = tkv = Sp
    else:
        tq, tkv = _TQ, _TKV
        Sp = _round_up(S, max(tq, tkv))

    pad = Sp - S
    if pad:
        q = jnp.pad(q, ((0, 0), (0, 0), (0, pad), (0, 0)))
        k = jnp.pad(k, ((0, 0), (0, 0), (0, pad), (0, 0)))
        v = jnp.pad(v, ((0, 0), (0, 0), (0, pad), (0, 0)))
        add_mask = jnp.pad(add_mask, ((0, 0), (0, pad)), constant_values=-1e9)
    mask3 = add_mask[:, None, :]                              # (B, 1, Sp) f32

    out = pl.pallas_call(
        functools.partial(_flash_attn_kernel, scale=scale, n_heads=n_heads),
        out_shape=jax.ShapeDtypeStruct((B, Sp, H), jnp.bfloat16),
        grid_spec=pltpu.PrefetchScalarGridSpec(
            num_scalar_prefetch=0,
            grid=(B, Sp // tq, Sp // tkv),
            in_specs=[
                pl.BlockSpec((1, n_heads, tq, D), lambda b, qi, ki: (b, 0, qi, 0)),
                pl.BlockSpec((1, n_heads, tkv, D), lambda b, qi, ki: (b, 0, ki, 0)),
                pl.BlockSpec((1, n_heads, tkv, D), lambda b, qi, ki: (b, 0, ki, 0)),
                pl.BlockSpec((1, 1, tkv), lambda b, qi, ki: (b, 0, ki)),
            ],
            out_specs=pl.BlockSpec((1, tq, H), lambda b, qi, ki: (b, qi, 0)),
            scratch_shapes=[pltpu.VMEM((n_heads, tq, 1), jnp.float32),
                            pltpu.VMEM((n_heads, tq, 1), jnp.float32),
                            pltpu.VMEM((n_heads, tq, D), jnp.float32)]),
        compiler_params=pltpu.CompilerParams(
            dimension_semantics=("parallel", "parallel", "arbitrary"),
            vmem_limit_bytes=_VMEM_LIMIT),
    )(q, k, v, mask3)
    return out[:, :S, :]


# ---------------------------------------------------------------------------
# Parameters: raw f32 init + one-time prep (pad + cast weights to bf16)
# ---------------------------------------------------------------------------

def init_params(key, *, vocab, max_pos, hidden, n_layers, n_heads, ffn, n_out=3):
    def dense(k, fan_in, fan_out):
        w = jax.random.normal(k, (fan_in, fan_out), jnp.float32) * 0.02
        b = jnp.zeros((1, fan_out), jnp.float32)
        return w, b

    keys = jax.random.split(key, 3 + 4 * n_layers)
    it = iter(keys)
    p = {
        "word_emb": jax.random.normal(next(it), (vocab, hidden), jnp.float32) * 0.02,
        "pos_emb": jax.random.normal(next(it), (max_pos, hidden), jnp.float32) * 0.02,
        "emb_ln_g": jnp.ones((1, hidden), jnp.float32),
        "emb_ln_b": jnp.zeros((1, hidden), jnp.float32),
        "layers": [],
    }
    for _ in range(n_layers):
        layer = {}
        layer["w_qkv"], layer["b_qkv"] = dense(next(it), hidden, 3 * hidden)
        layer["wo"], layer["bo"] = dense(next(it), hidden, hidden)
        layer["w1"], layer["b1"] = dense(next(it), hidden, ffn)
        layer["w2"], layer["b2"] = dense(next(it), ffn, hidden)
        layer["ln1_g"] = jnp.ones((1, hidden), jnp.float32)
        layer["ln1_b"] = jnp.zeros((1, hidden), jnp.float32)
        layer["ln2_g"] = jnp.ones((1, hidden), jnp.float32)
        layer["ln2_b"] = jnp.zeros((1, hidden), jnp.float32)
        p["layers"].append(layer)
    p["fc_w"], p["fc_b"] = dense(next(it), hidden, n_out)
    return p


def _pad_cols(a, Np):
    return jnp.pad(a, ((0, 0), (0, Np - a.shape[1])))


def _prep_w(w):
    K, N = w.shape
    Kp, _ = _col_dims(K, _TK)
    Np, _ = _col_dims(N, _TN)
    return jnp.pad(w, ((0, Kp - K), (0, Np - N))).astype(jnp.bfloat16)


def _prep_b(b):
    Np, _ = _col_dims(b.shape[1], _TN)
    return _pad_cols(b, Np).astype(jnp.float32)


def prepare_params(raw):
    """Pre-pad and pre-cast all matmul weights to bf16 once (outside jit)."""
    H = raw["word_emb"].shape[1]
    Np_h, _ = _col_dims(H, _TN)
    p = {"word_emb": raw["word_emb"], "pos_emb": raw["pos_emb"],
         "emb_ln_g": raw["emb_ln_g"], "emb_ln_b": raw["emb_ln_b"],
         "layers": []}
    for lr in raw["layers"]:
        p["layers"].append({
            "w_qkv": _prep_w(lr["w_qkv"]), "b_qkv": _prep_b(lr["b_qkv"]),
            "wo": _prep_w(lr["wo"]), "bo": _prep_b(lr["bo"]),
            "w1": _prep_w(lr["w1"]), "b1": _prep_b(lr["b1"]),
            "w2": _prep_w(lr["w2"]), "b2": _prep_b(lr["b2"]),
            "ln1_g": _pad_cols(lr["ln1_g"], Np_h),
            "ln1_b": _pad_cols(lr["ln1_b"], Np_h),
            "ln2_g": _pad_cols(lr["ln2_g"], Np_h),
            "ln2_b": _pad_cols(lr["ln2_b"], Np_h),
        })
    p["fc_w"] = _prep_w(raw["fc_w"])
    p["fc_b"] = _prep_b(raw["fc_b"])
    return p


# ---------------------------------------------------------------------------
# Model forward
# ---------------------------------------------------------------------------

LAYER_CLS = -1  # CFG.layer_cls -> last hidden state


def encoder_layer(h2d, add_mask, layer, *, B, S, H, n_heads):
    """h2d: (B*S, H) bf16; post-LN transformer layer."""
    D = H // n_heads

    # fused QKV: one matmul, then ONE bf16 head-split transpose
    qkv = linear(h2d, layer["w_qkv"], layer["b_qkv"], n=3 * H)     # (B*S, 3H) bf16
    qkv = qkv.reshape(B, S, 3, n_heads, D).transpose(2, 0, 3, 1, 4)  # (3,B,h,S,D)

    ctx = flash_attention(qkv[0], qkv[1], qkv[2], add_mask)        # (B,S,H) bf16
    ctx2d = ctx.reshape(B * S, H)

    # attn out-proj with residual-add + LN fused into its epilogue
    h1 = linear_ln(ctx2d, layer["wo"], layer["bo"], h2d,
                   layer["ln1_g"], layer["ln1_b"], H)

    # FFN: w1(+gelu) keeps padded columns (they are exactly zero and feed the
    # zero-padded K rows of w2), then w2 with residual+LN fused.
    t = linear(h1, layer["w1"], layer["b1"], n=None, gelu=True)
    h2 = linear_ln(t, layer["w2"], layer["b2"], h1,
                   layer["ln2_g"], layer["ln2_b"], H)
    return h2


def feedback_model_forward(params, ids, mask, *, n_heads):
    """ids, mask: (B, S) int32 -> logits (B, S, 3) f32."""
    B, S = ids.shape
    H = params["word_emb"].shape[1]

    # embeddings (glue: gather) + layernorm (Pallas, emits bf16)
    emb = params["word_emb"][ids] + params["pos_emb"][jnp.arange(S)][None, :, :]
    h = layernorm(emb.reshape(B * S, H), params["emb_ln_g"], params["emb_ln_b"])

    # additive mask (B, S): 0 where token, -1e9 where pad; broadcast per head
    # inside the attention kernel (never materialized per head).
    add_mask = (1.0 - mask.astype(jnp.float32)) * -1e9

    for layer in params["layers"]:
        h = encoder_layer(h, add_mask, layer, B=B, S=S, H=H, n_heads=n_heads)

    # torch.stack(out.hidden_states)[LAYER_CLS] with LAYER_CLS == -1 is exactly
    # the final layer hidden state; the stack is never materialized.
    cls2d = h

    logits = linear(cls2d, params["fc_w"], params["fc_b"], n=3,
                    out_dtype=jnp.float32)
    return logits.reshape(B, S, 3)


# ---------------------------------------------------------------------------
# Main
# ---------------------------------------------------------------------------

if __name__ == "__main__":
    B, S = 2, 8
    HIDDEN, N_HEADS, N_LAYERS, FFN = 32, 2, 2, 64
    VOCAB, MAX_POS = 100, 64

    key = jax.random.PRNGKey(0)
    k_params, k_ids = jax.random.split(key)

    raw = init_params(k_params, vocab=VOCAB, max_pos=MAX_POS, hidden=HIDDEN,
                      n_layers=N_LAYERS, n_heads=N_HEADS, ffn=FFN, n_out=3)
    params = prepare_params(raw)   # one-time pad + bf16 cast of weights

    ids = jax.random.randint(k_ids, (B, S), 0, VOCAB, dtype=jnp.int32)
    mask = jnp.ones((B, S), dtype=jnp.int32)
    mask = mask.at[1, 6:].set(0)   # pad tail of second sequence

    fwd = jax.jit(functools.partial(feedback_model_forward, n_heads=N_HEADS))
    out = fwd(params, ids, mask)
    jax.block_until_ready(out)

    assert out.shape == (B, S, 3) and out.dtype == jnp.float32
    assert bool(jnp.all(jnp.isfinite(out)))
    print("KERNEL_OK")
</pallas_src>

<mosaic_0001>
module attributes {stable_mosaic.version = 11 : i64} {
  func.func @_layernorm_kernel(%arg0: i32, %arg1: memref<8x32xf32, #tpu.memory_space<vmem>>, %arg2: memref<1x32xf32, #tpu.memory_space<vmem>>, %arg3: memref<1x32xf32, #tpu.memory_space<vmem>>, %arg4: memref<8x32xbf16, #tpu.memory_space<vmem>>) attributes {dimension_semantics = [#tpu.dimension_semantics<parallel>], iteration_bounds = array<i64: 2>, scalar_prefetch = 0 : i64, scratch_operands = 0 : i64, tpu.core_type = #tpu.core_type<tc>, window_params = [{transform_indices = @transform_0, window_bounds = array<i64: 8, 32>}, {pipeline_mode = #tpu.pipeline_mode<synchronous>, transform_indices = @transform_1, window_bounds = array<i64: 1, 32>}, {pipeline_mode = #tpu.pipeline_mode<synchronous>, transform_indices = @transform_2, window_bounds = array<i64: 1, 32>}, {transform_indices = @transform_3, window_bounds = array<i64: 8, 32>}]} {
    %c0 = arith.constant 0 : index
    %c0_0 = arith.constant 0 : index
    %0 = vector.load %arg1[%c0, %c0_0] : memref<8x32xf32, #tpu.memory_space<vmem>>, vector<8x32xf32>
    %cst = arith.constant dense<0.000000e+00> : vector<8xf32>
    %1 = vector.multi_reduction <add>, %0, %cst [1] : vector<8x32xf32> to vector<8xf32>
    %2 = vector.shape_cast %1 : vector<8xf32> to vector<8x1xf32>
    %cst_1 = arith.constant 3.200000e+01 : f32
    %3 = vector.broadcast %cst_1 : f32 to vector<8x1xf32>
    %4 = arith.divf %2, %3 : vector<8x1xf32>
    %5 = vector.broadcast %4 : vector<8x1xf32> to vector<8x32xf32>
    %6 = arith.subf %0, %5 : vector<8x32xf32>
    %7 = arith.mulf %6, %6 : vector<8x32xf32>
    %cst_2 = arith.constant dense<0.000000e+00> : vector<8xf32>
    %8 = vector.multi_reduction <add>, %7, %cst_2 [1] : vector<8x32xf32> to vector<8xf32>
    %9 = vector.shape_cast %8 : vector<8xf32> to vector<8x1xf32>
    %cst_3 = arith.constant 3.200000e+01 : f32
    %10 = vector.broadcast %cst_3 : f32 to vector<8x1xf32>
    %11 = arith.divf %9, %10 : vector<8x1xf32>
    %12 = vector.broadcast %4 : vector<8x1xf32> to vector<8x32xf32>
    %13 = arith.subf %0, %12 : vector<8x32xf32>
    %cst_4 = arith.constant 1.000000e-07 : f32
    %14 = vector.broadcast %cst_4 : f32 to vector<8x1xf32>
    %15 = arith.addf %11, %14 : vector<8x1xf32>
    %16 = math.rsqrt %15 : vector<8x1xf32>
    %17 = vector.broadcast %16 : vector<8x1xf32> to vector<8x32xf32>
    %18 = arith.mulf %13, %17 : vector<8x32xf32>
    %c0_5 = arith.constant 0 : index
    %c0_6 = arith.constant 0 : index
    %19 = vector.load %arg2[%c0_5, %c0_6] : memref<1x32xf32, #tpu.memory_space<vmem>>, vector<1x32xf32>
    %20 = vector.broadcast %19 : vector<1x32xf32> to vector<8x32xf32>
    %21 = arith.mulf %18, %20 : vector<8x32xf32>
    %c0_7 = arith.constant 0 : index
    %c0_8 = arith.constant 0 : index
    %22 = vector.load %arg3[%c0_7, %c0_8] : memref<1x32xf32, #tpu.memory_space<vmem>>, vector<1x32xf32>
    %23 = vector.broadcast %22 : vector<1x32xf32> to vector<8x32xf32>
    %24 = arith.addf %21, %23 : vector<8x32xf32>
    %25 = arith.truncf %24 : vector<8x32xf32> to vector<8x32xbf16>
    %c0_9 = arith.constant 0 : index
    %c0_10 = arith.constant 0 : index
    %26 = vector.load %arg4[%c0_9, %c0_10] : memref<8x32xbf16, #tpu.memory_space<vmem>>, vector<8x32xbf16>
    tpu.vector_store %arg4[%c0_9, %c0_10], %25 {strides = array<i32>} : memref<8x32xbf16, #tpu.memory_space<vmem>>, vector<8x32xbf16>,
    return
  }
  func.func @transform_0(%arg0: i32) -> (i32, i32) {
    %c0_i32 = arith.constant 0 : i32
    %c0_i32_0 = arith.constant 0 : i32
    return %arg0, %c0_i32 : i32, i32
  }
  func.func @transform_1(%arg0: i32) -> (i32, i32) {
    %c0_i32 = arith.constant 0 : i32
    %c0_i32_0 = arith.constant 0 : i32
    %c0_i32_1 = arith.constant 0 : i32
    return %c0_i32, %c0_i32_0 : i32, i32
  }
  func.func @transform_2(%arg0: i32) -> (i32, i32) {
    %c0_i32 = arith.constant 0 : i32
    %c0_i32_0 = arith.constant 0 : i32
    %c0_i32_1 = arith.constant 0 : i32
    return %c0_i32, %c0_i32_0 : i32, i32
  }
  func.func @transform_3(%arg0: i32) -> (i32, i32) {
    %c0_i32 = arith.constant 0 : i32
    %c0_i32_0 = arith.constant 0 : i32
    return %arg0, %c0_i32 : i32, i32
  }
}

module attributes {stable_mosaic.version = 11 : i64} {
  func.func @_linear_kernel(%arg0: i32, %arg1: i32, %arg2: i32, %arg3: memref<8x128xbf16, #tpu.memory_space<vmem>>, %arg4: memref<128x128xbf16, #tpu.memory_space<vmem>>, %arg5: memref<1x128xf32, #tpu.memory_space<vmem>>, %arg6: memref<8x128xbf16, #tpu.memory_space<vmem>>, %arg7: memref<8x128xf32, #tpu.memory_space<vmem>>) attributes {dimension_semantics = [#tpu.dimension_semantics<parallel>, #tpu.dimension_semantics<parallel>, #tpu.dimension_semantics<arbitrary>], iteration_bounds = array<i64: 2, 1, 1>, scalar_prefetch = 0 : i64, scratch_operands = 1 : i64, tpu.core_type = #tpu.core_type<tc>, window_params = [{transform_indices = @transform_0, window_bounds = array<i64: 8, 128>}, {transform_indices = @transform_1, window_bounds = array<i64: 128, 128>}, {transform_indices = @transform_2, window_bounds = array<i64: 1, 128>}, {transform_indices = @transform_3, window_bounds = array<i64: 8, 128>}]} {
    %c0_i32 = arith.constant 0 : i32
    %0 = arith.cmpi eq, %arg2, %c0_i32 : i32
    %1 = arith.extui %0 : i1 to i32
    %c0_i32_0 = arith.constant 0 : i32
    %2 = arith.cmpi ne, %1, %c0_i32_0 : i32
    scf.if %2 {
      %cst_10 = arith.constant 0.000000e+00 : f32
      %12 = vector.broadcast %cst_10 : f32 to vector<8x128xf32>
      %c0_11 = arith.constant 0 : index
      %c0_12 = arith.constant 0 : index
      %13 = vector.load %arg7[%c0_11, %c0_12] : memref<8x128xf32, #tpu.memory_space<vmem>>, vector<8x128xf32>
      tpu.vector_store %arg7[%c0_11, %c0_12], %12 {strides = array<i32>} : memref<8x128xf32, #tpu.memory_space<vmem>>, vector<8x128xf32>,
    } else {
    }
    %c0 = arith.constant 0 : index
    %c0_1 = arith.constant 0 : index
    %3 = vector.load %arg7[%c0, %c0_1] : memref<8x128xf32, #tpu.memory_space<vmem>>, vector<8x128xf32>
    %c0_2 = arith.constant 0 : index
    %c0_3 = arith.constant 0 : index
    %4 = vector.load %arg3[%c0_2, %c0_3] : memref<8x128xbf16, #tpu.memory_space<vmem>>, vector<8x128xbf16>
    %c0_4 = arith.constant 0 : index
    %c0_5 = arith.constant 0 : index
    %5 = vector.load %arg4[%c0_4, %c0_5] : memref<128x128xbf16, #tpu.memory_space<vmem>>, vector<128x128xbf16>
    %cst = arith.constant dense<0.000000e+00> : vector<8x128xf32>
    %6 = tpu.matmul %4, %5, %cst {dimension_numbers = #tpu.dot_dimension_numbers<[1], [0], [0], [1], [0, 0, 1, 1], [], []>} : vector<8x128xbf16>, vector<128x128xbf16>, vector<8x128xf32> -> vector<8x128xf32>
    %7 = arith.addf %3, %6 : vector<8x128xf32>
    %c0_6 = arith.constant 0 : index
    %c0_7 = arith.constant 0 : index
    %8 = vector.load %arg7[%c0_6, %c0_7] : memref<8x128xf32, #tpu.memory_space<vmem>>, vector<8x128xf32>
    tpu.vector_store %arg7[%c0_6, %c0_7], %7 {strides = array<i32>} : memref<8x128xf32, #tpu.memory_space<vmem>>, vector<8x128xf32>,
    %c0_i32_8 = arith.constant 0 : i32
    %9 = arith.cmpi eq, %arg2, %c0_i32_8 : i32
    %10 = arith.extui %9 : i1 to i32
    %c0_i32_9 = arith.constant 0 : i32
    %11 = arith.cmpi ne, %10, %c0_i32_9 : i32
    scf.if %11 {
      %c0_10 = arith.constant 0 : index
      %c0_11 = arith.constant 0 : index
      %12 = vector.load %arg7[%c0_10, %c0_11] : memref<8x128xf32, #tpu.memory_space<vmem>>, vector<8x128xf32>
      %c0_12 = arith.constant 0 : index
      %c0_13 = arith.constant 0 : index
      %13 = vector.load %arg5[%c0_12, %c0_13] : memref<1x128xf32, #tpu.memory_space<vmem>>, vector<1x128xf32>
      %14 = vector.broadcast %13 : vector<1x128xf32> to vector<8x128xf32>
      %15 = arith.addf %12, %14 : vector<8x128xf32>
      %16 = arith.truncf %15 : vector<8x128xf32> to vector<8x128xbf16>
      %c0_14 = arith.constant 0 : index
      %c0_15 = arith.constant 0 : index
      %17 = vector.load %arg6[%c0_14, %c0_15] : memref<8x128xbf16, #tpu.memory_space<vmem>>, vector<8x128xbf16>
      tpu.vector_store %arg6[%c0_14, %c0_15], %16 {strides = array<i32>} : memref<8x128xbf16, #tpu.memory_space<vmem>>, vector<8x128xbf16>,
    } else {
    }
    return
  }
  func.func @transform_0(%arg0: i32, %arg1: i32, %arg2: i32) -> (i32, i32) {
    %c0_i32 = arith.constant 0 : i32
    return %arg0, %arg2 : i32, i32
  }
  func.func @transform_1(%arg0: i32, %arg1: i32, %arg2: i32) -> (i32, i32) {
    %c0_i32 = arith.constant 0 : i32
    return %arg2, %arg1 : i32, i32
  }
  func.func @transform_2(%arg0: i32, %arg1: i32, %arg2: i32) -> (i32, i32) {
    %c0_i32 = arith.constant 0 : i32
    %c0_i32_0 = arith.constant 0 : i32
    return %c0_i32, %arg1 : i32, i32
  }
  func.func @transform_3(%arg0: i32, %arg1: i32, %arg2: i32) -> (i32, i32) {
    %c0_i32 = arith.constant 0 : i32
    return %arg0, %arg1 : i32, i32
  }
}

module attributes {stable_mosaic.version = 11 : i64} {
  func.func @_flash_attn_kernel(%arg0: i32, %arg1: i32, %arg2: i32, %arg3: memref<1x2x8x16xbf16, #tpu.memory_space<vmem>>, %arg4: memref<1x2x8x16xbf16, #tpu.memory_space<vmem>>, %arg5: memref<1x2x8x16xbf16, #tpu.memory_space<vmem>>, %arg6: memref<1x1x8xf32, #tpu.memory_space<vmem>>, %arg7: memref<1x8x32xbf16, #tpu.memory_space<vmem>>, %arg8: memref<2x8x1xf32, #tpu.memory_space<vmem>>, %arg9: memref<2x8x1xf32, #tpu.memory_space<vmem>>, %arg10: memref<2x8x16xf32, #tpu.memory_space<vmem>>) attributes {dimension_semantics = [#tpu.dimension_semantics<parallel>, #tpu.dimension_semantics<parallel>, #tpu.dimension_semantics<arbitrary>], iteration_bounds = array<i64: 2, 1, 1>, scalar_prefetch = 0 : i64, scratch_operands = 3 : i64, tpu.core_type = #tpu.core_type<tc>, window_params = [{transform_indices = @transform_0, window_bounds = array<i64: 1, 2, 8, 16>}, {transform_indices = @transform_1, window_bounds = array<i64: 1, 2, 8, 16>}, {transform_indices = @transform_2, window_bounds = array<i64: 1, 2, 8, 16>}, {transform_indices = @transform_3, window_bounds = array<i64: 1, 1, 8>}, {transform_indices = @transform_4, window_bounds = array<i64: 1, 8, 32>}]} {
    %c0_i32 = arith.constant 0 : i32
    %0 = arith.cmpi eq, %arg2, %c0_i32 : i32
    %1 = arith.extui %0 : i1 to i32
    %c0_i32_0 = arith.constant 0 : i32
    %2 = arith.cmpi ne, %1, %c0_i32_0 : i32
    scf.if %2 {
      %cst_39 = arith.constant -1.000000e+30 : f32
      %43 = vector.broadcast %cst_39 : f32 to vector<2x8x1xf32>
      %c0_40 = arith.constant 0 : index
      %c0_41 = arith.constant 0 : index
      %c0_42 = arith.constant 0 : index
      %44 = vector.load %arg8[%c0_40, %c0_41, %c0_42] : memref<2x8x1xf32, #tpu.memory_space<vmem>>, vector<2x8x1xf32>
      tpu.vector_store %arg8[%c0_40, %c0_41, %c0_42], %43 {strides = array<i32>} : memref<2x8x1xf32, #tpu.memory_space<vmem>>, vector<2x8x1xf32>,
      %cst_43 = arith.constant 0.000000e+00 : f32
      %45 = vector.broadcast %cst_43 : f32 to vector<2x8x1xf32>
      %c0_44 = arith.constant 0 : index
      %c0_45 = arith.constant 0 : index
      %c0_46 = arith.constant 0 : index
      %46 = vector.load %arg9[%c0_44, %c0_45, %c0_46] : memref<2x8x1xf32, #tpu.memory_space<vmem>>, vector<2x8x1xf32>
      tpu.vector_store %arg9[%c0_44, %c0_45, %c0_46], %45 {strides = array<i32>} : memref<2x8x1xf32, #tpu.memory_space<vmem>>, vector<2x8x1xf32>,
      %cst_47 = arith.constant 0.000000e+00 : f32
      %47 = vector.broadcast %cst_47 : f32 to vector<2x8x16xf32>
      %c0_48 = arith.constant 0 : index
      %c0_49 = arith.constant 0 : index
      %c0_50 = arith.constant 0 : index
      %48 = vector.load %arg10[%c0_48, %c0_49, %c0_50] : memref<2x8x16xf32, #tpu.memory_space<vmem>>, vector<2x8x16xf32>
      tpu.vector_store %arg10[%c0_48, %c0_49, %c0_50], %47 {strides = array<i32>} : memref<2x8x16xf32, #tpu.memory_space<vmem>>, vector<2x8x16xf32>,
    } else {
    }
    %c0 = arith.constant 0 : index
    %c0_1 = arith.constant 0 : index
    %c0_2 = arith.constant 0 : index
    %c0_3 = arith.constant 0 : index
    %3 = vector.load %arg3[%c0, %c0_1, %c0_2, %c0_3] : memref<1x2x8x16xbf16, #tpu.memory_space<vmem>>, vector<1x2x8x16xbf16>
    %4 = vector.shape_cast %3 : vector<1x2x8x16xbf16> to vector<2x8x16xbf16>
    %cst = arith.constant 2.500000e-01 : bf16
    %5 = vector.broadcast %cst : bf16 to vector<2x8x16xbf16>
    %6 = arith.mulf %4, %5 : vector<2x8x16xbf16>
    %c0_4 = arith.constant 0 : index
    %c0_5 = arith.constant 0 : index
    %c0_6 = arith.constant 0 : index
    %c0_7 = arith.constant 0 : index
    %7 = vector.load %arg4[%c0_4, %c0_5, %c0_6, %c0_7] : memref<1x2x8x16xbf16, #tpu.memory_space<vmem>>, vector<1x2x8x16xbf16>
    %8 = vector.shape_cast %7 : vector<1x2x8x16xbf16> to vector<2x8x16xbf16>
    %cst_8 = arith.constant dense<0.000000e+00> : vector<2x8x8xf32>
    %9 = tpu.matmul %6, %8, %cst_8 {dimension_numbers = #tpu.dot_dimension_numbers<[2], [2], [1], [1], [0, 0, 0, 1, 1, 1], [0], [0]>} : vector<2x8x16xbf16>, vector<2x8x16xbf16>, vector<2x8x8xf32> -> vector<2x8x8xf32>
    %c0_9 = arith.constant 0 : index
    %c0_10 = arith.constant 0 : index
    %c0_11 = arith.constant 0 : index
    %10 = vector.load %arg6[%c0_9, %c0_10, %c0_11] : memref<1x1x8xf32, #tpu.memory_space<vmem>>, vector<1x1x8xf32>
    %11 = vector.shape_cast %10 : vector<1x1x8xf32> to vector<1x8xf32>
    %12 = vector.shape_cast %11 : vector<1x8xf32> to vector<1x1x8xf32>
    %13 = vector.broadcast %12 : vector<1x1x8xf32> to vector<2x8x8xf32>
    %14 = arith.addf %9, %13 : vector<2x8x8xf32>
    %c0_12 = arith.constant 0 : index
    %c0_13 = arith.constant 0 : index
    %c0_14 = arith.constant 0 : index
    %15 = vector.load %arg8[%c0_12, %c0_13, %c0_14] : memref<2x8x1xf32, #tpu.memory_space<vmem>>, vector<2x8x1xf32>
    %cst_15 = arith.constant dense<0xFF800000> : vector<2x8xf32>
    %16 = vector.multi_reduction <maximumf>, %14, %cst_15 [2] : vector<2x8x8xf32> to vector<2x8xf32>
    %17 = vector.shape_cast %16 : vector<2x8xf32> to vector<2x8x1xf32>
    %18 = arith.maximumf %15, %17 : vector<2x8x1xf32>
    %19 = arith.subf %15, %18 : vector<2x8x1xf32>
    %20 = math.exp %19 : vector<2x8x1xf32>
    %21 = vector.broadcast %18 : vector<2x8x1xf32> to vector<2x8x8xf32>
    %22 = arith.subf %14, %21 : vector<2x8x8xf32>
    %23 = math.exp %22 : vector<2x8x8xf32>
    %c0_16 = arith.constant 0 : index
    %c0_17 = arith.constant 0 : index
    %c0_18 = arith.constant 0 : index
    %24 = vector.load %arg9[%c0_16, %c0_17, %c0_18] : memref<2x8x1xf32, #tpu.memory_space<vmem>>, vector<2x8x1xf32>
    %25 = arith.mulf %20, %24 : vector<2x8x1xf32>
    %cst_19 = arith.constant dense<0.000000e+00> : vector<2x8xf32>
    %26 = vector.multi_reduction <add>, %23, %cst_19 [2] : vector<2x8x8xf32> to vector<2x8xf32>
    %27 = vector.shape_cast %26 : vector<2x8xf32> to vector<2x8x1xf32>
    %28 = arith.addf %25, %27 : vector<2x8x1xf32>
    %c0_20 = arith.constant 0 : index
    %c0_21 = arith.constant 0 : index
    %c0_22 = arith.constant 0 : index
    %29 = vector.load %arg9[%c0_20, %c0_21, %c0_22] : memref<2x8x1xf32, #tpu.memory_space<vmem>>, vector<2x8x1xf32>
    tpu.vector_store %arg9[%c0_20, %c0_21, %c0_22], %28 {strides = array<i32>} : memref<2x8x1xf32, #tpu.memory_space<vmem>>, vector<2x8x1xf32>,
    %c0_23 = arith.constant 0 : index
    %c0_24 = arith.constant 0 : index
    %c0_25 = arith.constant 0 : index
    %30 = vector.load %arg10[%c0_23, %c0_24, %c0_25] : memref<2x8x16xf32, #tpu.memory_space<vmem>>, vector<2x8x16xf32>
    %31 = vector.broadcast %20 : vector<2x8x1xf32> to vector<2x8x16xf32>
    %32 = arith.mulf %31, %30 : vector<2x8x16xf32>
    %33 = arith.truncf %23 : vector<2x8x8xf32> to vector<2x8x8xbf16>
    %c0_26 = arith.constant 0 : index
    %c0_27 = arith.constant 0 : index
    %c0_28 = arith.constant 0 : index
    %c0_29 = arith.constant 0 : index
    %34 = vector.load %arg5[%c0_26, %c0_27, %c0_28, %c0_29] : memref<1x2x8x16xbf16, #tpu.memory_space<vmem>>, vector<1x2x8x16xbf16>
    %35 = vector.shape_cast %34 : vector<1x2x8x16xbf16> to vector<2x8x16xbf16>
    %cst_30 = arith.constant dense<0.000000e+00> : vector<2x8x16xf32>
    %36 = tpu.matmul %33, %35, %cst_30 {dimension_numbers = #tpu.dot_dimension_numbers<[2], [1], [1], [2], [0, 0, 0, 1, 1, 2], [0], [0]>} : vector<2x8x8xbf16>, vector<2x8x16xbf16>, vector<2x8x16xf32> -> vector<2x8x16xf32>
    %37 = arith.addf %32, %36 : vector<2x8x16xf32>
    %c0_31 = arith.constant 0 : index
    %c0_32 = arith.constant 0 : index
    %c0_33 = arith.constant 0 : index
    %38 = vector.load %arg10[%c0_31, %c0_32, %c0_33] : memref<2x8x16xf32, #tpu.memory_space<vmem>>, vector<2x8x16xf32>
    tpu.vector_store %arg10[%c0_31, %c0_32, %c0_33], %37 {strides = array<i32>} : memref<2x8x16xf32, #tpu.memory_space<vmem>>, vector<2x8x16xf32>,
    %c0_34 = arith.constant 0 : index
    %c0_35 = arith.constant 0 : index
    %c0_36 = arith.constant 0 : index
    %39 = vector.load %arg8[%c0_34, %c0_35, %c0_36] : memref<2x8x1xf32, #tpu.memory_space<vmem>>, vector<2x8x1xf32>
    tpu.vector_store %arg8[%c0_34, %c0_35, %c0_36], %18 {strides = array<i32>} : memref<2x8x1xf32, #tpu.memory_space<vmem>>, vector<2x8x1xf32>,
    %c0_i32_37 = arith.constant 0 : i32
    %40 = arith.cmpi eq, %arg2, %c0_i32_37 : i32
    %41 = arith.extui %40 : i1 to i32
    %c0_i32_38 = arith.constant 0 : i32
    %42 = arith.cmpi ne, %41, %c0_i32_38 : i32
    scf.if %42 {
      %c0_39 = arith.constant 0 : index
      %c0_40 = arith.constant 0 : index
      %c0_41 = arith.constant 0 : index
      %43 = vector.load %arg9[%c0_39, %c0_40, %c0_41] : memref<2x8x1xf32, #tpu.memory_space<vmem>>, vector<2x8x1xf32>
      %44 = tpu.reciprocal %43 {approx = true} : vector<2x8x1xf32> -> vector<2x8x1xf32>
      %c0_42 = arith.constant 0 : index
      %c0_43 = arith.constant 0 : index
      %c0_44 = arith.constant 0 : index
      %45 = vector.load %arg10[%c0_42, %c0_43, %c0_44] : memref<2x8x16xf32, #tpu.memory_space<vmem>>, vector<2x8x16xf32>
      %46 = vector.broadcast %44 : vector<2x8x1xf32> to vector<2x8x16xf32>
      %47 = arith.mulf %45, %46 : vector<2x8x16xf32>
      %48 = vector.extract_strided_slice %47 {offsets = [0, 0, 0], sizes = [1, 8, 16], strides = [1, 1, 1]} : vector<2x8x16xf32> to vector<1x8x16xf32>
      %49 = vector.shape_cast %48 : vector<1x8x16xf32> to vector<8x16xf32>
      %50 = vector.extract_strided_slice %47 {offsets = [1, 0, 0], sizes = [1, 8, 16], strides = [1, 1, 1]} : vector<2x8x16xf32> to vector<1x8x16xf32>
      %51 = vector.shape_cast %50 : vector<1x8x16xf32> to vector<8x16xf32>
      %52 = tpu.concatenate %49, %51 in 1 : vector<8x16xf32>, vector<8x16xf32> -> vector<8x32xf32>
      %53 = arith.truncf %52 : vector<8x32xf32> to vector<8x32xbf16>
      %c0_45 = arith.constant 0 : index
      %c0_46 = arith.constant 0 : index
      %c0_47 = arith.constant 0 : index
      %54 = vector.load %arg7[%c0_45, %c0_46, %c0_47] : memref<1x8x32xbf16, #tpu.memory_space<vmem>>, vector<1x8x32xbf16>
      %55 = vector.shape_cast %54 : vector<1x8x32xbf16> to vector<8x32xbf16>
      %56 = vector.shape_cast %53 : vector<8x32xbf16> to vector<1x8x32xbf16>
      tpu.vector_store %arg7[%c0_45, %c0_46, %c0_47], %56 {strides = array<i32>} : memref<1x8x32xbf16, #tpu.memory_space<vmem>>, vector<1x8x32xbf16>,
    } else {
    }
    return
  }
  func.func @transform_0(%arg0: i32, %arg1: i32, %arg2: i32) -> (i32, i32, i32, i32) {
    %c0_i32 = arith.constant 0 : i32
    %c0_i32_0 = arith.constant 0 : i32
    %c0_i32_1 = arith.constant 0 : i32
    return %arg0, %c0_i32, %arg1, %c0_i32_0 : i32, i32, i32, i32
  }
  func.func @transform_1(%arg0: i32, %arg1: i32, %arg2: i32) -> (i32, i32, i32, i32) {
    %c0_i32 = arith.constant 0 : i32
    %c0_i32_0 = arith.constant 0 : i32
    %c0_i32_1 = arith.constant 0 : i32
    return %arg0, %c0_i32, %arg2, %c0_i32_0 : i32, i32, i32, i32
  }
  func.func @transform_2(%arg0: i32, %arg1: i32, %arg2: i32) -> (i32, i32, i32, i32) {
    %c0_i32 = arith.constant 0 : i32
    %c0_i32_0 = arith.constant 0 : i32
    %c0_i32_1 = arith.constant 0 : i32
    return %arg0, %c0_i32, %arg2, %c0_i32_0 : i32, i32, i32, i32
  }
  func.func @transform_3(%arg0: i32, %arg1: i32, %arg2: i32) -> (i32, i32, i32) {
    %c0_i32 = arith.constant 0 : i32
    %c0_i32_0 = arith.constant 0 : i32
    return %arg0, %c0_i32, %arg2 : i32, i32, i32
  }
  func.func @transform_4(%arg0: i32, %arg1: i32, %arg2: i32) -> (i32, i32, i32) {
    %c0_i32 = arith.constant 0 : i32
    %c0_i32_0 = arith.constant 0 : i32
    return %arg0, %arg1, %c0_i32 : i32, i32, i32
  }
}

module attributes {stable_mosaic.version = 11 : i64} {
  func.func @_linear_ln_kernel(%arg0: i32, %arg1: i32, %arg2: memref<8x128xbf16, #tpu.memory_space<vmem>>, %arg3: memref<128x128xbf16, #tpu.memory_space<vmem>>, %arg4: memref<1x128xf32, #tpu.memory_space<vmem>>, %arg5: memref<8x128xbf16, #tpu.memory_space<vmem>>, %arg6: memref<1x128xf32, #tpu.memory_space<vmem>>, %arg7: memref<1x128xf32, #tpu.memory_space<vmem>>, %arg8: memref<8x128xbf16, #tpu.memory_space<vmem>>, %arg9: memref<8x128xf32, #tpu.memory_space<vmem>>) attributes {dimension_semantics = [#tpu.dimension_semantics<parallel>, #tpu.dimension_semantics<arbitrary>], iteration_bounds = array<i64: 2, 1>, scalar_prefetch = 0 : i64, scratch_operands = 1 : i64, tpu.core_type = #tpu.core_type<tc>, window_params = [{transform_indices = @transform_0, window_bounds = array<i64: 8, 128>}, {transform_indices = @transform_1, window_bounds = array<i64: 128, 128>}, {pipeline_mode = #tpu.pipeline_mode<synchronous>, transform_indices = @transform_2, window_bounds = array<i64: 1, 128>}, {transform_indices = @transform_3, window_bounds = array<i64: 8, 128>}, {pipeline_mode = #tpu.pipeline_mode<synchronous>, transform_indices = @transform_4, window_bounds = array<i64: 1, 128>}, {pipeline_mode = #tpu.pipeline_mode<synchronous>, transform_indices = @transform_5, window_bounds = array<i64: 1, 128>}, {transform_indices = @transform_6, window_bounds = array<i64: 8, 128>}]} {
    %c0_i32 = arith.constant 0 : i32
    %0 = arith.cmpi eq, %arg1, %c0_i32 : i32
    %1 = arith.extui %0 : i1 to i32
    %c0_i32_0 = arith.constant 0 : i32
    %2 = arith.cmpi ne, %1, %c0_i32_0 : i32
    scf.if %2 {
      %cst_10 = arith.constant 0.000000e+00 : f32
      %12 = vector.broadcast %cst_10 : f32 to vector<8x128xf32>
      %c0_11 = arith.constant 0 : index
      %c0_12 = arith.constant 0 : index
      %13 = vector.load %arg9[%c0_11, %c0_12] : memref<8x128xf32, #tpu.memory_space<vmem>>, vector<8x128xf32>
      tpu.vector_store %arg9[%c0_11, %c0_12], %12 {strides = array<i32>} : memref<8x128xf32, #tpu.memory_space<vmem>>, vector<8x128xf32>,
    } else {
    }
    %c0 = arith.constant 0 : index
    %c0_1 = arith.constant 0 : index
    %3 = vector.load %arg9[%c0, %c0_1] : memref<8x128xf32, #tpu.memory_space<vmem>>, vector<8x128xf32>
    %c0_2 = arith.constant 0 : index
    %c0_3 = arith.constant 0 : index
    %4 = vector.load %arg2[%c0_2, %c0_3] : memref<8x128xbf16, #tpu.memory_space<vmem>>, vector<8x128xbf16>
    %c0_4 = arith.constant 0 : index
    %c0_5 = arith.constant 0 : index
    %5 = vector.load %arg3[%c0_4, %c0_5] : memref<128x128xbf16, #tpu.memory_space<vmem>>, vector<128x128xbf16>
    %cst = arith.constant dense<0.000000e+00> : vector<8x128xf32>
    %6 = tpu.matmul %4, %5, %cst {dimension_numbers = #tpu.dot_dimension_numbers<[1], [0], [0], [1], [0, 0, 1, 1], [], []>} : vector<8x128xbf16>, vector<128x128xbf16>, vector<8x128xf32> -> vector<8x128xf32>
    %7 = arith.addf %3, %6 : vector<8x128xf32>
    %c0_6 = arith.constant 0 : index
    %c0_7 = arith.constant 0 : index
    %8 = vector.load %arg9[%c0_6, %c0_7] : memref<8x128xf32, #tpu.memory_space<vmem>>, vector<8x128xf32>
    tpu.vector_store %arg9[%c0_6, %c0_7], %7 {strides = array<i32>} : memref<8x128xf32, #tpu.memory_space<vmem>>, vector<8x128xf32>,
    %c0_i32_8 = arith.constant 0 : i32
    %9 = arith.cmpi eq, %arg1, %c0_i32_8 : i32
    %10 = arith.extui %9 : i1 to i32
    %c0_i32_9 = arith.constant 0 : i32
    %11 = arith.cmpi ne, %10, %c0_i32_9 : i32
    scf.if %11 {
      %c0_10 = arith.constant 0 : index
      %c0_11 = arith.constant 0 : index
      %12 = vector.load %arg9[%c0_10, %c0_11] : memref<8x128xf32, #tpu.memory_space<vmem>>, vector<8x128xf32>
      %c0_12 = arith.constant 0 : index
      %c0_13 = arith.constant 0 : index
      %13 = vector.load %arg4[%c0_12, %c0_13] : memref<1x128xf32, #tpu.memory_space<vmem>>, vector<1x128xf32>
      %14 = vector.broadcast %13 : vector<1x128xf32> to vector<8x128xf32>
      %15 = arith.addf %12, %14 : vector<8x128xf32>
      %c0_14 = arith.constant 0 : index
      %c0_15 = arith.constant 0 : index
      %16 = vector.load %arg5[%c0_14, %c0_15] : memref<8x128xbf16, #tpu.memory_space<vmem>>, vector<8x128xbf16>
      %17 = arith.extf %16 : vector<8x128xbf16> to vector<8x128xf32>
      %18 = arith.addf %15, %17 : vector<8x128xf32>
      %cst_16 = arith.constant dense<0.000000e+00> : vector<8xf32>
      %19 = vector.multi_reduction <add>, %18, %cst_16 [1] : vector<8x128xf32> to vector<8xf32>
      %20 = vector.shape_cast %19 : vector<8xf32> to vector<8x1xf32>
      %cst_17 = arith.constant 3.125000e-02 : f32
      %21 = vector.broadcast %cst_17 : f32 to vector<8x1xf32>
      %22 = arith.mulf %20, %21 : vector<8x1xf32>
      %23 = arith.mulf %18, %18 : vector<8x128xf32>
      %cst_18 = arith.constant dense<0.000000e+00> : vector<8xf32>
      %24 = vector.multi_reduction <add>, %23, %cst_18 [1] : vector<8x128xf32> to vector<8xf32>
      %25 = vector.shape_cast %24 : vector<8xf32> to vector<8x1xf32>
      %cst_19 = arith.constant 3.125000e-02 : f32
      %26 = vector.broadcast %cst_19 : f32 to vector<8x1xf32>
      %27 = arith.mulf %25, %26 : vector<8x1xf32>
      %28 = arith.mulf %22, %22 : vector<8x1xf32>
      %29 = arith.subf %27, %28 : vector<8x1xf32>
      %cst_20 = arith.constant 0.000000e+00 : f32
      %30 = vector.broadcast %cst_20 : f32 to vector<8x1xf32>
      %31 = arith.maximumf %29, %30 : vector<8x1xf32>
      %32 = vector.broadcast %22 : vector<8x1xf32> to vector<8x128xf32>
      %33 = arith.subf %18, %32 : vector<8x128xf32>
      %cst_21 = arith.constant 1.000000e-07 : f32
      %34 = vector.broadcast %cst_21 : f32 to vector<8x1xf32>
      %35 = arith.addf %31, %34 : vector<8x1xf32>
      %36 = math.rsqrt %35 : vector<8x1xf32>
      %37 = vector.broadcast %36 : vector<8x1xf32> to vector<8x128xf32>
      %38 = arith.mulf %33, %37 : vector<8x128xf32>
      %c0_22 = arith.constant 0 : index
      %c0_23 = arith.constant 0 : index
      %39 = vector.load %arg6[%c0_22, %c0_23] : memref<1x128xf32, #tpu.memory_space<vmem>>, vector<1x128xf32>
      %40 = vector.broadcast %39 : vector<1x128xf32> to vector<8x128xf32>
      %41 = arith.mulf %38, %40 : vector<8x128xf32>
      %c0_24 = arith.constant 0 : index
      %c0_25 = arith.constant 0 : index
      %42 = vector.load %arg7[%c0_24, %c0_25] : memref<1x128xf32, #tpu.memory_space<vmem>>, vector<1x128xf32>
      %43 = vector.broadcast %42 : vector<1x128xf32> to vector<8x128xf32>
      %44 = arith.addf %41, %43 : vector<8x128xf32>
      %45 = arith.truncf %44 : vector<8x128xf32> to vector<8x128xbf16>
      %c0_26 = arith.constant 0 : index
      %c0_27 = arith.constant 0 : index
      %46 = vector.load %arg8[%c0_26, %c0_27] : memref<8x128xbf16, #tpu.memory_space<vmem>>, vector<8x128xbf16>
      tpu.vector_store %arg8[%c0_26, %c0_27], %45 {strides = array<i32>} : memref<8x128xbf16, #tpu.memory_space<vmem>>, vector<8x128xbf16>,
    } else {
    }
    return
  }
  func.func @transform_0(%arg0: i32, %arg1: i32) -> (i32, i32) {
    %c0_i32 = arith.constant 0 : i32
    return %arg0, %arg1 : i32, i32
  }
  func.func @transform_1(%arg0: i32, %arg1: i32) -> (i32, i32) {
    %c0_i32 = arith.constant 0 : i32
    %c0_i32_0 = arith.constant 0 : i32
    return %arg1, %c0_i32 : i32, i32
  }
  func.func @transform_2(%arg0: i32, %arg1: i32) -> (i32, i32) {
    %c0_i32 = arith.constant 0 : i32
    %c0_i32_0 = arith.constant 0 : i32
    %c0_i32_1 = arith.constant 0 : i32
    return %c0_i32, %c0_i32_0 : i32, i32
  }
  func.func @transform_3(%arg0: i32, %arg1: i32) -> (i32, i32) {
    %c0_i32 = arith.constant 0 : i32
    %c0_i32_0 = arith.constant 0 : i32
    return %arg0, %c0_i32 : i32, i32
  }
  func.func @transform_4(%arg0: i32, %arg1: i32) -> (i32, i32) {
    %c0_i32 = arith.constant 0 : i32
    %c0_i32_0 = arith.constant 0 : i32
    %c0_i32_1 = arith.constant 0 : i32
    return %c0_i32, %c0_i32_0 : i32, i32
  }
  func.func @transform_5(%arg0: i32, %arg1: i32) -> (i32, i32) {
    %c0_i32 = arith.constant 0 : i32
    %c0_i32_0 = arith.constant 0 : i32
    %c0_i32_1 = arith.constant 0 : i32
    return %c0_i32, %c0_i32_0 : i32, i32
  }
  func.func @transform_6(%arg0: i32, %arg1: i32) -> (i32, i32) {
    %c0_i32 = arith.constant 0 : i32
    %c0_i32_0 = arith.constant 0 : i32
    return %arg0, %c0_i32 : i32, i32
  }
}

module attributes {stable_mosaic.version = 11 : i64} {
  func.func @_linear_kernel(%arg0: i32, %arg1: i32, %arg2: i32, %arg3: memref<8x128xbf16, #tpu.memory_space<vmem>>, %arg4: memref<128x128xbf16, #tpu.memory_space<vmem>>, %arg5: memref<1x128xf32, #tpu.memory_space<vmem>>, %arg6: memref<8x128xbf16, #tpu.memory_space<vmem>>, %arg7: memref<8x128xf32, #tpu.memory_space<vmem>>) attributes {dimension_semantics = [#tpu.dimension_semantics<parallel>, #tpu.dimension_semantics<parallel>, #tpu.dimension_semantics<arbitrary>], iteration_bounds = array<i64: 2, 1, 1>, scalar_prefetch = 0 : i64, scratch_operands = 1 : i64, tpu.core_type = #tpu.core_type<tc>, window_params = [{transform_indices = @transform_0, window_bounds = array<i64: 8, 128>}, {transform_indices = @transform_1, window_bounds = array<i64: 128, 128>}, {transform_indices = @transform_2, window_bounds = array<i64: 1, 128>}, {transform_indices = @transform_3, window_bounds = array<i64: 8, 128>}]} {
    %c0_i32 = arith.constant 0 : i32
    %0 = arith.cmpi eq, %arg2, %c0_i32 : i32
    %1 = arith.extui %0 : i1 to i32
    %c0_i32_0 = arith.constant 0 : i32
    %2 = arith.cmpi ne, %1, %c0_i32_0 : i32
    scf.if %2 {
      %cst_10 = arith.constant 0.000000e+00 : f32
      %12 = vector.broadcast %cst_10 : f32 to vector<8x128xf32>
      %c0_11 = arith.constant 0 : index
      %c0_12 = arith.constant 0 : index
      %13 = vector.load %arg7[%c0_11, %c0_12] : memref<8x128xf32, #tpu.memory_space<vmem>>, vector<8x128xf32>
      tpu.vector_store %arg7[%c0_11, %c0_12], %12 {strides = array<i32>} : memref<8x128xf32, #tpu.memory_space<vmem>>, vector<8x128xf32>,
    } else {
    }
    %c0 = arith.constant 0 : index
    %c0_1 = arith.constant 0 : index
    %3 = vector.load %arg7[%c0, %c0_1] : memref<8x128xf32, #tpu.memory_space<vmem>>, vector<8x128xf32>
    %c0_2 = arith.constant 0 : index
    %c0_3 = arith.constant 0 : index
    %4 = vector.load %arg3[%c0_2, %c0_3] : memref<8x128xbf16, #tpu.memory_space<vmem>>, vector<8x128xbf16>
    %c0_4 = arith.constant 0 : index
    %c0_5 = arith.constant 0 : index
    %5 = vector.load %arg4[%c0_4, %c0_5] : memref<128x128xbf16, #tpu.memory_space<vmem>>, vector<128x128xbf16>
    %cst = arith.constant dense<0.000000e+00> : vector<8x128xf32>
    %6 = tpu.matmul %4, %5, %cst {dimension_numbers = #tpu.dot_dimension_numbers<[1], [0], [0], [1], [0, 0, 1, 1], [], []>} : vector<8x128xbf16>, vector<128x128xbf16>, vector<8x128xf32> -> vector<8x128xf32>
    %7 = arith.addf %3, %6 : vector<8x128xf32>
    %c0_6 = arith.constant 0 : index
    %c0_7 = arith.constant 0 : index
    %8 = vector.load %arg7[%c0_6, %c0_7] : memref<8x128xf32, #tpu.memory_space<vmem>>, vector<8x128xf32>
    tpu.vector_store %arg7[%c0_6, %c0_7], %7 {strides = array<i32>} : memref<8x128xf32, #tpu.memory_space<vmem>>, vector<8x128xf32>,
    %c0_i32_8 = arith.constant 0 : i32
    %9 = arith.cmpi eq, %arg2, %c0_i32_8 : i32
    %10 = arith.extui %9 : i1 to i32
    %c0_i32_9 = arith.constant 0 : i32
    %11 = arith.cmpi ne, %10, %c0_i32_9 : i32
    scf.if %11 {
      %c0_10 = arith.constant 0 : index
      %c0_11 = arith.constant 0 : index
      %12 = vector.load %arg7[%c0_10, %c0_11] : memref<8x128xf32, #tpu.memory_space<vmem>>, vector<8x128xf32>
      %c0_12 = arith.constant 0 : index
      %c0_13 = arith.constant 0 : index
      %13 = vector.load %arg5[%c0_12, %c0_13] : memref<1x128xf32, #tpu.memory_space<vmem>>, vector<1x128xf32>
      %14 = vector.broadcast %13 : vector<1x128xf32> to vector<8x128xf32>
      %15 = arith.addf %12, %14 : vector<8x128xf32>
      %16 = arith.mulf %15, %15 : vector<8x128xf32>
      %17 = arith.mulf %15, %16 : vector<8x128xf32>
      %cst_14 = arith.constant 4.471500e-02 : f32
      %18 = vector.broadcast %cst_14 : f32 to vector<8x128xf32>
      %19 = arith.mulf %18, %17 : vector<8x128xf32>
      %20 = arith.addf %15, %19 : vector<8x128xf32>
      %cst_15 = arith.constant 0.797884583 : f32
      %21 = vector.broadcast %cst_15 : f32 to vector<8x128xf32>
      %22 = arith.mulf %21, %20 : vector<8x128xf32>
      %23 = math.tanh %22 : vector<8x128xf32>
      %cst_16 = arith.constant 1.000000e+00 : f32
      %24 = vector.broadcast %cst_16 : f32 to vector<8x128xf32>
      %25 = arith.addf %24, %23 : vector<8x128xf32>
      %cst_17 = arith.constant 5.000000e-01 : f32
      %26 = vector.broadcast %cst_17 : f32 to vector<8x128xf32>
      %27 = arith.mulf %26, %25 : vector<8x128xf32>
      %28 = arith.mulf %15, %27 : vector<8x128xf32>
      %29 = arith.truncf %28 : vector<8x128xf32> to vector<8x128xbf16>
      %c0_18 = arith.constant 0 : index
      %c0_19 = arith.constant 0 : index
      %30 = vector.load %arg6[%c0_18, %c0_19] : memref<8x128xbf16, #tpu.memory_space<vmem>>, vector<8x128xbf16>
      tpu.vector_store %arg6[%c0_18, %c0_19], %29 {strides = array<i32>} : memref<8x128xbf16, #tpu.memory_space<vmem>>, vector<8x128xbf16>,
    } else {
    }
    return
  }
  func.func @transform_0(%arg0: i32, %arg1: i32, %arg2: i32) -> (i32, i32) {
    %c0_i32 = arith.constant 0 : i32
    return %arg0, %arg2 : i32, i32
  }
  func.func @transform_1(%arg0: i32, %arg1: i32, %arg2: i32) -> (i32, i32) {
    %c0_i32 = arith.constant 0 : i32
    return %arg2, %arg1 : i32, i32
  }
  func.func @transform_2(%arg0: i32, %arg1: i32, %arg2: i32) -> (i32, i32) {
    %c0_i32 = arith.constant 0 : i32
    %c0_i32_0 = arith.constant 0 : i32
    return %c0_i32, %arg1 : i32, i32
  }
  func.func @transform_3(%arg0: i32, %arg1: i32, %arg2: i32) -> (i32, i32) {
    %c0_i32 = arith.constant 0 : i32
    return %arg0, %arg1 : i32, i32
  }
}

module attributes {stable_mosaic.version = 11 : i64} {
  func.func @_linear_kernel(%arg0: i32, %arg1: i32, %arg2: i32, %arg3: memref<8x128xbf16, #tpu.memory_space<vmem>>, %arg4: memref<128x128xbf16, #tpu.memory_space<vmem>>, %arg5: memref<1x128xf32, #tpu.memory_space<vmem>>, %arg6: memref<8x128xf32, #tpu.memory_space<vmem>>, %arg7: memref<8x128xf32, #tpu.memory_space<vmem>>) attributes {dimension_semantics = [#tpu.dimension_semantics<parallel>, #tpu.dimension_semantics<parallel>, #tpu.dimension_semantics<arbitrary>], iteration_bounds = array<i64: 2, 1, 1>, scalar_prefetch = 0 : i64, scratch_operands = 1 : i64, tpu.core_type = #tpu.core_type<tc>, window_params = [{transform_indices = @transform_0, window_bounds = array<i64: 8, 128>}, {transform_indices = @transform_1, window_bounds = array<i64: 128, 128>}, {transform_indices = @transform_2, window_bounds = array<i64: 1, 128>}, {transform_indices = @transform_3, window_bounds = array<i64: 8, 128>}]} {
    %c0_i32 = arith.constant 0 : i32
    %0 = arith.cmpi eq, %arg2, %c0_i32 : i32
    %1 = arith.extui %0 : i1 to i32
    %c0_i32_0 = arith.constant 0 : i32
    %2 = arith.cmpi ne, %1, %c0_i32_0 : i32
    scf.if %2 {
      %cst_10 = arith.constant 0.000000e+00 : f32
      %12 = vector.broadcast %cst_10 : f32 to vector<8x128xf32>
      %c0_11 = arith.constant 0 : index
      %c0_12 = arith.constant 0 : index
      %13 = vector.load %arg7[%c0_11, %c0_12] : memref<8x128xf32, #tpu.memory_space<vmem>>, vector<8x128xf32>
      tpu.vector_store %arg7[%c0_11, %c0_12], %12 {strides = array<i32>} : memref<8x128xf32, #tpu.memory_space<vmem>>, vector<8x128xf32>,
    } else {
    }
    %c0 = arith.constant 0 : index
    %c0_1 = arith.constant 0 : index
    %3 = vector.load %arg7[%c0, %c0_1] : memref<8x128xf32, #tpu.memory_space<vmem>>, vector<8x128xf32>
    %c0_2 = arith.constant 0 : index
    %c0_3 = arith.constant 0 : index
    %4 = vector.load %arg3[%c0_2, %c0_3] : memref<8x128xbf16, #tpu.memory_space<vmem>>, vector<8x128xbf16>
    %c0_4 = arith.constant 0 : index
    %c0_5 = arith.constant 0 : index
    %5 = vector.load %arg4[%c0_4, %c0_5] : memref<128x128xbf16, #tpu.memory_space<vmem>>, vector<128x128xbf16>
    %cst = arith.constant dense<0.000000e+00> : vector<8x128xf32>
    %6 = tpu.matmul %4, %5, %cst {dimension_numbers = #tpu.dot_dimension_numbers<[1], [0], [0], [1], [0, 0, 1, 1], [], []>} : vector<8x128xbf16>, vector<128x128xbf16>, vector<8x128xf32> -> vector<8x128xf32>
    %7 = arith.addf %3, %6 : vector<8x128xf32>
    %c0_6 = arith.constant 0 : index
    %c0_7 = arith.constant 0 : index
    %8 = vector.load %arg7[%c0_6, %c0_7] : memref<8x128xf32, #tpu.memory_space<vmem>>, vector<8x128xf32>
    tpu.vector_store %arg7[%c0_6, %c0_7], %7 {strides = array<i32>} : memref<8x128xf32, #tpu.memory_space<vmem>>, vector<8x128xf32>,
    %c0_i32_8 = arith.constant 0 : i32
    %9 = arith.cmpi eq, %arg2, %c0_i32_8 : i32
    %10 = arith.extui %9 : i1 to i32
    %c0_i32_9 = arith.constant 0 : i32
    %11 = arith.cmpi ne, %10, %c0_i32_9 : i32
    scf.if %11 {
      %c0_10 = arith.constant 0 : index
      %c0_11 = arith.constant 0 : index
      %12 = vector.load %arg7[%c0_10, %c0_11] : memref<8x128xf32, #tpu.memory_space<vmem>>, vector<8x128xf32>
      %c0_12 = arith.constant 0 : index
      %c0_13 = arith.constant 0 : index
      %13 = vector.load %arg5[%c0_12, %c0_13] : memref<1x128xf32, #tpu.memory_space<vmem>>, vector<1x128xf32>
      %14 = vector.broadcast %13 : vector<1x128xf32> to vector<8x128xf32>
      %15 = arith.addf %12, %14 : vector<8x128xf32>
      %c0_14 = arith.constant 0 : index
      %c0_15 = arith.constant 0 : index
      %16 = vector.load %arg6[%c0_14, %c0_15] : memref<8x128xf32, #tpu.memory_space<vmem>>, vector<8x128xf32>
      tpu.vector_store %arg6[%c0_14, %c0_15], %15 {strides = array<i32>} : memref<8x128xf32, #tpu.memory_space<vmem>>, vector<8x128xf32>,
    } else {
    }
    return
  }
  func.func @transform_0(%arg0: i32, %arg1: i32, %arg2: i32) -> (i32, i32) {
    %c0_i32 = arith.constant 0 : i32
    return %arg0, %arg2 : i32, i32
  }
  func.func @transform_1(%arg0: i32, %arg1: i32, %arg2: i32) -> (i32, i32) {
    %c0_i32 = arith.constant 0 : i32
    return %arg2, %arg1 : i32, i32
  }
  func.func @transform_2(%arg0: i32, %arg1: i32, %arg2: i32) -> (i32, i32) {
    %c0_i32 = arith.constant 0 : i32
    %c0_i32_0 = arith.constant 0 : i32
    return %c0_i32, %arg1 : i32, i32
  }
  func.func @transform_3(%arg0: i32, %arg1: i32, %arg2: i32) -> (i32, i32) {
    %c0_i32 = arith.constant 0 : i32
    return %arg0, %arg1 : i32, i32
  }
}

</mosaic_0001>

<bundles_post_ra>
// kernel: feedback_model_forward.12
= control target key start
LH: loop header
LB: loop body
LE: loop exit
PB: predicated region body
PF: predicated region fallthrough
CT: control target
= control target key end

     0   :  { %s303_s12 = smov 0   ;;  %s326_s0 = inlined_call_operand.vmem [shape: f32[16,32], index: 0, kind: input, shape index: {}]   ;;  %s327_s1 = inlined_call_operand.vmem [shape: f32[1,32], index: 1, kind: input, shape index: {}]   ;;  %s328_s2 = inlined_call_operand.vmem [shape: f32[1,32], index: 2, kind: input, shape index: {}]   ;;  %s329_s3 = inlined_call_operand.vmem [shape: bf16[16,32], index: 3, kind: output, shape index: {}]  }
   0x1 LB: > { %s254_s13 = sadd.s32 4294967295, %s281_s12   ;;  %p258_p0 = scmp.ge.s32.totalorder %s281_s12, 1  ;;  %s281_s12 = sphi %s303_s12, %s13_s12  }
   0x2   : > { %p136_p1 = scmp.lt.s32.totalorder %s281_s12, 3 }
   0x4   : > { %p137_p2 = pnand %p258_p0, %p136_p1 }
   0x5   : > { %p158_p3 = scmp.lt.s32.totalorder (!%p137_p2), %s254_s13, 1  ;;  %vm167_vm0 = vcmask (!%p137_p2), 261120   ;;  %v261_v11 = vld [vmem:[%s327_s1] ss:$0 sm:$0xff] (!%p137_p2)  ;;  %vm199_vm1 = vcmask (!%p137_p2), 257024  }
   0x6   : > { %140 = sbr.rel (%p137_p2) target bundleno = 333 (0x14d), region = 32  ;;  %v262_v13 = vld [vmem:[%s328_s2] ss:$0 sm:$0xff] (!%p137_p2) }
   0xd   : > { %s331_s13 = smov (!%p158_p3, %s254_s13), 1 }
   0xe   : > { %s259_s14 = sshll.u32 %s331_s13, 3  ;;  %s260_s22 = sshll.u32 %s331_s13, 2 }
   0xf   : > { %s161_s17 = scalar_lea.vmem %s326_s0, %s259_s14  ;;  %s165_s25 = scalar_lea.vmem %s329_s3, %s260_s22 }
  0x10   : > { %v166_v0 = vld [vmem:[%s161_s17] sm:$0xff] }
  0x11   : > { %v168_v1 = vsel %vm167_vm0, %v166_v0, 0.0 }
  0x12   : > { %169 = vadd.xlane.f32.xlu0 %v168_v1 }
  0x9f   : > { %v170_v2 = vpop.xlane.xlu0 %169 }
  0xa0   : > { %v172_v3 = vmul.f32 0.03125, %v170_v2 }
  0xa2   : > { %v173_v4 = vsub.f32 %v166_v0, %v172_v3 }
  0xa4   : > { %v174_v5 = vmul.f32 %v173_v4, %v173_v4 }
  0xa6   : > { %v175_v6 = vsel %vm167_vm0, %v174_v5, 0.0 }
  0xa7   : > { %176 = vadd.xlane.f32.xlu0 %v175_v6 }
 0x134   : > { %v177_v7 = vpop.xlane.xlu0 %176 }
 0x135   : > { %v178_v8 = vmul.f32 0.03125, %v177_v7 }
 0x137   : > { %v179_v9 = vadd.f32 1e-07, %v178_v8 }
 0x139   : > { %273 = vrsqrt.f32 %v179_v9 }
 0x143   : > { %v274_v10 = vpop.eup %273 }
 0x144   : > { %v181_v12 = vmul.f32 %v274_v10, %v173_v4 }
 0x146   : > { %v189_v14 = vmul.f32 %v261_v11, %v181_v12 }
 0x148   : > { %v197_v15 = vadd.f32 %v262_v13, %v189_v14 }
 0x14a   : > { %v198_v16 = vpack.c.bf16 %v197_v15, %v197_v15 }
 0x14c   : > { %200 = vst.msk [vmem:[%s165_s25] sm:$0xf] %vm199_vm1, %v198_v16 }
 0x14d PF: > { %s13_s12 = sadd.s32 1, %s281_s12  }
 0x14e   : > { %p10_p4 = scmp.ge.s32.totalorder %s13_s12, 4  }
 0x150   :  { %12 = sbr.rel (!%p10_p4) target bundleno = 1 (0x1), region = 62 }

// kernel: feedback_model_forward.13
= control target key start
LH: loop header
LB: loop body
LE: loop exit
PB: predicated region body
PF: predicated region fallthrough
CT: control target
= control target key end

     0   :  { %8 = vsyncpa [#allocation4], 0  ;;  %s1117_s0 = inlined_call_operand.hbm [shape: bf16[16,128], index: 0, kind: input, shape index: {}]   ;;  %s1118_s1 = inlined_call_operand.hbm [shape: bf16[128,128], index: 1, kind: input, shape index: {}]   ;;  %s1119_s2 = inlined_call_operand.hbm [shape: f32[1,128], index: 2, kind: input, shape index: {}]   ;;  %s1120_s3 = inlined_call_operand.hbm [shape: bf16[16,128], index: 3, kind: output, shape index: {}]  }
   0x1   :  { %10 = vsyncpa [#allocation4 + $0x1], 0 }
   0x2   :  { %11 = vsyncpa [#allocation7], 0 }
   0x3   :  { %12 = vsyncpa [#allocation5], 0 }
   0x4   :  { %14 = vsyncpa [#allocation5 + $0x1], 0  ;;  %s859_s12 = smov 0   ;;  %s861_s13 = smov 0  }
   0x5   :  { %s863_s14 = smov 0   ;;  %s865_s15 = smov 0  }
   0x6   :  { %s867_s16 = smov 0   ;;  %s869_s17 = smov 0  }
   0x7 LB: > { %s507_s18 = sadd.s32 4294967295, %s829_s17   ;;  %s508_s19 = sadd.s32 4294967294, %s829_s17   ;;  %s829_s17 = sphi %s869_s17, %s20_s17   ;;  %s825_s16 = sphi %s867_s16, %s1142_s16   ;;  %s821_s15 = sphi %s865_s15, %s1141_s15   ;;  %s817_s14 = sphi %s863_s14, %s1140_s14   ;;  %s813_s13 = sphi %s861_s13, %s1139_s13   ;;  %s809_s12 = sphi %s859_s12, %s1138_s12  }
   0x8   : > { %p61_p0 = scmp.ne.s32.totalorder %s813_s13, %s809_s12  ;;  %p893_p1 = scmp.eq.s32.totalorder %s507_s18, 0 }
   0x9   : > { %p897_p2 = scmp.eq.s32.totalorder %s507_s18, 1  ;;  %p147_p3 = scmp.eq.s32.totalorder %s508_s19, 1 }
   0xa   : > { %s1125_s20 = scalar_select %p893_p1, 1, 0 }
   0xb   : > { %p903_p4 = por %p893_p1, %p61_p0  ;;  %p509_p5 = scmp.ge.s32.totalorder %s829_s17, 1 }
   0xc   : > { %p908_p6 = por %p147_p3, %p61_p0  ;;  %p154_p7 = scmp.lt.s32.totalorder %s829_s17, 3 }
   0xd   : > { %s1127_s22 = scalar_select %p903_p4, 1, 0 }
   0xe   : > { %s1128_s23 = scalar_select %p908_p6, 1, 0 }
   0xf   : > { %p913_p8 = pnand %p509_p5, %p154_p7  ;;  %s831_s25 = smov [#allocation6]  }
  0x10   : > { %s170_s26 = sshll.u32 %s831_s25, 4  ;;  %s832_s28 = smov [#allocation8]   ;;  %s917_s26 = int_to_ptr.vmem [resolvable:$true] %s170_s26 }
  0x11   : > { %p574_p9 = pneg %p913_p8  ;;  %s186_s29 = sshll.u32 %s832_s28, 4  ;;  %s928_s29 = int_to_ptr.vmem [resolvable:$true] %s186_s29 }
  0x12   : > { %s657_s5 = scalar_lea.hbm %s1118_s1, 1024 }
  0x13   : > { %p924_p11 = pnand %p574_p9, %p893_p1  ;;  %p658_p12 = scmp.ne.s32.totalorder %s1118_s1, %s657_s5 }
  0x14   : > { %p664_p5 = scmp.lt.u32.totalorder %s657_s5, %s1118_s1 }
  0x15   : > { %p659_p13 = pneg %p924_p11 }
  0x17   : > { %p660_p0 = pnand %p659_p13, %p658_p12 }
  0x19   : > { %p661_p3 = pneg %p660_p0 }
  0x1b   : > { %p666_p7 = pnand %p664_p5, %p661_p3 }
  0x1d   : > { %669 = shalt.err (!%p666_p7)
}
  0x1e   : > { %s670_s10 = scalar_lea.vmem %s917_s26, 1024  ;;  %p678_p1 = scmp.lt.s32.totalorder %s917_s26, %s917_s26 }
  0x1f   : > { %p671_p9 = scmp.ne.s32.totalorder %s917_s26, %s670_s10  ;;  %p679_p12 = scmp.lt.s32.totalorder %s670_s10, %s670_s10 }
  0x21   : > { %p673_p10 = pnand %p671_p9, %p659_p13  ;;  %p680_p0 = por %p679_p12, %p678_p1 }
  0x23   : > { %p674_p6 = pneg %p673_p10 }
  0x25   : > { %p681_p4 = pnand %p680_p0, %p674_p6 }
  0x27   : > { %684 = shalt.err (!%p681_p4)
}
  0x28   : > { %s833_s11 = smov 64   ;;  %s834_s18 = smov 4  }
  0x29   : > { %577 = dma.hbm_to_vmem [thread:$0]  (!%p924_p11), %s1118_s1, 1024, %s917_s26, [#allocation7], %s833_s11, %s833_s11, %s834_s18  }
  0x2a   : > { %s685_s4 = scalar_lea.hbm %s1119_s2, 16 }
  0x2b   : > { %p686_p1 = scmp.ne.s32.totalorder %s1119_s2, %s685_s4  ;;  %p692_p10 = scmp.lt.u32.totalorder %s685_s4, %s1119_s2 }
  0x2d   : > { %p688_p4 = pnand %p686_p1, %p659_p13 }
  0x2f   : > { %p689_p6 = pneg %p688_p4 }
  0x31   : > { %p694_p3 = pnand %p692_p10, %p689_p6 }
  0x33   : > { %697 = shalt.err (!%p694_p3)
}
  0x34   : > { %s698_s26 = scalar_lea.vmem %s928_s29, 16  ;;  %s705_s9 = scalar_lea.vmem %s928_s29, 32 }
  0x35   : > { %p699_p5 = scmp.ne.s32.totalorder %s928_s29, %s698_s26  ;;  %p706_p12 = scmp.lt.s32.totalorder %s928_s29, %s928_s29 }
  0x36   : > { %p707_p0 = scmp.lt.s32.totalorder %s705_s9, %s698_s26 }
  0x37   : > { %p701_p7 = pnand %p699_p5, %p659_p13 }
  0x38   : > { %p708_p1 = por %p707_p0, %p706_p12 }
  0x39   : > { %p702_p9 = pneg %p701_p7 }
  0x3b   : > { %p709_p4 = pnand %p708_p1, %p702_p9 }
  0x3d   : > { %712 = shalt.err (!%p709_p4)
}
  0x3e   : > { %580 = dma.hbm_to_vmem [thread:$0]  (!%p924_p11), %s1119_s2, 16, %s928_s29, [#allocation7]  }
  0x3f   : > { %s39_s18 = sadd.s32 1, %s825_s16  ;;  %s48_s19 = sadd.s32 1, %s817_s14 }
  0x40   : > { %p41_p13 = scmp.ge.s32.totalorder %s39_s18, 2  ;;  %p55_p6 = scmp.ne.s32.totalorder %s817_s14, %s813_s13 }
  0x41   : > { %p56_p10 = scmp.eq.s32.totalorder %s829_s17, 0  ;;  %p591_p3 = scmp.lt.s32.totalorder %s829_s17, 2 }
  0x42   : > { %s1144_s18 = smov (%p41_p13, %s39_s18), 0  ;;  %p993_p7 = por %p897_p2, %p55_p6 }
  0x43   : > { %p57_p5 = por %p56_p10, %p55_p6  ;;  %s43_s25 = ssub.s32 %s825_s16, %s1144_s18 }
  0x44   : > { %s1131_s27 = scalar_select %p993_p7, 1, 0 }
  0x45   : > { %s197_s28 = sand.u32 1, %s817_s14   ;;  %p46_p9 = scmp.eq.s32.totalorder %s43_s25, 0 }
  0x46   : > { %s513_s29 = sshll.u32 %s197_s28, 2  ;;  %s514_s30 = sshll.u32 %s825_s16, 6 }
  0x47   : > { %s1002_s4 = scalar_select %p46_p9, %s817_s14, %s48_s19  }
  0x48   : > { %s1007_s7 = scalar_lea.hbm %s1117_s0, %s514_s30  ;;  %s201_s21 = scalar_lea.vmem [#allocation3], %s513_s29 }
  0x49   : > { %s209_s8 = sshll.u32 %s201_s21, 4  ;;  %p1011_p2 = pnand %p591_p3, %p57_p5  ;;  %s1015_s8 = int_to_ptr.vmem [resolvable:$true] %s209_s8 }
  0x4a   : > { %s198_s9 = scalar_lea.sflag [#allocation4], %s197_s28  ;;  %s713_s10 = scalar_lea.hbm %s1007_s7, 64 }
  0x4b   : > { %p714_p11 = scmp.ne.s32.totalorder %s1007_s7, %s713_s10  ;;  %p715_p12 = pneg %p1011_p2 }
  0x4c   : > { %s718_s25 = scalar_lea.hbm %s1117_s0, 128  ;;  %p719_p4 = scmp.lt.u32.totalorder %s1007_s7, %s1117_s0 }
  0x4d   : > { %p716_p0 = pnand %p715_p12, %p714_p11  ;;  %p720_p13 = scmp.lt.u32.totalorder %s718_s25, %s713_s10 }
  0x4e   : > { %p722_p10 = scmp.lt.u32.totalorder %s713_s10, %s1007_s7 }
  0x4f   : > { %p717_p1 = pneg %p716_p0  ;;  %p721_p6 = por %p720_p13, %p719_p4 }
  0x51   : > { %p723_p3 = por %p722_p10, %p721_p6 }
  0x53   : > { %p724_p5 = pnand %p723_p3, %p717_p1 }
  0x55   : > { %727 = shalt.err (!%p724_p5)
}
  0x56   : > { %s728_s28 = scalar_lea.vmem %s1015_s8, 64  ;;  %s835_s5 = smov [#allocation3]  }
  0x57   : > { %p729_p9 = scmp.ne.s32.totalorder %s1015_s8, %s728_s28  ;;  %s733_s6 = sshll.u32 %s835_s5, 4  ;;  %s734_s6 = int_to_ptr.vmem [resolvable:$false] %s733_s6 }
  0x58   : > { %s735_s21 = scalar_lea.vmem %s734_s6, 128  ;;  %p736_p7 = scmp.lt.s32.totalorder %s1015_s8, %s734_s6 }
  0x59   : > { %p731_p11 = pnand %p729_p9, %p715_p12  ;;  %p737_p4 = scmp.lt.s32.totalorder %s735_s21, %s728_s28 }
  0x5b   : > { %p732_p0 = pneg %p731_p11  ;;  %p738_p13 = por %p737_p4, %p736_p7 }
  0x5d   : > { %p739_p6 = pnand %p738_p13, %p732_p0 }
  0x5f   : > { %742 = shalt.err (!%p739_p6)
}
  0x60   : > { %584 = dma.hbm_to_vmem [thread:$0]  (!%p1011_p2), %s1007_s7, 64, %s1015_s8, %s198_s9  }
  0x61   : > { %218 = sbr.rel (%p913_p8) target bundleno = 371 (0x173), region = 32  ;;  %s1045_s10 = sand.u32 (!%p913_p8), 1, %s813_s13  }
  0x62   : > { %s516_s11 = sshll.u32 (!%p913_p8), %s1045_s10, 2  ;;  %s221_s19 = scalar_lea.sflag (!%p913_p8), [#allocation4], %s1045_s10 }
  0x63   : > { %s1051_s25 = scalar_lea.vmem (!%p913_p8), [#allocation3], %s516_s11  ;;  %p1133_p7 = scmp.ne.s32.totalorder (!%p913_p8), %s1127_s22, 0 }
  0x68   : > { %796 = dma.done.wait (%p1133_p7), %s221_s19, 64  }
  0x69   : > { %798 = vsyncadd (%p1133_p7), %s221_s19, 4294967232  ;;  %p1134_p2 = scmp.ne.s32.totalorder %s1125_s20, 0 }
  0x6b   : > { %800 = dma.done.wait (%p1134_p2), [#allocation7], 1040  }
  0x6c   : > { %802 = vsyncadd (%p1134_p2), [#allocation7], 4294966256  ;;  %v836_v0 = vmov 0.0   ;;  %vm837_vm0 = vmmov 0   ;;  %v649_v1 = vld [vmem:[#allocation6] sm:$0xff]   ;;  %v650_v2 = vld [vmem:[#allocation6 + $0x8] sm:$0xff]  }
  0x6d   : > { %542 = vmatprep.subr.bf16.mxu0 %v836_v0  ;;  %558 = vmatprep.mubr.msk.bf16.mxu0 %vm837_vm0, %v836_v0  ;;  %v651_v3 = vld [vmem:[#allocation6 + $0x10] sm:$0xff]   ;;  %v652_v4 = vld [vmem:[#allocation6 + $0x18] sm:$0xff]   ;;  %v653_v5 = vld [vmem:[#allocation6 + $0x20] sm:$0xff]   ;;  %s530_s20 = sshll.u32 %s821_s15, 6  ;;  %s254_s22 = scalar_lea.vmem [#allocation9], %s516_s11 }
  0x6e   : > { %543 = vmatpush3.bf16.msra.mxu0 %v649_v1  ;;  %v654_v6 = vld [vmem:[#allocation6 + $0x28] sm:$0xff]   ;;  %v655_v7 = vld [vmem:[#allocation6 + $0x30] sm:$0xff]   ;;  %v656_v8 = vld [vmem:[#allocation6 + $0x38] sm:$0xff]   ;;  %s399_s24 = sshll.u32 %s254_s22, 4  ;;  %s1068_s26 = scalar_lea.hbm %s1120_s3, %s530_s20  ;;  %s1070_s24 = int_to_ptr.vmem [resolvable:$true] %s399_s24 }
  0x6f   : > { %544 = vmatprep.subr.bf16.mxu0 %v836_v0  ;;  %v263_v9 = vld [vmem:[%s1051_s25] sm:$0xf]  ;;  %v528_v10 = vld [vmem:[#allocation8] ss:$0 sm:$0xff]  ;;  %s385_s15 = scalar_lea.sflag [#allocation5], %s1045_s10  ;;  %s743_s9 = scalar_lea.vmem %s1070_s24, 64 }
  0x70   : > { %p744_p8 = scmp.ne.s32.totalorder %s1070_s24, %s743_s9  ;;  %p1135_p12 = scmp.ne.s32.totalorder %s1131_s27, 0 }
  0x71   : > { %s838_s29 = smov [#allocation9]  }
  0x72   : > { %545 = vmatpush3.bf16.msra.mxu0 %v650_v2  ;;  %p745_p1 = pnand %p744_p8, %p1135_p12  ;;  %s747_s30 = sshll.u32 %s838_s29, 4  ;;  %s748_s30 = int_to_ptr.vmem [resolvable:$false] %s747_s30 }
  0x73   : > { %546 = vmatprep.subr.bf16.mxu0 %v836_v0  ;;  %s749_s28 = scalar_lea.vmem %s748_s30, 128  ;;  %p750_p3 = scmp.lt.s32.totalorder %s1070_s24, %s748_s30 }
  0x74   : > { %p746_p10 = pneg %p745_p1  ;;  %p751_p5 = scmp.lt.s32.totalorder %s749_s28, %s743_s9 }
  0x76   : > { %547 = vmatpush3.bf16.msra.mxu0 %v651_v3  ;;  %p752_p9 = por %p751_p5, %p750_p3 }
  0x77   : > { %548 = vmatprep.subr.bf16.mxu0 %v836_v0 }
  0x78   : > { %p753_p11 = pnand %p752_p9, %p746_p10 }
  0x7a   : > { %549 = vmatpush3.bf16.msra.mxu0 %v652_v4 }
  0x7b   : > { %550 = vmatprep.subr.bf16.mxu0 %v836_v0 }
  0x7e   : > { %551 = vmatpush3.bf16.msra.mxu0 %v653_v5 }
  0x7f   : > { %552 = vmatprep.subr.bf16.mxu0 %v836_v0 }
  0x82   : > { %553 = vmatpush3.bf16.msra.mxu0 %v654_v6 }
  0x83   : > { %554 = vmatprep.subr.bf16.mxu0 %v836_v0 }
  0x86   : > { %555 = vmatpush3.bf16.msra.mxu0 %v655_v7 }
  0x87   : > { %556 = vmatprep.subr.bf16.mxu0 %v836_v0 }
  0x8a   : > { %557 = vmatpush3.bf16.msra.mxu0 %v656_v8 }
  0x8d   : > { %559 = vmatmul.mubr.bf16.vlgmr.msra.gmra.mrb[0].mxu0 %v263_v9 }
 0x160   : > { %v362_v11 = vpop.f32.mrb[0].mxu0 }
 0x161   : > { %v381_v12 = vadd.f32 %v528_v10, %v362_v11  ;;  %v560_v13 = vpop.f32.mrb[1].mxu0 }
 0x162   : > { %v365_v14 = vpop.f32.mrb[2].mxu0 }
 0x163   : > { %v382_v15 = vpack.c.bf16 %v381_v12, %v381_v12  ;;  %v561_v16 = vpop.f32.mrb[3].mxu0 }
 0x165   : > { %383 = vst [vmem:[%s254_s22] sm:$0xf] %v382_v15 }
 0x166   : > { %756 = shalt.err (!%p753_p11)
}
 0x167   : > { %s757_s5 = scalar_lea.hbm %s1068_s26, 64  ;;  %s761_s10 = scalar_lea.hbm %s1120_s3, 128 }
 0x168   : > { %p758_p0 = scmp.ne.s32.totalorder %s1068_s26, %s757_s5  ;;  %p762_p6 = scmp.lt.u32.totalorder %s1068_s26, %s1120_s3 }
 0x169   : > { %p763_p7 = scmp.lt.u32.totalorder %s761_s10, %s757_s5  ;;  %p765_p8 = scmp.lt.u32.totalorder %s757_s5, %s1068_s26 }
 0x16a   : > { %p759_p4 = pnand %p758_p0, %p1135_p12 }
 0x16b   : > { %p764_p2 = por %p763_p7, %p762_p6 }
 0x16c   : > { %p760_p13 = pneg %p759_p4 }
 0x16d   : > { %p766_p1 = por %p765_p8, %p764_p2 }
 0x16f   : > { %p767_p10 = pnand %p766_p1, %p760_p13 }
 0x171   : > { %770 = shalt.err (!%p767_p10)
}
 0x172   : > { %572 = dma.vmem_to_hbm [thread:$0]  (%p1135_p12), %s1070_s24, 64, %s1068_s26, %s385_s15  }
 0x173 PF: > { %s411_s25 = sand.u32 1, %s809_s12   ;;  %p1136_p3 = scmp.ne.s32.totalorder %s1128_s23, 0 }
 0x174   : > { %p1137_p5 = scmp.ge.s32.totalorder %s829_s17, 2  ;;  %s412_s20 = scalar_lea.sflag [#allocation5], %s411_s25 }
 0x176   : > { %p586_p9 = pnand %p1137_p5, %p1136_p3 }
 0x178   : > { %804 = dma.done.wait (!%p586_p9), %s412_s20, 64  }
 0x179   : > { %806 = vsyncadd (!%p586_p9), %s412_s20, 4294967232  ;;  %s20_s17 = sadd.s32 1, %s829_s17   ;;  %s1138_s12 = smov %s813_s13 }
 0x17a   : > { %p17_p11 = scmp.ge.s32.totalorder %s20_s17, 4   ;;  %s1139_s13 = smov %s817_s14 }
 0x17b   : > { %s1140_s14 = smov %s1002_s4  ;;  %s1141_s15 = smov %s825_s16 }
 0x17c   : > { %s1142_s16 = smov %s1144_s18  ;;  %19 = sbr.rel (!%p17_p11) target bundleno = 7 (0x7), region = 95 }
 0x183   :  { %417 = vsyncpa [#allocation4], 1 }
 0x184   :  { %419 = vsyncpa [#allocation4 + $0x1], 1 }
 0x185   :  { %420 = vsyncpa [#allocation7], 1 }
 0x186   :  { %421 = vsyncpa [#allocation5], 1 }
 0x187   :  { %423 = vsyncpa [#allocation5 + $0x1], 1 }

// kernel: feedback_model_forward.15
= control target key start
LH: loop header
LB: loop body
LE: loop exit
PB: predicated region body
PF: predicated region fallthrough
CT: control target
= control target key end

     0   :  { %s1540_s0 = inlined_call_operand.hbm [shape: bf16[16,128], index: 0, kind: input, shape index: {}]   ;;  %s1541_s1 = inlined_call_operand.hbm [shape: bf16[128,128], index: 1, kind: input, shape index: {}]   ;;  %s1542_s2 = inlined_call_operand.hbm [shape: f32[1,128], index: 2, kind: input, shape index: {}]   ;;  %s1543_s3 = inlined_call_operand.hbm [shape: bf16[16,128], index: 3, kind: input, shape index: {}]   ;;  %s1544_s4 = inlined_call_operand.hbm [shape: f32[1,128], index: 4, kind: input, shape index: {}]   ;;  %s1545_s5 = inlined_call_operand.hbm [shape: f32[1,128], index: 5, kind: input, shape index: {}]   ;;  %s1546_s6 = inlined_call_operand.hbm [shape: bf16[16,128], index: 6, kind: output, shape index: {}]  }
   0x1   :  { %1552 = sst [smem:[#allocation22_spill]] %s1541_s1 }
   0x2   :  { %1553 = sst [smem:[#allocation23_spill]] %s1542_s2 }
   0x3   :  { %1554 = sst [smem:[#allocation24_spill]] %s1544_s4 }
   0x4   :  { %1555 = sst [smem:[#allocation25_spill]] %s1545_s5 }
   0x5   :  { %11 = vsyncpa [#allocation4], 0 }
   0x6   :  { %13 = vsyncpa [#allocation4 + $0x1], 0 }
   0x7   :  { %14 = vsyncpa [#allocation7], 0 }
   0x8   :  { %15 = vsyncpa [#allocation10], 0 }
   0x9   :  { %17 = vsyncpa [#allocation10 + $0x1], 0 }
   0xa   :  { %18 = vsyncpa [#allocation13], 0 }
   0xb   :  { %19 = vsyncpa [#allocation5], 0 }
   0xc   :  { %21 = vsyncpa [#allocation5 + $0x1], 0  ;;  %s1201_s21 = smov 0   ;;  %s1203_s22 = smov 0  }
   0xd   :  { %s1205_s23 = smov 0   ;;  %s1207_s24 = smov 0  }
   0xe   :  { %s1209_s25 = smov 0   ;;  %s1211_s26 = smov 0  }
   0xf LB: > { %s1232_s27 = sadd.s32 4294967295, %s1153_s26   ;;  %p699_p0 = scmp.ge.s32.totalorder %s1153_s26, 1  ;;  %s1153_s26 = sphi %s1211_s26, %s27_s26   ;;  %s1149_s25 = sphi %s1209_s25, %s1586_s25   ;;  %s1145_s24 = sphi %s1207_s24, %s1585_s24   ;;  %s1141_s23 = sphi %s1205_s23, %s1584_s23   ;;  %s1137_s22 = sphi %s1203_s22, %s1583_s22   ;;  %s1133_s21 = sphi %s1201_s21, %s1582_s21  }
  0x10   : > { %p1547_p1 = scmp.eq.s32.totalorder %s1232_s27, 0  ;;  %p213_p2 = scmp.lt.s32.totalorder %s1153_s26, 3 }
  0x11   : > { %s1155_s29 = smov [#allocation6]   ;;  %s1156_s8 = smov [#allocation11]  }
  0x12   : > { %p1237_p3 = pnand %p699_p0, %p213_p2  ;;  %s228_s30 = sshll.u32 %s1155_s29, 4  ;;  %s1241_s30 = int_to_ptr.vmem [resolvable:$true] %s228_s30 }
  0x13   : > { %s253_s9 = sshll.u32 %s1156_s8, 4  ;;  %s1157_s10 = smov [#allocation8]   ;;  %s1252_s9 = int_to_ptr.vmem [resolvable:$true] %s253_s9 }
  0x14   : > { %s1556_s28 = scalar_select %p1237_p3, 1, 0 }
  0x15   : > { %p783_p4 = pneg %p1237_p3  ;;  %s1254_s11 = sshll.u32 %s1157_s10, 4  ;;  %s243_s11 = int_to_ptr.vmem [resolvable:$true] %s1254_s11 }
  0x16   : > { %s1558_s1 = sld [smem:[#allocation22_spill]] }
  0x17   : > { %p1248_p6 = pnand %p783_p4, %p1547_p1 }
  0x19   : > { %p1264_p8 = pneg %p1248_p6 }
  0x1c   : > { %s883_s14 = scalar_lea.hbm %s1558_s1, 1024 }
  0x1d   : > { %p884_p7 = scmp.ne.s32.totalorder %s1558_s1, %s883_s14  ;;  %p890_p11 = scmp.lt.u32.totalorder %s883_s14, %s1558_s1 }
  0x1f   : > { %p886_p9 = pnand %p1264_p8, %p884_p7 }
  0x21   : > { %p887_p10 = pneg %p886_p9 }
  0x23   : > { %p892_p12 = pnand %p890_p11, %p887_p10 }
  0x25   : > { %895 = shalt.err (!%p892_p12)
}
  0x26   : > { %s896_s20 = scalar_lea.vmem %s1241_s30, 1024  ;;  %p904_p4 = scmp.lt.s32.totalorder %s1241_s30, %s1241_s30 }
  0x27   : > { %p897_p13 = scmp.ne.s32.totalorder %s1241_s30, %s896_s20  ;;  %p905_p5 = scmp.lt.s32.totalorder %s896_s20, %s896_s20 }
  0x29   : > { %p899_p0 = pnand %p897_p13, %p1264_p8  ;;  %p906_p7 = por %p905_p5, %p904_p4 }
  0x2b   : > { %p900_p2 = pneg %p899_p0 }
  0x2d   : > { %p907_p9 = pnand %p906_p7, %p900_p2 }
  0x2f   : > { %910 = shalt.err (!%p907_p9)
}
  0x30   : > { %s1158_s29 = smov 64   ;;  %s1159_s8 = smov 4  }
  0x31   : > { %786 = dma.hbm_to_vmem [thread:$0]  (!%p1248_p6), %s1558_s1, 1024, %s1241_s30, [#allocation7], %s1158_s29, %s1158_s29, %s1159_s8  }
  0x32   : > { %s1560_s4 = sld [smem:[#allocation24_spill]] }
  0x38   : > { %s911_s15 = scalar_lea.hbm %s1560_s4, 16 }
  0x39   : > { %p912_p5 = scmp.ne.s32.totalorder %s1560_s4, %s911_s15  ;;  %p918_p12 = scmp.lt.u32.totalorder %s911_s15, %s1560_s4 }
  0x3b   : > { %p914_p10 = pnand %p912_p5, %p1264_p8 }
  0x3d   : > { %p915_p11 = pneg %p914_p10 }
  0x3f   : > { %p920_p13 = pnand %p918_p12, %p915_p11 }
  0x41   : > { %923 = shalt.err (!%p920_p13)
}
  0x42   : > { %s924_s30 = scalar_lea.vmem %s1252_s9, 16  ;;  %s931_s29 = scalar_lea.vmem %s1252_s9, 32 }
  0x43   : > { %p925_p0 = scmp.ne.s32.totalorder %s1252_s9, %s924_s30  ;;  %p932_p7 = scmp.lt.s32.totalorder %s1252_s9, %s1252_s9 }
  0x44   : > { %p933_p9 = scmp.lt.s32.totalorder %s931_s29, %s924_s30 }
  0x45   : > { %p927_p2 = pnand %p925_p0, %p1264_p8 }
  0x46   : > { %p934_p5 = por %p933_p9, %p932_p7 }
  0x47   : > { %p928_p4 = pneg %p927_p2 }
  0x49   : > { %p935_p10 = pnand %p934_p5, %p928_p4 }
  0x4b   : > { %938 = shalt.err (!%p935_p10)
}
  0x4c   : > { %792 = dma.hbm_to_vmem [thread:$0]  (!%p1248_p6), %s1560_s4, 16, %s1252_s9, [#allocation10]  }
  0x4d   : > { %s1561_s2 = sld [smem:[#allocation23_spill]] }
  0x53   : > { %s939_s14 = scalar_lea.hbm %s1561_s2, 16 }
  0x54   : > { %p940_p11 = scmp.ne.s32.totalorder %s1561_s2, %s939_s14  ;;  %p946_p0 = scmp.lt.u32.totalorder %s939_s14, %s1561_s2 }
  0x56   : > { %p942_p12 = pnand %p940_p11, %p1264_p8 }
  0x58   : > { %p943_p13 = pneg %p942_p12 }
  0x5a   : > { %p948_p2 = pnand %p946_p0, %p943_p13 }
  0x5c   : > { %951 = shalt.err (!%p948_p2)
}
  0x5d   : > { %s952_s20 = scalar_lea.vmem %s243_s11, 16  ;;  %s959_s9 = scalar_lea.vmem %s243_s11, 32 }
  0x5e   : > { %p953_p4 = scmp.ne.s32.totalorder %s243_s11, %s952_s20  ;;  %p960_p5 = scmp.lt.s32.totalorder %s243_s11, %s243_s11 }
  0x5f   : > { %p961_p10 = scmp.lt.s32.totalorder %s959_s9, %s952_s20 }
  0x60   : > { %p955_p7 = pnand %p953_p4, %p1264_p8 }
  0x61   : > { %p962_p1 = por %p961_p10, %p960_p5 }
  0x62   : > { %p956_p9 = pneg %p955_p7 }
  0x64   : > { %p963_p3 = pnand %p962_p1, %p956_p9 }
  0x66   : > { %966 = shalt.err (!%p963_p3)
}
  0x67   : > { %789 = dma.hbm_to_vmem [thread:$0]  (!%p1248_p6), %s1561_s2, 16, %s243_s11, [#allocation7]  }
  0x68   : > { %s1160_s8 = smov [#allocation12]   ;;  %s1562_s5 = sld [smem:[#allocation25_spill]] }
  0x69   : > { %s264_s10 = sshll.u32 %s1160_s8, 4  ;;  %s265_s10 = int_to_ptr.vmem [resolvable:$true] %s264_s10 }
  0x6e   : > { %s967_s14 = scalar_lea.hbm %s1562_s5, 16 }
  0x6f   : > { %p968_p11 = scmp.ne.s32.totalorder %s1562_s5, %s967_s14  ;;  %p974_p12 = scmp.lt.u32.totalorder %s967_s14, %s1562_s5 }
  0x71   : > { %p970_p1 = pnand %p968_p11, %p1264_p8 }
  0x73   : > { %p971_p3 = pneg %p970_p1 }
  0x75   : > { %p976_p13 = pnand %p974_p12, %p971_p3 }
  0x77   : > { %979 = shalt.err (!%p976_p13)
}
  0x78   : > { %s980_s11 = scalar_lea.vmem %s265_s10, 16  ;;  %s987_s20 = scalar_lea.vmem %s265_s10, 32 }
  0x79   : > { %p981_p0 = scmp.ne.s32.totalorder %s265_s10, %s980_s11  ;;  %p988_p7 = scmp.lt.s32.totalorder %s265_s10, %s265_s10 }
  0x7a   : > { %p989_p9 = scmp.lt.s32.totalorder %s987_s20, %s980_s11 }
  0x7b   : > { %p983_p2 = pnand %p981_p0, %p1264_p8 }
  0x7c   : > { %p990_p5 = por %p989_p9, %p988_p7 }
  0x7d   : > { %p984_p4 = pneg %p983_p2 }
  0x7f   : > { %p991_p10 = pnand %p990_p5, %p984_p4 }
  0x81   : > { %994 = shalt.err (!%p991_p10)
}
  0x82   : > { %795 = dma.hbm_to_vmem [thread:$0]  (!%p1248_p6), %s1562_s5, 16, %s265_s10, [#allocation13]  }
  0x83   : > { %s698_s17 = sadd.s32 4294967294, %s1153_s26   ;;  %s39_s29 = sadd.s32 1, %s1149_s25 }
  0x84   : > { %p41_p8 = scmp.ge.s32.totalorder %s39_s29, 2  ;;  %s48_s7 = sadd.s32 1, %s1141_s23 }
  0x85   : > { %p55_p11 = scmp.ne.s32.totalorder %s1141_s23, %s1137_s22  ;;  %p56_p1 = scmp.eq.s32.totalorder %s1153_s26, 0 }
  0x86   : > { %s1588_s29 = smov (%p41_p8, %s39_s29), 0  ;;  %p61_p12 = scmp.ne.s32.totalorder %s1137_s22, %s1133_s21 }
  0x87   : > { %1563 = sst [smem:[#allocation21_spill]] %s1588_s29  ;;  %p1354_p3 = por %p56_p1, %p55_p11 }
  0x88   : > { %s43_s10 = ssub.s32 %s1149_s25, %s1588_s29  ;;  %p200_p6 = scmp.eq.s32.totalorder %s1232_s27, 1 }
  0x89   : > { %p46_p13 = scmp.eq.s32.totalorder %s43_s10, 0  ;;  %p1565_p0 = scmp.eq.s32.totalorder %s1232_s27, 0 }
  0x8a   : > { %p1369_p4 = por %p200_p6, %p55_p11  ;;  %p206_p7 = scmp.eq.s32.totalorder %s698_s17, 1 }
  0x8b   : > { %p1365_p2 = por %p1565_p0, %p61_p12  ;;  %p811_p5 = scmp.lt.s32.totalorder %s1153_s26, 2 }
  0x8c   : > { %s1567_s13 = scalar_select %p1369_p4, 1, 0 }
  0x8d   : > { %s1566_s12 = scalar_select %p1365_p2, 1, 0 }
  0x8e   : > { %s1374_s14 = scalar_select %p46_p13, %s1141_s23, %s48_s7  }
  0x8f   : > { %p1376_p9 = por %p206_p7, %p61_p12  ;;  %s275_s16 = sand.u32 1, %s1141_s23  }
  0x90   : > { %s706_s18 = sshll.u32 %s1149_s25, 6  ;;  %s1383_s19 = sshll.u32 %s275_s16, 2 }
  0x91   : > { %s1568_s15 = scalar_select %p1376_p9, 1, 0 }
  0x92   : > { %s1388_s9 = scalar_lea.hbm %s1540_s0, %s706_s18  ;;  %s279_s30 = scalar_lea.vmem [#allocation3], %s1383_s19 }
  0x93   : > { %s287_s17 = sshll.u32 %s279_s30, 4  ;;  %p1393_p10 = pnand %p811_p5, %p1354_p3  ;;  %s1397_s17 = int_to_ptr.vmem [resolvable:$true] %s287_s17 }
  0x94   : > { %s1402_s20 = scalar_lea.hbm %s1543_s3, %s706_s18  ;;  %s276_s1 = scalar_lea.sflag [#allocation4], %s275_s16 }
  0x95   : > { %s995_s2 = scalar_lea.hbm %s1388_s9, 64  ;;  %p997_p11 = pneg %p1393_p10 }
  0x96   : > { %p996_p8 = scmp.ne.s32.totalorder %s1388_s9, %s995_s2  ;;  %s1000_s4 = scalar_lea.hbm %s1540_s0, 128 }
  0x97   : > { %p1001_p12 = scmp.lt.u32.totalorder %s1388_s9, %s1540_s0  ;;  %p1002_p6 = scmp.lt.u32.totalorder %s1000_s4, %s995_s2 }
  0x98   : > { %p998_p1 = pnand %p997_p11, %p996_p8  ;;  %p1004_p0 = scmp.lt.u32.totalorder %s995_s2, %s1388_s9 }
  0x99   : > { %p1003_p13 = por %p1002_p6, %p1001_p12 }
  0x9a   : > { %p999_p3 = pneg %p998_p1 }
  0x9b   : > { %p1005_p7 = por %p1004_p0, %p1003_p13 }
  0x9d   : > { %p1006_p5 = pnand %p1005_p7, %p999_p3 }
  0x9f   : > { %1009 = shalt.err (!%p1006_p5)
}
  0xa0   : > { %s1010_s16 = scalar_lea.vmem %s1397_s17, 64  ;;  %s1161_s18 = smov [#allocation3]  }
  0xa1   : > { %p1011_p8 = scmp.ne.s32.totalorder %s1397_s17, %s1010_s16  ;;  %s1015_s10 = sshll.u32 %s1161_s18, 4  ;;  %s1016_s10 = int_to_ptr.vmem [resolvable:$false] %s1015_s10 }
  0xa2   : > { %s1017_s5 = scalar_lea.vmem %s1016_s10, 128  ;;  %p1018_p4 = scmp.lt.s32.totalorder %s1397_s17, %s1016_s10 }
  0xa3   : > { %p1013_p1 = pnand %p1011_p8, %p997_p11  ;;  %p1019_p12 = scmp.lt.s32.totalorder %s1017_s5, %s1010_s16 }
  0xa5   : > { %p1014_p9 = pneg %p1013_p1  ;;  %p1020_p6 = por %p1019_p12, %p1018_p4 }
  0xa7   : > { %p1021_p13 = pnand %p1020_p6, %p1014_p9 }
  0xa9   : > { %1024 = shalt.err (!%p1021_p13)
}
  0xaa   : > { %799 = dma.hbm_to_vmem [thread:$0]  (!%p1393_p10), %s1388_s9, 64, %s1397_s17, %s276_s1  }
  0xab   : > { %s294_s2 = sand.u32 1, %s1153_s26   ;;  %s298_s4 = scalar_lea.vmem [#allocation9], %s1383_s19 }
  0xac   : > { %s305_s29 = sshll.u32 %s298_s4, 4  ;;  %s295_s11 = scalar_lea.sflag [#allocation10], %s294_s2  ;;  %s306_s29 = int_to_ptr.vmem [resolvable:$true] %s305_s29 }
  0xad   : > { %s1025_s8 = scalar_lea.hbm %s1402_s20, 64  ;;  %s1030_s18 = scalar_lea.hbm %s1543_s3, 128 }
  0xae   : > { %p1026_p4 = scmp.ne.s32.totalorder %s1402_s20, %s1025_s8  ;;  %p1031_p0 = scmp.lt.u32.totalorder %s1402_s20, %s1543_s3 }
  0xaf   : > { %p1032_p7 = scmp.lt.u32.totalorder %s1030_s18, %s1025_s8  ;;  %p1034_p8 = scmp.lt.u32.totalorder %s1025_s8, %s1402_s20 }
  0xb0   : > { %p1028_p9 = pnand %p1026_p4, %p997_p11 }
  0xb1   : > { %p1033_p5 = por %p1032_p7, %p1031_p0 }
  0xb2   : > { %p1029_p3 = pneg %p1028_p9 }
  0xb3   : > { %p1035_p1 = por %p1034_p8, %p1033_p5 }
  0xb5   : > { %p1036_p12 = pnand %p1035_p1, %p1029_p3 }
  0xb7   : > { %1039 = shalt.err (!%p1036_p12)
}
  0xb8   : > { %s1040_s1 = scalar_lea.vmem %s306_s29, 64  ;;  %s1162_s19 = smov [#allocation9]  }
  0xb9   : > { %p1041_p6 = scmp.ne.s32.totalorder %s306_s29, %s1040_s1  ;;  %s1045_s9 = sshll.u32 %s1162_s19, 4  ;;  %s1046_s9 = int_to_ptr.vmem [resolvable:$false] %s1045_s9 }
  0xba   : > { %s1047_s17 = scalar_lea.vmem %s1046_s9, 128  ;;  %p1048_p9 = scmp.lt.s32.totalorder %s306_s29, %s1046_s9 }
  0xbb   : > { %p1043_p13 = pnand %p1041_p6, %p997_p11  ;;  %p1049_p2 = scmp.lt.s32.totalorder %s1047_s17, %s1040_s1 }
  0xbd   : > { %p1044_p4 = pneg %p1043_p13  ;;  %p1050_p0 = por %p1049_p2, %p1048_p9 }
  0xbf   : > { %p1051_p7 = pnand %p1050_p0, %p1044_p4 }
  0xc1   : > { %1054 = shalt.err (!%p1051_p7)
}
  0xc2   : > { %802 = dma.hbm_to_vmem [thread:$0]  (!%p1393_p10), %s1402_s20, 64, %s306_s29, %s295_s11  }
  0xc3   : > { %p1570_p3 = scmp.ne.s32.totalorder %s1556_s28, 0 }
  0xc4   : > { %s1453_s2 = sand.u32 (!%p1570_p3), 1, %s1137_s22   ;;  %p1571_p2 = scmp.ne.s32.totalorder (!%p1570_p3), %s1566_s12, 0 }
  0xc5   : > { %314 = sbr.rel (%p1570_p3) target bundleno = 653 (0x28d), region = 44  ;;  %s1456_s4 = sshll.u32 (!%p1570_p3), %s1453_s2, 2 }
  0xc6   : > { %s317_s8 = scalar_lea.sflag (!%p1570_p3), [#allocation4], %s1453_s2  ;;  %s320_s30 = scalar_lea.vmem (!%p1570_p3), [#allocation3], %s1456_s4 }
  0xcc   : > { %1108 = dma.done.wait (%p1571_p2), %s317_s8, 64  }
  0xcd   : > { %1110 = vsyncadd (%p1571_p2), %s317_s8, 4294967232  ;;  %p1572_p10 = scmp.eq.s32.totalorder %s1232_s27, 0 }
  0xcf   : > { %1112 = dma.done.wait (%p1572_p10), [#allocation7], 1040   ;;  %p1573_p11 = pmov %p1572_p10 }
  0xd0   : > { %s333_s28 = sand.u32 1, %s1232_s27   ;;  %s337_s20 = scalar_lea.vmem [#allocation9], %s1456_s4 }
  0xd1   : > { %1114 = vsyncadd (%p1573_p11), [#allocation7], 4294966256  ;;  %s334_s7 = scalar_lea.sflag [#allocation10], %s333_s28 }
  0xd2   : > { %1116 = dma.done.wait (%p1571_p2), %s334_s7, 64  }
  0xd3   : > { %1118 = vsyncadd (%p1571_p2), %s334_s7, 4294967232  ;;  %p1574_p5 = pmov %p1572_p10 }
  0xd5   : > { %1120 = dma.done.wait (%p1574_p5), [#allocation10], 16   ;;  %p1575_p8 = pmov %p1574_p5 }
  0xd6   : > { %p1576_p1 = pmov %p1574_p5 }
  0xd7   : > { %1122 = vsyncadd (%p1575_p8), [#allocation10], 4294967280 }
  0xd8   : > { %1124 = dma.done.wait (%p1576_p1), [#allocation13], 16   ;;  %p1577_p12 = pmov %p1576_p1 }
  0xd9   : > { %v1163_v0 = vmov 0.0   ;;  %vm1164_vm0 = vmmov 0   ;;  %v873_v1 = vld [vmem:[#allocation6] sm:$0xff]   ;;  %v874_v2 = vld [vmem:[#allocation6 + $0x8] sm:$0xff]   ;;  %v875_v3 = vld [vmem:[#allocation6 + $0x10] sm:$0xff]   ;;  %s729_s27 = sshll.u32 %s1145_s24, 6 }
  0xda   : > { %1126 = vsyncadd (%p1577_p12), [#allocation13], 4294967280  ;;  %741 = vmatprep.subr.bf16.mxu0 %v1163_v0  ;;  %757 = vmatprep.mubr.msk.bf16.mxu0 %vm1164_vm0, %v1163_v0  ;;  %v876_v4 = vld [vmem:[#allocation6 + $0x18] sm:$0xff]   ;;  %v877_v5 = vld [vmem:[#allocation6 + $0x20] sm:$0xff]   ;;  %s378_s12 = scalar_lea.vmem [#allocation14], %s1456_s4  ;;  %s1491_s18 = scalar_lea.hbm %s1546_s6, %s729_s27 }
  0xdb   : > { %742 = vmatpush3.bf16.msra.mxu0 %v873_v1  ;;  %v878_v6 = vld [vmem:[#allocation6 + $0x28] sm:$0xff]   ;;  %v879_v7 = vld [vmem:[#allocation6 + $0x30] sm:$0xff]   ;;  %v880_v8 = vld [vmem:[#allocation6 + $0x38] sm:$0xff]   ;;  %s555_s29 = sshll.u32 %s378_s12, 4  ;;  %s542_s10 = scalar_lea.sflag [#allocation5], %s1453_s2  ;;  %s1493_s29 = int_to_ptr.vmem [resolvable:$true] %s555_s29 }
  0xdc   : > { %743 = vmatprep.subr.bf16.mxu0 %v1163_v0  ;;  %v387_v9 = vld [vmem:[%s320_s30] sm:$0xf]  ;;  %v506_v10 = vld [vmem:[%s337_s20] sm:$0xf]  ;;  %v725_v11 = vld [vmem:[#allocation8] ss:$0 sm:$0xff] }
  0xdd   : > { %v507_v12 = vunpack.c.l.bf16 %v506_v10  ;;  %v726_v30 = vld [vmem:[#allocation11] ss:$0 sm:$0xff]  ;;  %v727_v32 = vld [vmem:[#allocation12] ss:$0 sm:$0xff]  ;;  %s1055_s5 = scalar_lea.vmem %s1493_s29, 64  ;;  %p1578_p13 = scmp.ne.s32.totalorder %s1567_s13, 0 }
  0xde   : > { %p1056_p6 = scmp.ne.s32.totalorder %s1493_s29, %s1055_s5  ;;  %s1165_s24 = smov [#allocation14]  }
  0xdf   : > { %744 = vmatpush3.bf16.msra.mxu0 %v874_v2  ;;  %s1059_s1 = sshll.u32 %s1165_s24, 4  ;;  %s1060_s1 = int_to_ptr.vmem [resolvable:$false] %s1059_s1 }
  0xe0   : > { %745 = vmatprep.subr.bf16.mxu0 %v1163_v0  ;;  %p1057_p4 = pnand %p1056_p6, %p1578_p13  ;;  %s1061_s19 = scalar_lea.vmem %s1060_s1, 128 }
  0xe1   : > { %p1062_p0 = scmp.lt.s32.totalorder %s1493_s29, %s1060_s1  ;;  %p1063_p7 = scmp.lt.s32.totalorder %s1061_s19, %s1055_s5 }
  0xe2   : > { %p1058_p9 = pneg %p1057_p4 }
  0xe3   : > { %746 = vmatpush3.bf16.msra.mxu0 %v875_v3  ;;  %p1064_p3 = por %p1063_p7, %p1062_p0 }
  0xe4   : > { %747 = vmatprep.subr.bf16.mxu0 %v1163_v0 }
  0xe5   : > { %p1065_p2 = pnand %p1064_p3, %p1058_p9 }
  0xe7   : > { %748 = vmatpush3.bf16.msra.mxu0 %v876_v4 }
  0xe8   : > { %749 = vmatprep.subr.bf16.mxu0 %v1163_v0 }
  0xeb   : > { %750 = vmatpush3.bf16.msra.mxu0 %v877_v5 }
  0xec   : > { %751 = vmatprep.subr.bf16.mxu0 %v1163_v0 }
  0xef   : > { %752 = vmatpush3.bf16.msra.mxu0 %v878_v6 }
  0xf0   : > { %753 = vmatprep.subr.bf16.mxu0 %v1163_v0 }
  0xf3   : > { %754 = vmatpush3.bf16.msra.mxu0 %v879_v7 }
  0xf4   : > { %755 = vmatprep.subr.bf16.mxu0 %v1163_v0 }
  0xf7   : > { %756 = vmatpush3.bf16.msra.mxu0 %v880_v8 }
  0xfa   : > { %758 = vmatmul.mubr.bf16.vlgmr.msra.gmra.mrb[0].mxu0 %v387_v9 }
 0x1cd   : > { %v486_v13 = vpop.f32.mrb[0].mxu0 }
 0x1ce   : > { %v505_v14 = vadd.f32 %v725_v11, %v486_v13  ;;  %v759_v15 = vpop.f32.mrb[1].mxu0 }
 0x1cf   : > { %v489_v16 = vpop.f32.mrb[2].mxu0 }
 0x1d0   : > { %v508_v17 = vadd.f32 %v507_v12, %v505_v14  ;;  %v760_v18 = vpop.f32.mrb[3].mxu0 }
 0x1d2   : > { %509 = vadd.xlane.f32.xlu0 %v508_v17  ;;  %v512_v19 = vmul.f32 %v508_v17, %v508_v17 }
 0x1d6   : > { %513 = vadd.xlane.f32.xlu0 %v512_v19 }
 0x25f   : > { %v510_v20 = vpop.xlane.xlu0 %509 }
 0x260   : > { %v511_v21 = vmul.f32 0.03125, %v510_v20 }
 0x262   : > { %v516_v23 = vmul.f32 %v511_v21, %v511_v21  ;;  %v519_v28 = vsub.f32 %v508_v17, %v511_v21 }
 0x263   : > { %v514_v22 = vpop.xlane.xlu0 %513 }
 0x264   : > { %v515_v24 = vmul.f32 0.03125, %v514_v22 }
 0x266   : > { %v517_v25 = vsub.f32 %v515_v24, %v516_v23 }
 0x268   : > { %v518_v26 = vmax.f32 %v517_v25, 0.0 }
 0x26a   : > { %v520_v27 = vadd.f32 1e-07, %v518_v26 }
 0x26c   : > { %881 = vrsqrt.f32 %v520_v27 }
 0x276   : > { %v882_v29 = vpop.eup %881 }
 0x277   : > { %v522_v31 = vmul.f32 %v882_v29, %v519_v28 }
 0x279   : > { %v530_v33 = vmul.f32 %v726_v30, %v522_v31 }
 0x27b   : > { %v538_v34 = vadd.f32 %v727_v32, %v530_v33 }
 0x27d   : > { %v539_v35 = vpack.c.bf16 %v538_v34, %v538_v34 }
 0x27f   : > { %540 = vst [vmem:[%s378_s12] sm:$0xf] %v539_v35 }
 0x280   : > { %1068 = shalt.err (!%p1065_p2)
}
 0x281   : > { %s1069_s9 = scalar_lea.hbm %s1491_s18, 64  ;;  %s1073_s4 = scalar_lea.hbm %s1546_s6, 128 }
 0x282   : > { %p1070_p10 = scmp.ne.s32.totalorder %s1491_s18, %s1069_s9  ;;  %p1074_p8 = scmp.lt.u32.totalorder %s1491_s18, %s1546_s6 }
 0x283   : > { %p1075_p1 = scmp.lt.u32.totalorder %s1073_s4, %s1069_s9  ;;  %p1077_p6 = scmp.lt.u32.totalorder %s1069_s9, %s1491_s18 }
 0x284   : > { %p1071_p11 = pnand %p1070_p10, %p1578_p13 }
 0x285   : > { %p1076_p12 = por %p1075_p1, %p1074_p8 }
 0x286   : > { %p1072_p5 = pneg %p1071_p11 }
 0x287   : > { %p1078_p4 = por %p1077_p6, %p1076_p12 }
 0x289   : > { %p1079_p9 = pnand %p1078_p4, %p1072_p5 }
 0x28b   : > { %1082 = shalt.err (!%p1079_p9)
}
 0x28c   : > { %781 = dma.vmem_to_hbm [thread:$0]  (%p1578_p13), %s1493_s29, 64, %s1491_s18, %s542_s10  }
 0x28d PF: > { %s567_s28 = sand.u32 1, %s1133_s21   ;;  %p1579_p0 = scmp.ne.s32.totalorder %s1568_s15, 0 }
 0x28e   : > { %p1580_p7 = scmp.ge.s32.totalorder %s1153_s26, 2  ;;  %s568_s7 = scalar_lea.sflag [#allocation5], %s567_s28 }
 0x290   : > { %p804_p3 = pnand %p1580_p7, %p1579_p0 }
 0x292   : > { %1128 = dma.done.wait (!%p804_p3), %s568_s7, 64  }
 0x293   : > { %1130 = vsyncadd (!%p804_p3), %s568_s7, 4294967232  ;;  %s27_s26 = sadd.s32 1, %s1153_s26   ;;  %s1581_s13 = sld [smem:[#allocation21_spill]] }
 0x294   : > { %p24_p2 = scmp.ge.s32.totalorder %s27_s26, 4   ;;  %s1582_s21 = smov %s1137_s22 }
 0x295   : > { %s1583_s22 = smov %s1141_s23  ;;  %s1584_s23 = smov %s1374_s14 }
 0x296   : > { %s1585_s24 = smov %s1149_s25  ;;  %26 = sbr.rel (!%p24_p2) target bundleno = 15 (0xf), region = 127 }
 0x299   : > { %s1586_s25 = smov %s1581_s13 }
 0x29d   :  { %573 = vsyncpa [#allocation4], 1 }
 0x29e   :  { %575 = vsyncpa [#allocation4 + $0x1], 1 }
 0x29f   :  { %576 = vsyncpa [#allocation7], 1 }
 0x2a0   :  { %577 = vsyncpa [#allocation10], 1 }
 0x2a1   :  { %579 = vsyncpa [#allocation10 + $0x1], 1 }
 0x2a2   :  { %580 = vsyncpa [#allocation13], 1 }
 0x2a3   :  { %581 = vsyncpa [#allocation5], 1 }
 0x2a4   :  { %583 = vsyncpa [#allocation5 + $0x1], 1 }

// kernel: feedback_model_forward.16
= control target key start
LH: loop header
LB: loop body
LE: loop exit
PB: predicated region body
PF: predicated region fallthrough
CT: control target
= control target key end

     0   :  { %8 = vsyncpa [#allocation4], 0  ;;  %s1128_s0 = inlined_call_operand.hbm [shape: bf16[16,128], index: 0, kind: input, shape index: {}]   ;;  %s1129_s1 = inlined_call_operand.hbm [shape: bf16[128,128], index: 1, kind: input, shape index: {}]   ;;  %s1130_s2 = inlined_call_operand.hbm [shape: f32[1,128], index: 2, kind: input, shape index: {}]   ;;  %s1131_s3 = inlined_call_operand.hbm [shape: bf16[16,128], index: 3, kind: output, shape index: {}]  }
   0x1   :  { %10 = vsyncpa [#allocation4 + $0x1], 0 }
   0x2   :  { %11 = vsyncpa [#allocation7], 0 }
   0x3   :  { %12 = vsyncpa [#allocation5], 0 }
   0x4   :  { %14 = vsyncpa [#allocation5 + $0x1], 0  ;;  %s870_s12 = smov 0   ;;  %s872_s13 = smov 0  }
   0x5   :  { %s874_s14 = smov 0   ;;  %s876_s15 = smov 0  }
   0x6   :  { %s878_s16 = smov 0   ;;  %s880_s17 = smov 0  }
   0x7 LB: > { %s516_s18 = sadd.s32 4294967295, %s840_s17   ;;  %s517_s19 = sadd.s32 4294967294, %s840_s17   ;;  %s840_s17 = sphi %s880_s17, %s20_s17   ;;  %s836_s16 = sphi %s878_s16, %s1153_s16   ;;  %s832_s15 = sphi %s876_s15, %s1152_s15   ;;  %s828_s14 = sphi %s874_s14, %s1151_s14   ;;  %s824_s13 = sphi %s872_s13, %s1150_s13   ;;  %s820_s12 = sphi %s870_s12, %s1149_s12  }
   0x8   : > { %p61_p0 = scmp.ne.s32.totalorder %s824_s13, %s820_s12  ;;  %p904_p1 = scmp.eq.s32.totalorder %s516_s18, 0 }
   0x9   : > { %p908_p2 = scmp.eq.s32.totalorder %s516_s18, 1  ;;  %p147_p3 = scmp.eq.s32.totalorder %s517_s19, 1 }
   0xa   : > { %s1136_s20 = scalar_select %p904_p1, 1, 0 }
   0xb   : > { %p914_p4 = por %p904_p1, %p61_p0  ;;  %p518_p5 = scmp.ge.s32.totalorder %s840_s17, 1 }
   0xc   : > { %p919_p6 = por %p147_p3, %p61_p0  ;;  %p154_p7 = scmp.lt.s32.totalorder %s840_s17, 3 }
   0xd   : > { %s1138_s22 = scalar_select %p914_p4, 1, 0 }
   0xe   : > { %s1139_s23 = scalar_select %p919_p6, 1, 0 }
   0xf   : > { %p924_p8 = pnand %p518_p5, %p154_p7  ;;  %s842_s25 = smov [#allocation6]  }
  0x10   : > { %s170_s26 = sshll.u32 %s842_s25, 4  ;;  %s843_s28 = smov [#allocation8]   ;;  %s928_s26 = int_to_ptr.vmem [resolvable:$true] %s170_s26 }
  0x11   : > { %p583_p9 = pneg %p924_p8  ;;  %s186_s29 = sshll.u32 %s843_s28, 4  ;;  %s939_s29 = int_to_ptr.vmem [resolvable:$true] %s186_s29 }
  0x12   : > { %s668_s5 = scalar_lea.hbm %s1129_s1, 1024 }
  0x13   : > { %p935_p11 = pnand %p583_p9, %p904_p1  ;;  %p669_p12 = scmp.ne.s32.totalorder %s1129_s1, %s668_s5 }
  0x14   : > { %p675_p5 = scmp.lt.u32.totalorder %s668_s5, %s1129_s1 }
  0x15   : > { %p670_p13 = pneg %p935_p11 }
  0x17   : > { %p671_p0 = pnand %p670_p13, %p669_p12 }
  0x19   : > { %p672_p3 = pneg %p671_p0 }
  0x1b   : > { %p677_p7 = pnand %p675_p5, %p672_p3 }
  0x1d   : > { %680 = shalt.err (!%p677_p7)
}
  0x1e   : > { %s681_s10 = scalar_lea.vmem %s928_s26, 1024  ;;  %p689_p1 = scmp.lt.s32.totalorder %s928_s26, %s928_s26 }
  0x1f   : > { %p682_p9 = scmp.ne.s32.totalorder %s928_s26, %s681_s10  ;;  %p690_p12 = scmp.lt.s32.totalorder %s681_s10, %s681_s10 }
  0x21   : > { %p684_p10 = pnand %p682_p9, %p670_p13  ;;  %p691_p0 = por %p690_p12, %p689_p1 }
  0x23   : > { %p685_p6 = pneg %p684_p10 }
  0x25   : > { %p692_p4 = pnand %p691_p0, %p685_p6 }
  0x27   : > { %695 = shalt.err (!%p692_p4)
}
  0x28   : > { %s844_s11 = smov 64   ;;  %s845_s18 = smov 4  }
  0x29   : > { %586 = dma.hbm_to_vmem [thread:$0]  (!%p935_p11), %s1129_s1, 1024, %s928_s26, [#allocation7], %s844_s11, %s844_s11, %s845_s18  }
  0x2a   : > { %s696_s4 = scalar_lea.hbm %s1130_s2, 16 }
  0x2b   : > { %p697_p1 = scmp.ne.s32.totalorder %s1130_s2, %s696_s4  ;;  %p703_p10 = scmp.lt.u32.totalorder %s696_s4, %s1130_s2 }
  0x2d   : > { %p699_p4 = pnand %p697_p1, %p670_p13 }
  0x2f   : > { %p700_p6 = pneg %p699_p4 }
  0x31   : > { %p705_p3 = pnand %p703_p10, %p700_p6 }
  0x33   : > { %708 = shalt.err (!%p705_p3)
}
  0x34   : > { %s709_s26 = scalar_lea.vmem %s939_s29, 16  ;;  %s716_s9 = scalar_lea.vmem %s939_s29, 32 }
  0x35   : > { %p710_p5 = scmp.ne.s32.totalorder %s939_s29, %s709_s26  ;;  %p717_p12 = scmp.lt.s32.totalorder %s939_s29, %s939_s29 }
  0x36   : > { %p718_p0 = scmp.lt.s32.totalorder %s716_s9, %s709_s26 }
  0x37   : > { %p712_p7 = pnand %p710_p5, %p670_p13 }
  0x38   : > { %p719_p1 = por %p718_p0, %p717_p12 }
  0x39   : > { %p713_p9 = pneg %p712_p7 }
  0x3b   : > { %p720_p4 = pnand %p719_p1, %p713_p9 }
  0x3d   : > { %723 = shalt.err (!%p720_p4)
}
  0x3e   : > { %589 = dma.hbm_to_vmem [thread:$0]  (!%p935_p11), %s1130_s2, 16, %s939_s29, [#allocation7]  }
  0x3f   : > { %s39_s18 = sadd.s32 1, %s836_s16  ;;  %s48_s19 = sadd.s32 1, %s828_s14 }
  0x40   : > { %p41_p13 = scmp.ge.s32.totalorder %s39_s18, 2  ;;  %p55_p6 = scmp.ne.s32.totalorder %s828_s14, %s824_s13 }
  0x41   : > { %p56_p10 = scmp.eq.s32.totalorder %s840_s17, 0  ;;  %p600_p3 = scmp.lt.s32.totalorder %s840_s17, 2 }
  0x42   : > { %s1155_s18 = smov (%p41_p13, %s39_s18), 0  ;;  %p1004_p7 = por %p908_p2, %p55_p6 }
  0x43   : > { %p57_p5 = por %p56_p10, %p55_p6  ;;  %s43_s25 = ssub.s32 %s836_s16, %s1155_s18 }
  0x44   : > { %s1142_s27 = scalar_select %p1004_p7, 1, 0 }
  0x45   : > { %s197_s28 = sand.u32 1, %s828_s14   ;;  %p46_p9 = scmp.eq.s32.totalorder %s43_s25, 0 }
  0x46   : > { %s522_s29 = sshll.u32 %s197_s28, 2  ;;  %s523_s30 = sshll.u32 %s836_s16, 6 }
  0x47   : > { %s1013_s4 = scalar_select %p46_p9, %s828_s14, %s48_s19  }
  0x48   : > { %s1018_s7 = scalar_lea.hbm %s1128_s0, %s523_s30  ;;  %s201_s21 = scalar_lea.vmem [#allocation3], %s522_s29 }
  0x49   : > { %s209_s8 = sshll.u32 %s201_s21, 4  ;;  %p1022_p2 = pnand %p600_p3, %p57_p5  ;;  %s1026_s8 = int_to_ptr.vmem [resolvable:$true] %s209_s8 }
  0x4a   : > { %s198_s9 = scalar_lea.sflag [#allocation4], %s197_s28  ;;  %s724_s10 = scalar_lea.hbm %s1018_s7, 64 }
  0x4b   : > { %p725_p11 = scmp.ne.s32.totalorder %s1018_s7, %s724_s10  ;;  %p726_p12 = pneg %p1022_p2 }
  0x4c   : > { %s729_s25 = scalar_lea.hbm %s1128_s0, 128  ;;  %p730_p4 = scmp.lt.u32.totalorder %s1018_s7, %s1128_s0 }
  0x4d   : > { %p727_p0 = pnand %p726_p12, %p725_p11  ;;  %p731_p13 = scmp.lt.u32.totalorder %s729_s25, %s724_s10 }
  0x4e   : > { %p733_p10 = scmp.lt.u32.totalorder %s724_s10, %s1018_s7 }
  0x4f   : > { %p728_p1 = pneg %p727_p0  ;;  %p732_p6 = por %p731_p13, %p730_p4 }
  0x51   : > { %p734_p3 = por %p733_p10, %p732_p6 }
  0x53   : > { %p735_p5 = pnand %p734_p3, %p728_p1 }
  0x55   : > { %738 = shalt.err (!%p735_p5)
}
  0x56   : > { %s739_s28 = scalar_lea.vmem %s1026_s8, 64  ;;  %s846_s5 = smov [#allocation3]  }
  0x57   : > { %p740_p9 = scmp.ne.s32.totalorder %s1026_s8, %s739_s28  ;;  %s744_s6 = sshll.u32 %s846_s5, 4  ;;  %s745_s6 = int_to_ptr.vmem [resolvable:$false] %s744_s6 }
  0x58   : > { %s746_s21 = scalar_lea.vmem %s745_s6, 128  ;;  %p747_p7 = scmp.lt.s32.totalorder %s1026_s8, %s745_s6 }
  0x59   : > { %p742_p11 = pnand %p740_p9, %p726_p12  ;;  %p748_p4 = scmp.lt.s32.totalorder %s746_s21, %s739_s28 }
  0x5b   : > { %p743_p0 = pneg %p742_p11  ;;  %p749_p13 = por %p748_p4, %p747_p7 }
  0x5d   : > { %p750_p6 = pnand %p749_p13, %p743_p0 }
  0x5f   : > { %753 = shalt.err (!%p750_p6)
}
  0x60   : > { %593 = dma.hbm_to_vmem [thread:$0]  (!%p1022_p2), %s1018_s7, 64, %s1026_s8, %s198_s9  }
  0x61   : > { %218 = sbr.rel (%p924_p8) target bundleno = 398 (0x18e), region = 32  ;;  %s1056_s10 = sand.u32 (!%p924_p8), 1, %s824_s13  }
  0x62   : > { %s525_s11 = sshll.u32 (!%p924_p8), %s1056_s10, 2  ;;  %s221_s19 = scalar_lea.sflag (!%p924_p8), [#allocation4], %s1056_s10 }
  0x63   : > { %s1062_s25 = scalar_lea.vmem (!%p924_p8), [#allocation3], %s525_s11  ;;  %p1144_p7 = scmp.ne.s32.totalorder (!%p924_p8), %s1138_s22, 0 }
  0x68   : > { %807 = dma.done.wait (%p1144_p7), %s221_s19, 64  }
  0x69   : > { %809 = vsyncadd (%p1144_p7), %s221_s19, 4294967232  ;;  %p1145_p2 = scmp.ne.s32.totalorder %s1136_s20, 0 }
  0x6b   : > { %811 = dma.done.wait (%p1145_p2), [#allocation7], 1040  }
  0x6c   : > { %813 = vsyncadd (%p1145_p2), [#allocation7], 4294966256  ;;  %v847_v0 = vmov 0.0   ;;  %vm848_vm0 = vmmov 0   ;;  %v658_v1 = vld [vmem:[#allocation6] sm:$0xff]   ;;  %v659_v2 = vld [vmem:[#allocation6 + $0x8] sm:$0xff]  }
  0x6d   : > { %551 = vmatprep.subr.bf16.mxu0 %v847_v0  ;;  %567 = vmatprep.mubr.msk.bf16.mxu0 %vm848_vm0, %v847_v0  ;;  %v660_v3 = vld [vmem:[#allocation6 + $0x10] sm:$0xff]   ;;  %v661_v4 = vld [vmem:[#allocation6 + $0x18] sm:$0xff]   ;;  %v662_v5 = vld [vmem:[#allocation6 + $0x20] sm:$0xff]   ;;  %s539_s20 = sshll.u32 %s832_s15, 6  ;;  %s254_s22 = scalar_lea.vmem [#allocation9], %s525_s11 }
  0x6e   : > { %552 = vmatpush3.bf16.msra.mxu0 %v658_v1  ;;  %v663_v6 = vld [vmem:[#allocation6 + $0x28] sm:$0xff]   ;;  %v664_v7 = vld [vmem:[#allocation6 + $0x30] sm:$0xff]   ;;  %v665_v8 = vld [vmem:[#allocation6 + $0x38] sm:$0xff]   ;;  %s408_s24 = sshll.u32 %s254_s22, 4  ;;  %s1079_s26 = scalar_lea.hbm %s1131_s3, %s539_s20  ;;  %s1081_s24 = int_to_ptr.vmem [resolvable:$true] %s408_s24 }
  0x6f   : > { %553 = vmatprep.subr.bf16.mxu0 %v847_v0  ;;  %v263_v9 = vld [vmem:[%s1062_s25] sm:$0xf]  ;;  %v537_v10 = vld [vmem:[#allocation8] ss:$0 sm:$0xff]  ;;  %s394_s9 = scalar_lea.sflag [#allocation5], %s1056_s10  ;;  %s754_s29 = scalar_lea.vmem %s1081_s24, 64 }
  0x70   : > { %p755_p8 = scmp.ne.s32.totalorder %s1081_s24, %s754_s29  ;;  %p1146_p12 = scmp.ne.s32.totalorder %s1142_s27, 0 }
  0x71   : > { %s849_s15 = smov [#allocation9]  }
  0x72   : > { %554 = vmatpush3.bf16.msra.mxu0 %v659_v2  ;;  %p756_p1 = pnand %p755_p8, %p1146_p12  ;;  %s758_s30 = sshll.u32 %s849_s15, 4  ;;  %s759_s30 = int_to_ptr.vmem [resolvable:$false] %s758_s30 }
  0x73   : > { %555 = vmatprep.subr.bf16.mxu0 %v847_v0  ;;  %s760_s28 = scalar_lea.vmem %s759_s30, 128  ;;  %p761_p3 = scmp.lt.s32.totalorder %s1081_s24, %s759_s30 }
  0x74   : > { %p757_p10 = pneg %p756_p1  ;;  %p762_p5 = scmp.lt.s32.totalorder %s760_s28, %s754_s29 }
  0x76   : > { %556 = vmatpush3.bf16.msra.mxu0 %v660_v3  ;;  %p763_p9 = por %p762_p5, %p761_p3 }
  0x77   : > { %557 = vmatprep.subr.bf16.mxu0 %v847_v0 }
  0x78   : > { %p764_p11 = pnand %p763_p9, %p757_p10 }
  0x7a   : > { %558 = vmatpush3.bf16.msra.mxu0 %v661_v4 }
  0x7b   : > { %559 = vmatprep.subr.bf16.mxu0 %v847_v0 }
  0x7e   : > { %560 = vmatpush3.bf16.msra.mxu0 %v662_v5 }
  0x7f   : > { %561 = vmatprep.subr.bf16.mxu0 %v847_v0 }
  0x82   : > { %562 = vmatpush3.bf16.msra.mxu0 %v663_v6 }
  0x83   : > { %563 = vmatprep.subr.bf16.mxu0 %v847_v0 }
  0x86   : > { %564 = vmatpush3.bf16.msra.mxu0 %v664_v7 }
  0x87   : > { %565 = vmatprep.subr.bf16.mxu0 %v847_v0 }
  0x8a   : > { %566 = vmatpush3.bf16.msra.mxu0 %v665_v8 }
  0x8d   : > { %568 = vmatmul.mubr.bf16.vlgmr.msra.gmra.mrb[0].mxu0 %v263_v9 }
 0x160   : > { %v362_v11 = vpop.f32.mrb[0].mxu0 }
 0x161   : > { %v381_v12 = vadd.f32 %v537_v10, %v362_v11  ;;  %v569_v13 = vpop.f32.mrb[1].mxu0 }
 0x162   : > { %v365_v14 = vpop.f32.mrb[2].mxu0 }
 0x163   : > { %v382_v15 = vmul.f32 %v381_v12, %v381_v12  ;;  %v570_v16 = vpop.f32.mrb[3].mxu0 }
 0x165   : > { %v383_v17 = vmul.f32 %v382_v15, %v381_v12 }
 0x167   : > { %v384_v18 = vmul.f32 0.044715, %v383_v17 }
 0x169   : > { %v385_v19 = vadd.f32 %v384_v18, %v381_v12 }
 0x16b   : > { %v386_v20 = vmul.f32 0.7978846, %v385_v19 }
 0x16d   : > { %666 = vtanh.f32 %v386_v20 }
 0x177   : > { %v667_v21 = vpop.eup %666 }
 0x178   : > { %v388_v22 = vadd.f32 1.0, %v667_v21 }
 0x17a   : > { %v389_v23 = vmul.f32 0.5, %v388_v22 }
 0x17c   : > { %v390_v24 = vmul.f32 %v389_v23, %v381_v12 }
 0x17e   : > { %v391_v25 = vpack.c.bf16 %v390_v24, %v390_v24 }
 0x180   : > { %392 = vst [vmem:[%s254_s22] sm:$0xf] %v391_v25 }
 0x181   : > { %767 = shalt.err (!%p764_p11)
}
 0x182   : > { %s768_s5 = scalar_lea.hbm %s1079_s26, 64  ;;  %s772_s10 = scalar_lea.hbm %s1131_s3, 128 }
 0x183   : > { %p769_p0 = scmp.ne.s32.totalorder %s1079_s26, %s768_s5  ;;  %p773_p6 = scmp.lt.u32.totalorder %s1079_s26, %s1131_s3 }
 0x184   : > { %p774_p7 = scmp.lt.u32.totalorder %s772_s10, %s768_s5  ;;  %p776_p8 = scmp.lt.u32.totalorder %s768_s5, %s1079_s26 }
 0x185   : > { %p770_p4 = pnand %p769_p0, %p1146_p12 }
 0x186   : > { %p775_p2 = por %p774_p7, %p773_p6 }
 0x187   : > { %p771_p13 = pneg %p770_p4 }
 0x188   : > { %p777_p1 = por %p776_p8, %p775_p2 }
 0x18a   : > { %p778_p10 = pnand %p777_p1, %p771_p13 }
 0x18c   : > { %781 = shalt.err (!%p778_p10)
}
 0x18d   : > { %581 = dma.vmem_to_hbm [thread:$0]  (%p1146_p12), %s1081_s24, 64, %s1079_s26, %s394_s9  }
 0x18e PF: > { %s420_s25 = sand.u32 1, %s820_s12   ;;  %p1147_p3 = scmp.ne.s32.totalorder %s1139_s23, 0 }
 0x18f   : > { %p1148_p5 = scmp.ge.s32.totalorder %s840_s17, 2  ;;  %s421_s20 = scalar_lea.sflag [#allocation5], %s420_s25 }
 0x191   : > { %p595_p9 = pnand %p1148_p5, %p1147_p3 }
 0x193   : > { %815 = dma.done.wait (!%p595_p9), %s421_s20, 64  }
 0x194   : > { %817 = vsyncadd (!%p595_p9), %s421_s20, 4294967232  ;;  %s20_s17 = sadd.s32 1, %s840_s17   ;;  %s1149_s12 = smov %s824_s13 }
 0x195   : > { %p17_p11 = scmp.ge.s32.totalorder %s20_s17, 4   ;;  %s1150_s13 = smov %s828_s14 }
 0x196   : > { %s1151_s14 = smov %s1013_s4  ;;  %s1152_s15 = smov %s836_s16 }
 0x197   : > { %s1153_s16 = smov %s1155_s18  ;;  %19 = sbr.rel (!%p17_p11) target bundleno = 7 (0x7), region = 95 }
 0x19e   :  { %426 = vsyncpa [#allocation4], 1 }
 0x19f   :  { %428 = vsyncpa [#allocation4 + $0x1], 1 }
 0x1a0   :  { %429 = vsyncpa [#allocation7], 1 }
 0x1a1   :  { %430 = vsyncpa [#allocation5], 1 }
 0x1a2   :  { %432 = vsyncpa [#allocation5 + $0x1], 1 }

// kernel: feedback_model_forward.14
= control target key start
LH: loop header
LB: loop body
LE: loop exit
PB: predicated region body
PF: predicated region fallthrough
CT: control target
= control target key end

     0   :  { %s1596_s0 = inlined_call_operand.hbm [shape: bf16[2,2,8,16], index: 0, kind: input, shape index: {}]   ;;  %s1597_s1 = inlined_call_operand.hbm [shape: bf16[2,2,8,16], index: 1, kind: input, shape index: {}]   ;;  %s1598_s2 = inlined_call_operand.hbm [shape: bf16[2,2,8,16], index: 2, kind: input, shape index: {}]   ;;  %s1599_s3 = inlined_call_operand.hbm [shape: f32[2,1,8], index: 3, kind: input, shape index: {}]   ;;  %s1600_s4 = inlined_call_operand.hbm [shape: bf16[2,8,32], index: 4, kind: output, shape index: {}]  }
   0x1   :  { %1613 = sst [smem:[#allocation23_spill]] %s1597_s1 }
   0x2   :  { %9 = vsyncpa [#allocation6], 0 }
   0x3   :  { %11 = vsyncpa [#allocation6 + $0x1], 0 }
   0x4   :  { %12 = vsyncpa [#allocation9], 0 }
   0x5   :  { %14 = vsyncpa [#allocation9 + $0x1], 0 }
   0x6   :  { %15 = vsyncpa [#allocation12], 0 }
   0x7   :  { %17 = vsyncpa [#allocation12 + $0x1], 0 }
   0x8   :  { %18 = vsyncpa [#allocation7], 0 }
   0x9   :  { %20 = vsyncpa [#allocation7 + $0x1], 0  ;;  %s1251_s15 = smov 0   ;;  %s1253_s16 = smov 0  }
   0xa   :  { %s1255_s17 = smov 0   ;;  %s1257_s18 = smov 0  }
   0xb   :  { %s1259_s19 = smov 0   ;;  %s1261_s20 = smov 0  }
   0xc LB: > { %1614 = sst [smem:[#allocation18_spill]] %s1200_s17  ;;  %s1282_s21 = sadd.s32 4294967295, %s1212_s20   ;;  %s1212_s20 = sphi %s1261_s20, %s26_s20   ;;  %s1208_s19 = sphi %s1259_s19, %s1645_s19   ;;  %s1204_s18 = sphi %s1257_s18, %s1644_s18   ;;  %s1200_s17 = sphi %s1255_s17, %s1640_s17   ;;  %s1196_s16 = sphi %s1253_s16, %s1643_s16   ;;  %s1192_s15 = sphi %s1251_s15, %s1642_s15  }
   0xd   : > { %1615 = sst [smem:[#allocation19_spill]] %s1212_s20  ;;  %s842_s22 = sadd.s32 4294967294, %s1212_s20  }
   0xe   : > { %s45_s23 = sadd.s32 1, %s1208_s19  ;;  %s54_s24 = sadd.s32 1, %s1200_s17 }
   0xf   : > { %p47_p0 = scmp.ge.s32.totalorder %s45_s23, 2  ;;  %p61_p1 = scmp.ne.s32.totalorder %s1200_s17, %s1196_s16 }
  0x10   : > { %p62_p2 = scmp.eq.s32.totalorder %s1212_s20, 0  ;;  %p67_p3 = scmp.ne.s32.totalorder %s1196_s16, %s1192_s15 }
  0x11   : > { %s1647_s23 = smov (%p47_p0, %s45_s23), 0  ;;  %p68_p5 = scmp.eq.s32.totalorder %s1282_s21, 0 }
  0x12   : > { %1616 = sst [smem:[#allocation20_spill]] %s1647_s23  ;;  %p1294_p4 = por %p62_p2, %p61_p1 }
  0x13   : > { %s49_s26 = ssub.s32 %s1208_s19, %s1647_s23  ;;  %p177_p6 = scmp.eq.s32.totalorder %s1282_s21, 1 }
  0x14   : > { %p52_p7 = scmp.eq.s32.totalorder %s49_s26, 0  ;;  %p1302_p8 = por %p68_p5, %p67_p3 }
  0x15   : > { %p1306_p9 = por %p177_p6, %p61_p1  ;;  %p183_p10 = scmp.eq.s32.totalorder %s842_s22, 1 }
  0x16   : > { %s1618_s27 = scalar_select %p1302_p8, 1, 0 }
  0x17   : > { %s1619_s28 = scalar_select %p1306_p9, 1, 0 }
  0x18   : > { %s1311_s29 = scalar_select %p52_p7, %s1200_s17, %s54_s24  }
  0x19   : > { %p1313_p11 = por %p183_p10, %p67_p3  ;;  %p931_p13 = scmp.lt.s32.totalorder %s1212_s20, 2 }
  0x1a   : > { %1620 = sst [smem:[#allocation21_spill]] %s1311_s29  ;;  %s1320_s5 = sand.u32 1, %s1200_s17  }
  0x1b   : > { %s1621_s30 = scalar_select %p1313_p11, 1, 0 }
  0x1c   : > { %s1323_s6 = sshll.u32 %s1320_s5, 3  ;;  %s1326_s7 = sshll.u32 %s1208_s19, 7 }
  0x1d   : > { %1622 = sst [smem:[#allocation22_spill]] %s1621_s30  ;;  %p1330_p0 = pnand %p931_p13, %p1294_p4 }
  0x1e   : > { %s225_s9 = sand.u32 1, %s1212_s20   ;;  %s1624_s1 = sld [smem:[#allocation23_spill]] }
  0x1f   : > { %s1623_s8 = scalar_select %p1330_p0, 1, 0 }
  0x20   : > { %s229_s13 = scalar_lea.vmem [#allocation8], %s1323_s6  ;;  %s1346_s22 = scalar_lea.sflag [#allocation9], %s225_s9 }
  0x21   : > { %s237_s14 = sshll.u32 %s229_s13, 4  ;;  %p1352_p4 = pneg %p1330_p0  ;;  %s1343_s14 = int_to_ptr.vmem [resolvable:$true] %s237_s14 }
  0x24   : > { %s1339_s12 = scalar_lea.hbm %s1624_s1, %s1326_s7  ;;  %s1007_s11 = scalar_lea.hbm %s1624_s1, 256 }
  0x25   : > { %s1002_s24 = scalar_lea.hbm %s1339_s12, 128  ;;  %p1008_p7 = scmp.lt.u32.totalorder %s1339_s12, %s1624_s1 }
  0x26   : > { %p1003_p3 = scmp.ne.s32.totalorder %s1339_s12, %s1002_s24  ;;  %p1009_p10 = scmp.lt.u32.totalorder %s1007_s11, %s1002_s24 }
  0x27   : > { %p1011_p12 = scmp.lt.u32.totalorder %s1002_s24, %s1339_s12 }
  0x28   : > { %p1005_p5 = pnand %p1352_p4, %p1003_p3  ;;  %p1010_p13 = por %p1009_p10, %p1008_p7 }
  0x2a   : > { %p1006_p6 = pneg %p1005_p5  ;;  %p1012_p1 = por %p1011_p12, %p1010_p13 }
  0x2c   : > { %p1013_p2 = pnand %p1012_p1, %p1006_p6 }
  0x2e   : > { %1016 = shalt.err (!%p1013_p2)
}
  0x2f   : > { %s1017_s9 = scalar_lea.vmem %s1343_s14, 128  ;;  %s1214_s26 = smov [#allocation8]  }
  0x30   : > { %p1018_p3 = scmp.ne.s32.totalorder %s1343_s14, %s1017_s9  ;;  %s1022_s10 = sshll.u32 %s1214_s26, 4  ;;  %s1023_s10 = int_to_ptr.vmem [resolvable:$false] %s1022_s10 }
  0x31   : > { %s1024_s23 = scalar_lea.vmem %s1023_s10, 256  ;;  %p1025_p9 = scmp.lt.s32.totalorder %s1343_s14, %s1023_s10 }
  0x32   : > { %p1020_p5 = pnand %p1018_p3, %p1352_p4  ;;  %p1026_p8 = scmp.lt.s32.totalorder %s1024_s23, %s1017_s9 }
  0x34   : > { %p1021_p11 = pneg %p1020_p5  ;;  %p1027_p7 = por %p1026_p8, %p1025_p9 }
  0x36   : > { %p1028_p10 = pnand %p1027_p7, %p1021_p11 }
  0x38   : > { %1031 = shalt.err (!%p1028_p10)
}
  0x39   : > { %s1604_s24 = smov 64   ;;  %s1606_s11 = smov 4  }
  0x3a   : > { %920 = dma.hbm_to_vmem [thread:$0]  (!%p1330_p0), %s1339_s12, 128, %s1343_s14, %s1346_s22, %s1604_s24, %s1604_s24, %s1606_s11  }
  0x3b   : > { %p1626_p8 = scmp.lt.s32.totalorder %s1212_s20, 3  ;;  %p1627_p9 = scmp.ge.s32.totalorder %s1212_s20, 1 }
  0x3c   : > { %s1391_s10 = scalar_lea.hbm %s1596_s0, %s1326_s7  ;;  %s207_s23 = scalar_lea.vmem [#allocation5], %s1323_s6 }
  0x3d   : > { %p1383_p11 = pnand %p1627_p9, %p1626_p8  ;;  %s215_s1 = sshll.u32 %s207_s23, 4  ;;  %s1394_s1 = int_to_ptr.vmem [resolvable:$true] %s215_s1 }
  0x3e   : > { %s1400_s24 = scalar_lea.hbm %s1598_s2, %s1326_s7  ;;  %s204_s11 = scalar_lea.sflag [#allocation6], %s1320_s5 }
  0x3f   : > { %s1628_s13 = scalar_select %p1383_p11, 1, 0 }
  0x40   : > { %s1032_s29 = scalar_lea.hbm %s1391_s10, 128  ;;  %s1037_s17 = scalar_lea.hbm %s1596_s0, 256 }
  0x41   : > { %p1033_p12 = scmp.ne.s32.totalorder %s1391_s10, %s1032_s29  ;;  %p1038_p6 = scmp.lt.u32.totalorder %s1391_s10, %s1596_s0 }
  0x42   : > { %p1039_p13 = scmp.lt.u32.totalorder %s1037_s17, %s1032_s29  ;;  %p1041_p5 = scmp.lt.u32.totalorder %s1032_s29, %s1391_s10 }
  0x43   : > { %p1035_p1 = pnand %p1033_p12, %p1352_p4 }
  0x44   : > { %p1040_p3 = por %p1039_p13, %p1038_p6 }
  0x45   : > { %p1036_p2 = pneg %p1035_p1 }
  0x46   : > { %p1042_p7 = por %p1041_p5, %p1040_p3 }
  0x48   : > { %p1043_p10 = pnand %p1042_p7, %p1036_p2 }
  0x4a   : > { %1046 = shalt.err (!%p1043_p10)
}
  0x4b   : > { %s1047_s7 = scalar_lea.vmem %s1394_s1, 128  ;;  %s1217_s23 = smov [#allocation5]  }
  0x4c   : > { %p1048_p8 = scmp.ne.s32.totalorder %s1394_s1, %s1047_s7  ;;  %s1052_s12 = sshll.u32 %s1217_s23, 4  ;;  %s1053_s12 = int_to_ptr.vmem [resolvable:$false] %s1052_s12 }
  0x4d   : > { %s1054_s20 = scalar_lea.vmem %s1053_s12, 256  ;;  %p1055_p1 = scmp.lt.s32.totalorder %s1394_s1, %s1053_s12 }
  0x4e   : > { %p1050_p9 = pnand %p1048_p8, %p1352_p4  ;;  %p1056_p11 = scmp.lt.s32.totalorder %s1054_s20, %s1047_s7 }
  0x50   : > { %p1051_p12 = pneg %p1050_p9  ;;  %p1057_p6 = por %p1056_p11, %p1055_p1 }
  0x52   : > { %p1058_p13 = pnand %p1057_p6, %p1051_p12 }
  0x54   : > { %1061 = shalt.err (!%p1058_p13)
}
  0x55   : > { %s1629_s17 = smov 4   ;;  %s1630_s29 = smov 64  }
  0x56   : > { %917 = dma.hbm_to_vmem [thread:$0]  (!%p1330_p0), %s1391_s10, 128, %s1394_s1, %s204_s11, %s1630_s29, %s1630_s29, %s1629_s17  }
  0x57   : > { %s251_s30 = scalar_lea.vmem [#allocation10], %s1323_s6  ;;  %s1062_s9 = scalar_lea.hbm %s1400_s24, 128 }
  0x58   : > { %s259_s14 = sshll.u32 %s251_s30, 4  ;;  %p1063_p11 = scmp.ne.s32.totalorder %s1400_s24, %s1062_s9  ;;  %s1430_s14 = int_to_ptr.vmem [resolvable:$true] %s259_s14 }
  0x59   : > { %s1067_s23 = scalar_lea.hbm %s1598_s2, 256  ;;  %p1068_p5 = scmp.lt.u32.totalorder %s1400_s24, %s1598_s2 }
  0x5a   : > { %p1065_p2 = pnand %p1063_p11, %p1352_p4  ;;  %p1069_p7 = scmp.lt.u32.totalorder %s1067_s23, %s1062_s9 }
  0x5b   : > { %p1071_p8 = scmp.lt.u32.totalorder %s1062_s9, %s1400_s24 }
  0x5c   : > { %p1066_p3 = pneg %p1065_p2  ;;  %p1070_p10 = por %p1069_p7, %p1068_p5 }
  0x5e   : > { %p1072_p9 = por %p1071_p8, %p1070_p10 }
  0x60   : > { %p1073_p12 = pnand %p1072_p9, %p1066_p3 }
  0x62   : > { %1076 = shalt.err (!%p1073_p12)
}
  0x63   : > { %s1077_s1 = scalar_lea.vmem %s1430_s14, 128  ;;  %s1218_s6 = smov [#allocation10]  }
  0x64   : > { %p1078_p1 = scmp.ne.s32.totalorder %s1430_s14, %s1077_s1  ;;  %s1082_s11 = sshll.u32 %s1218_s6, 4  ;;  %s1083_s11 = int_to_ptr.vmem [resolvable:$false] %s1082_s11 }
  0x65   : > { %s1084_s10 = scalar_lea.vmem %s1083_s11, 256  ;;  %p1085_p11 = scmp.lt.s32.totalorder %s1430_s14, %s1083_s11 }
  0x66   : > { %p1080_p6 = pnand %p1078_p1, %p1352_p4  ;;  %p1086_p2 = scmp.lt.s32.totalorder %s1084_s10, %s1077_s1 }
  0x68   : > { %p1081_p13 = pneg %p1080_p6  ;;  %p1087_p5 = por %p1086_p2, %p1085_p11 }
  0x6a   : > { %p1088_p7 = pnand %p1087_p5, %p1081_p13 }
  0x6c   : > { %1091 = shalt.err (!%p1088_p7)
}
  0x6d   : > { %923 = dma.hbm_to_vmem [thread:$0]  (!%p1330_p0), %s1400_s24, 128, %s1430_s14, %s1346_s22, %s1630_s29, %s1630_s29, %s1629_s17  }
  0x6e   : > { %s854_s30 = sshll.u32 %s1208_s19, 4  ;;  %s272_s9 = scalar_lea.vmem [#allocation11], %s1320_s5 }
  0x6f   : > { %s280_s26 = sshll.u32 %s272_s9, 4  ;;  %s1462_s12 = scalar_lea.hbm %s1599_s3, %s854_s30  ;;  %s281_s26 = int_to_ptr.vmem [resolvable:$true] %s280_s26 }
  0x70   : > { %s270_s20 = scalar_lea.sflag [#allocation12], %s1320_s5  ;;  %s1092_s1 = scalar_lea.hbm %s1462_s12, 16 }
  0x71   : > { %p1093_p3 = scmp.ne.s32.totalorder %s1462_s12, %s1092_s1  ;;  %s1097_s17 = scalar_lea.hbm %s1599_s3, 32 }
  0x72   : > { %p1098_p9 = scmp.lt.u32.totalorder %s1462_s12, %s1599_s3  ;;  %p1099_p12 = scmp.lt.u32.totalorder %s1097_s17, %s1092_s1 }
  0x73   : > { %p1095_p10 = pnand %p1093_p3, %p1352_p4  ;;  %p1101_p6 = scmp.lt.u32.totalorder %s1092_s1, %s1462_s12 }
  0x74   : > { %p1100_p1 = por %p1099_p12, %p1098_p9 }
  0x75   : > { %p1096_p8 = pneg %p1095_p10 }
  0x76   : > { %p1102_p13 = por %p1101_p6, %p1100_p1 }
  0x78   : > { %p1103_p11 = pnand %p1102_p13, %p1096_p8 }
  0x7a   : > { %1106 = shalt.err (!%p1103_p11)
}
  0x7b   : > { %s1107_s5 = scalar_lea.vmem %s281_s26, 16  ;;  %s1219_s6 = smov [#allocation11]  }
  0x7c   : > { %p1108_p2 = scmp.ne.s32.totalorder %s281_s26, %s1107_s5  ;;  %s1112_s11 = sshll.u32 %s1219_s6, 4  ;;  %s1113_s11 = int_to_ptr.vmem [resolvable:$false] %s1112_s11 }
  0x7d   : > { %s1114_s10 = scalar_lea.vmem %s1113_s11, 32  ;;  %p1115_p3 = scmp.lt.s32.totalorder %s281_s26, %s1113_s11 }
  0x7e   : > { %p1110_p5 = pnand %p1108_p2, %p1352_p4  ;;  %p1116_p10 = scmp.lt.s32.totalorder %s1114_s10, %s1107_s5 }
  0x80   : > { %p1111_p7 = pneg %p1110_p5  ;;  %p1117_p0 = por %p1116_p10, %p1115_p3 }
  0x82   : > { %p1118_p9 = pnand %p1117_p0, %p1111_p7 }
  0x84   : > { %1121 = shalt.err (!%p1118_p9)
}
  0x85   : > { %p1631_p12 = scmp.ne.s32.totalorder %s1623_s8, 0  ;;  %p1632_p8 = scmp.ne.s32.totalorder %s1628_s13, 0 }
  0x86   : > { %s1485_s25 = sand.u32 (!%p1632_p8), 1, %s1196_s16   ;;  %p1633_p0 = scmp.ne.s32.totalorder (!%p1632_p8), %s1618_s27, 0 }
  0x87   : > { %926 = dma.hbm_to_vmem [thread:$0]  (!%p1631_p12), %s1462_s12, 16, %s281_s26, %s270_s20  }
  0x88   : > { %289 = sbr.rel (%p1632_p8) target bundleno = 1088 (0x440), region = 36  ;;  %s1488_s30 = sshll.u32 (!%p1632_p8), %s1485_s25, 3 }
  0x89   : > { %s292_s9 = scalar_lea.sflag (!%p1632_p8), [#allocation6], %s1485_s25  ;;  %s295_s7 = scalar_lea.vmem (!%p1632_p8), [#allocation5], %s1488_s30 }
  0x8f   : > { %1175 = dma.done.wait (%p1633_p0), %s292_s9, 128  }
  0x90   : > { %1177 = vsyncadd (%p1633_p0), %s292_s9, 4294967168  ;;  %s300_s8 = sand.u32 1, %s1282_s21   ;;  %s304_s26 = scalar_lea.vmem [#allocation8], %s1488_s30 }
  0x91   : > { %s301_s13 = scalar_lea.sflag [#allocation9], %s300_s8 }
  0x92   : > { %1179 = dma.done.wait (%p1633_p0), %s301_s13, 256  }
  0x93   : > { %1181 = vsyncadd (%p1633_p0), %s301_s13, 4294967040  ;;  %s313_s23 = scalar_lea.vmem [#allocation10], %s1488_s30  ;;  %s319_s12 = scalar_lea.sflag [#allocation12], %s1485_s25 }
  0x94   : > { %s321_s20 = scalar_lea.vmem [#allocation11], %s1485_s25 }
  0x95   : > { %1183 = dma.done.wait (%p1633_p0), %s319_s12, 16  }
  0x96   : > { %1185 = vsyncadd (%p1633_p0), %s319_s12, 4294967280  ;;  %vm371_vm0 = vcmask 130048   ;;  %v1220_v0 = vmov 0.0   ;;  %vm1221_vm1 = vmmov 0   ;;  %v379_v1 = vld [vmem:[%s304_s26 + $0x4] sm:$0xf] }
  0x97   : > { %886 = vmatprep.subr.bf16.mxu1 %v1220_v0  ;;  %372 = vst.msk [vmem:[#allocation4] sm:$0xff] %vm371_vm0, %v1220_v0  ;;  %373 = vst.msk [vmem:[#allocation4 + $0x8] sm:$0xff] %vm371_vm0, %v1220_v0  ;;  %880 = vmatprep.subr.bf16.mxu0 %v1220_v0  ;;  %v378_v2 = vld [vmem:[%s304_s26] sm:$0xf]  ;;  %v438_v3 = vsel %vm371_vm0, %v379_v1, 0  ;;  %vm366_vm2 = vcmask 7168  }
  0x98   : > { %888 = vmatprep.mubr.msk.bf16.mxu1 %vm1221_vm1, %v1220_v0  ;;  %882 = vmatprep.mubr.msk.bf16.mxu0 %vm1221_vm1, %v1220_v0  ;;  %v392_v4 = vsel %vm371_vm0, %v378_v2, 0  ;;  %v375_v5 = vld [vmem:[%s295_s7 + $0x4] sm:$0xf]  ;;  %v374_v6 = vld [vmem:[%s295_s7] sm:$0xf]  ;;  %369 = vst.msk [vmem:[#allocation3] sm:$0xff] %vm366_vm2, %v1220_v0 }
  0x99   : > { %887 = vmatpush3.bf16.xpose.msra.mxu1 %v438_v3  ;;  %881 = vmatpush3.bf16.xpose.msra.mxu0 %v392_v4  ;;  %v377_v7 = vmul.bf16 1048592000, %v375_v5  ;;  %v376_v8 = vmul.bf16 1048592000, %v374_v6  ;;  %v1222_v9 = vmov -1e+30  }
  0x9a   : > { %898 = vmatprep.subr.bf16.mxu1 %v1220_v0  ;;  %892 = vmatprep.subr.bf16.mxu0 %v1220_v0  ;;  %368 = vst.msk [vmem:[#allocation2 + $0x8] sm:$0xff] %vm366_vm2, %v1222_v9  ;;  %367 = vst.msk [vmem:[#allocation2] sm:$0xff] %vm366_vm2, %v1222_v9  ;;  %v860_v10 = vld [vmem:[%s321_s20] ss:$0 sm:$0xff]  ;;  %vm482_vm3 = vcmask 64512   ;;  %v1223_v23 = vmov 0  }
  0x9b   : > { %370 = vst.msk [vmem:[#allocation3 + $0x8] sm:$0xff] %vm366_vm2, %v1220_v0  ;;  %988 = vset.pattern.permute.xlu1 %v1223_v23  ;;  %989 = vset.pattern.permute.xlu0 %v1223_v23  ;;  %v545_v32 = vld [vmem:[%s313_s23 + $0x4] sm:$0xf]  ;;  %vm549_vm4 = vcmask 1043456   ;;  %v544_v34 = vld [vmem:[%s313_s23] sm:$0xf] }
  0x9c   : > { %v597_v33 = vsel %vm549_vm4, %v545_v32, 0  ;;  %v551_v35 = vsel %vm549_vm4, %v544_v34, 0  ;;  %s1224_s21 = smov 16   ;;  %s859_s27 = sshll.u32 %s1485_s25, 2  ;;  %vm672_vm5 = vcmask 257024  }
  0x9d   : > { %s866_s1 = sshll.u32 %s1204_s18, 6  ;;  %s359_s22 = scalar_lea.vmem [#allocation13], %s859_s27 }
  0x9e   : > { %v529_v1 = vld [vmem:[#allocation4 + $0x8] sm:$0xff]  ;;  %v528_v3 = vld [vmem:[#allocation4] sm:$0xff]  ;;  %s689_s24 = sshll.u32 %s359_s22, 4  ;;  %s1547_s14 = scalar_lea.hbm %s1600_s4, %s866_s1  ;;  %s1549_s24 = int_to_ptr.vmem [resolvable:$true] %s689_s24 }
  0x9f   : > { %v513_v55 = vld [vmem:[#allocation3] sm:$0xff]  ;;  %s675_s5 = scalar_lea.sflag [#allocation7], %s1485_s25  ;;  %s1122_s18 = scalar_lea.vmem %s1549_s24, 64 }
  0xa0   : > { %889 = vmatmul.mubr.msk.bf16.vlgmr.msra.gmra.mrb[0].mxu1 %vm371_vm0, %v377_v7  ;;  %883 = vmatmul.mubr.msk.bf16.vlgmr.msra.gmra.mrb[0].mxu0 %vm371_vm0, %v376_v8  ;;  %p1123_p4 = scmp.ne.s32.totalorder %s1549_s24, %s1122_s18  ;;  %p1634_p1 = scmp.ne.s32.totalorder %s1619_s28, 0 }
  0xa1   : > { %900 = vmatprep.mubr.msk.bf16.mxu1 %vm1221_vm1, %v1220_v0  ;;  %894 = vmatprep.mubr.msk.bf16.mxu0 %vm1221_vm1, %v1220_v0  ;;  %v481_v24 = vld [vmem:[#allocation2 + $0x8] sm:$0xff]  ;;  %v480_v27 = vld [vmem:[#allocation2] sm:$0xff]  ;;  %s1225_s6 = smov [#allocation13]  }
  0xa2   : > { %899 = vmatpush3.bf16.msra.mxu1 %v597_v33  ;;  %893 = vmatpush3.bf16.msra.mxu0 %v551_v35  ;;  %v514_v52 = vld [vmem:[#allocation3 + $0x8] sm:$0xff]  ;;  %p1124_p6 = pnand %p1123_p4, %p1634_p1  ;;  %s1126_s11 = sshll.u32 %s1225_s6, 4  ;;  %s1127_s11 = int_to_ptr.vmem [resolvable:$false] %s1126_s11 }
  0xa3   : > { %s1128_s10 = scalar_lea.vmem %s1127_s11, 128  ;;  %p1129_p11 = scmp.lt.s32.totalorder %s1549_s24, %s1127_s11 }
  0xa4   : > { %p1125_p13 = pneg %p1124_p6  ;;  %p1130_p2 = scmp.lt.s32.totalorder %s1128_s10, %s1122_s18 }
  0xa6   : > { %p1131_p5 = por %p1130_p2, %p1129_p11 }
  0xa8   : > { %p1132_p7 = pnand %p1131_p5, %p1125_p13 }
 0x173   : > { %v474_v11 = vpop.f32.mrb[0].mxu1  ;;  %v428_v12 = vpop.f32.mrb[0].mxu0 }
 0x174   : > { %v475_v13 = vadd.f32 %v860_v10, %v474_v11  ;;  %v890_v14 = vpop.f32.mrb[1].mxu1  ;;  %v429_v15 = vadd.f32 %v860_v10, %v428_v12  ;;  %v884_v16 = vpop.f32.mrb[1].mxu0 }
 0x175   : > { %v477_v17 = vpop.f32.mrb[2].mxu1  ;;  %v431_v18 = vpop.f32.mrb[2].mxu0 }
 0x176   : > { %v891_v19 = vpop.f32.mrb[3].mxu1  ;;  %v486_v20 = vsel %vm482_vm3, %v475_v13, -inf  ;;  %v885_v21 = vpop.f32.mrb[3].mxu0  ;;  %v483_v22 = vsel %vm482_vm3, %v429_v15, -inf }
 0x177   : > { %487 = vmax.xlane.f32.xlu0 %v486_v20 }
 0x17b   : > { %484 = vmax.xlane.f32.xlu0 %v483_v22 }
 0x204   : > { %v488_v25 = vpop.xlane.xlu0 %487 }
 0x205   : > { %v490_v26 = vmax.f32 %v481_v24, %v488_v25 }
 0x207   : > { %v492_v28 = vsub.f32 %v481_v24, %v490_v26  ;;  %644 = vst.msk [vmem:[#allocation2 + $0x8] sm:$0xff] %vm366_vm2, %v490_v26  ;;  %504 = vperm.xlu1 %988, %v490_v26  }
 0x208   : > { %v485_v29 = vpop.xlane.xlu0 %484 }
 0x209   : > { %v489_v30 = vmax.f32 %v480_v27, %v485_v29  ;;  %v495_v48 = vmul.f32 1.442695, %v492_v28 }
 0x20b   : > { %v491_v31 = vsub.f32 %v480_v27, %v489_v30  ;;  %643 = vst.msk [vmem:[#allocation2] sm:$0xff] %vm366_vm2, %v489_v30  ;;  %499 = vperm.xlu1 %988, %v489_v30  }
 0x20d   : > { %v493_v49 = vmul.f32 1.442695, %v491_v31 }
 0x286   : > { %v505_v36 = vpop.permute.xlu1 %504 }
 0x287   : > { %v508_v37 = vsub.f32 %v475_v13, %v505_v36 }
 0x289   : > { %v511_v38 = vmul.f32 1.442695, %v508_v37 }
 0x28a   : > { %v500_v39 = vpop.permute.xlu1 %499 }
 0x28b   : > { %990 = vpow2.f32 %v511_v38  ;;  %v507_v40 = vsub.f32 %v429_v15, %v500_v39 }
 0x28d   : > { %v509_v41 = vmul.f32 1.442695, %v507_v40 }
 0x28f   : > { %992 = vpow2.f32 %v509_v41 }
 0x290   : > { %994 = vpow2.f32 %v495_v48 }
 0x291   : > { %996 = vpow2.f32 %v493_v49 }
 0x295   : > { %v991_v42 = vpop.eup %990 }
 0x296   : > { %v520_v43 = vsel %vm482_vm3, %v991_v42, 0.0  ;;  %v543_v44 = vpack.c.bf16 %v991_v42, %v991_v42 }
 0x297   : > { %521 = vadd.xlane.f32.xlu0 %v520_v43 }
 0x298   : > { %901 = vmatmul.mubr.msk.bf16.vlgmr.msra.gmra.mrb[4].mxu1 %vm482_vm3, %v543_v44 }
 0x299   : > { %v993_v45 = vpop.eup %992 }
 0x29a   : > { %v517_v46 = vsel %vm482_vm3, %v993_v45, 0.0  ;;  %v542_v47 = vpack.c.bf16 %v993_v45, %v993_v45  ;;  %v995_v50 = vpop.eup %994 }
 0x29b   : > { %518 = vadd.xlane.f32.xlu1 %v517_v46  ;;  %v997_v51 = vpop.eup %996  ;;  %v516_v53 = vmul.f32 %v995_v50, %v514_v52 }
 0x29c   : > { %895 = vmatmul.mubr.msk.bf16.vlgmr.msra.gmra.mrb[4].mxu0 %vm482_vm3, %v542_v47  ;;  %v515_v57 = vmul.f32 %v997_v51, %v513_v55 }
 0x2ad   : > { %537 = vperm.xlu0 %989, %v995_v50  }
 0x2b1   : > { %532 = vperm.xlu0 %989, %v997_v51  }
 0x324   : > { %v522_v54 = vpop.xlane.xlu0 %521 }
 0x325   : > { %v524_v56 = vadd.f32 %v522_v54, %v516_v53 }
 0x327   : > { %527 = vst.msk [vmem:[#allocation3 + $0x8] sm:$0xff] %vm366_vm2, %v524_v56 }
 0x328   : > { %v519_v58 = vpop.xlane.xlu1 %518 }
 0x329   : > { %v523_v59 = vadd.f32 %v519_v58, %v515_v57 }
 0x32b   : > { %526 = vst.msk [vmem:[#allocation3] sm:$0xff] %vm366_vm2, %v523_v59 }
 0x32c   : > { %v538_v0 = vpop.permute.xlu0 %537 }
 0x32d   : > { %v541_v2 = vmul.f32 %v538_v0, %v529_v1 }
 0x32e   : > { %v649_v60 = vld [vmem:[#allocation3 + $0x8] sm:$0xff] }
 0x32f   : > { %998 = vrcp.f32 %v649_v60 }
 0x330   : > { %v533_v4 = vpop.permute.xlu0 %532 }
 0x331   : > { %v540_v9 = vmul.f32 %v533_v4, %v528_v3 }
 0x332   : > { %v648_v61 = vld [vmem:[#allocation3] sm:$0xff] }
 0x333   : > { %1000 = vrcp.f32 %v648_v61 }
 0x339   : > { %v999_v62 = vpop.eup %998 }
 0x33a   : > { %661 = vperm.xlu1 %988, %v999_v62  }
 0x33d   : > { %v1001_v63 = vpop.eup %1000 }
 0x33e   : > { %656 = vperm.xlu0 %989, %v1001_v63  }
 0x36b   : > { %v633_v5 = vpop.f32.mrb[4].mxu1 }
 0x36c   : > { %v640_v6 = vadd.f32 %v633_v5, %v541_v2  ;;  %v902_v7 = vpop.f32.mrb[5].mxu1 }
 0x36d   : > { %v636_v8 = vpop.f32.mrb[6].mxu1 }
 0x36e   : > { %642 = vst.msk [vmem:[#allocation4 + $0x8] sm:$0xff] %vm371_vm0, %v640_v6  ;;  %v903_v10 = vpop.f32.mrb[7].mxu1 }
 0x36f   : > { %v587_v11 = vpop.f32.mrb[4].mxu0 }
 0x370   : > { %v639_v12 = vadd.f32 %v587_v11, %v540_v9  ;;  %v896_v13 = vpop.f32.mrb[5].mxu0 }
 0x371   : > { %v590_v14 = vpop.f32.mrb[6].mxu0 }
 0x372   : > { %641 = vst.msk [vmem:[#allocation4] sm:$0xff] %vm371_vm0, %v639_v12  ;;  %v897_v15 = vpop.f32.mrb[7].mxu0 }
 0x375   : > { %v653_v16 = vld [vmem:[#allocation4 + $0x8] sm:$0xff] }
 0x379   : > { %v652_v20 = vld [vmem:[#allocation4] sm:$0xff] }
 0x3b9   : > { %v662_v17 = vpop.permute.xlu1 %661 }
 0x3ba   : > { %v665_v18 = vmul.f32 %v662_v17, %v653_v16 }
 0x3bc   : > { %667 = vrot.lane.b32.xlu1 %v665_v18, %s1224_s21 }
 0x3bd   : > { %v657_v19 = vpop.permute.xlu0 %656 }
 0x3be   : > { %v664_v21 = vmul.f32 %v657_v19, %v652_v20 }
 0x42e   : > { %v668_v22 = vpop.permute.xlu1 %667 }
 0x42f   : > { %v670_v23 = vsel %vm371_vm0, %v664_v21, %v668_v22 }
 0x430   : > { %v671_v24 = vpack.c.bf16 %v670_v23, %v670_v23 }
 0x432   : > { %673 = vst.msk [vmem:[%s359_s22] sm:$0xf] %vm672_vm5, %v671_v24 }
 0x433   : > { %1135 = shalt.err (!%p1132_p7)
}
 0x434   : > { %s1136_s25 = scalar_lea.hbm %s1547_s14, 64  ;;  %s1140_s7 = scalar_lea.hbm %s1600_s4, 128 }
 0x435   : > { %p1137_p3 = scmp.ne.s32.totalorder %s1547_s14, %s1136_s25  ;;  %p1141_p12 = scmp.lt.u32.totalorder %s1547_s14, %s1600_s4 }
 0x436   : > { %p1142_p8 = scmp.lt.u32.totalorder %s1140_s7, %s1136_s25  ;;  %p1144_p4 = scmp.lt.u32.totalorder %s1136_s25, %s1547_s14 }
 0x437   : > { %p1138_p10 = pnand %p1137_p3, %p1634_p1 }
 0x438   : > { %p1143_p0 = por %p1142_p8, %p1141_p12 }
 0x439   : > { %p1139_p9 = pneg %p1138_p10 }
 0x43a   : > { %p1145_p6 = por %p1144_p4, %p1143_p0 }
 0x43c   : > { %p1146_p13 = pnand %p1145_p6, %p1139_p9 }
 0x43e   : > { %1149 = shalt.err (!%p1146_p13)
}
 0x43f   : > { %912 = dma.vmem_to_hbm [thread:$0]  (%p1634_p1), %s1549_s24, 64, %s1547_s14, %s675_s5  }
 0x440 PF: > { %s1635_s26 = sld [smem:[#allocation22_spill]]  ;;  %s1636_s23 = sld [smem:[#allocation19_spill]] }
 0x441   : > { %s701_s12 = sand.u32 1, %s1192_s15  }
 0x442   : > { %s702_s20 = scalar_lea.sflag [#allocation7], %s701_s12 }
 0x446   : > { %p1637_p11 = scmp.ne.s32.totalorder %s1635_s26, 0  ;;  %p1638_p2 = scmp.ge.s32.totalorder %s1636_s23, 2 }
 0x448   : > { %p928_p5 = pnand %p1638_p2, %p1637_p11 }
 0x44a   : > { %1187 = dma.done.wait (!%p928_p5), %s702_s20, 64  }
 0x44b   : > { %1189 = vsyncadd (!%p928_p5), %s702_s20, 4294967232  ;;  %s26_s20 = sadd.s32 1, %s1636_s23   ;;  %s1639_s21 = sld [smem:[#allocation18_spill]] }
 0x44c   : > { %p23_p7 = scmp.ge.s32.totalorder %s26_s20, 4   ;;  %s1640_s17 = sld [smem:[#allocation21_spill]] }
 0x44d   : > { %s1641_s28 = sld [smem:[#allocation20_spill]]  ;;  %s1642_s15 = smov %s1196_s16 }
 0x44e   : > { %s1644_s18 = smov %s1208_s19  ;;  %25 = sbr.rel (!%p23_p7) target bundleno = 12 (0xc), region = 126 }
 0x451   : > { %s1643_s16 = smov %s1639_s21 }
 0x453   : > { %s1645_s19 = smov %s1641_s28 }
 0x455   :  { %707 = vsyncpa [#allocation6], 1 }
 0x456   :  { %709 = vsyncpa [#allocation6 + $0x1], 1 }
 0x457   :  { %710 = vsyncpa [#allocation9], 1 }
 0x458   :  { %712 = vsyncpa [#allocation9 + $0x1], 1 }
 0x459   :  { %713 = vsyncpa [#allocation12], 1 }
 0x45a   :  { %715 = vsyncpa [#allocation12 + $0x1], 1 }
 0x45b   :  { %716 = vsyncpa [#allocation7], 1 }
 0x45c   :  { %718 = vsyncpa [#allocation7 + $0x1], 1 }

// kernel: feedback_model_forward.23
= control target key start
LH: loop header
LB: loop body
LE: loop exit
PB: predicated region body
PF: predicated region fallthrough
CT: control target
= control target key end

     0   :  { %8 = vsyncpa [#allocation4], 0  ;;  %s1113_s0 = inlined_call_operand.hbm [shape: bf16[16,128], index: 0, kind: input, shape index: {}]   ;;  %s1114_s1 = inlined_call_operand.hbm [shape: bf16[128,128], index: 1, kind: input, shape index: {}]   ;;  %s1115_s2 = inlined_call_operand.hbm [shape: f32[1,128], index: 2, kind: input, shape index: {}]   ;;  %s1116_s3 = inlined_call_operand.hbm [shape: f32[16,128], index: 3, kind: output, shape index: {}]  }
   0x1   :  { %10 = vsyncpa [#allocation4 + $0x1], 0 }
   0x2   :  { %11 = vsyncpa [#allocation7], 0 }
   0x3   :  { %12 = vsyncpa [#allocation5], 0 }
   0x4   :  { %14 = vsyncpa [#allocation5 + $0x1], 0  ;;  %s858_s12 = smov 0   ;;  %s860_s13 = smov 0  }
   0x5   :  { %s862_s14 = smov 0   ;;  %s864_s15 = smov 0  }
   0x6   :  { %s866_s16 = smov 0   ;;  %s868_s17 = smov 0  }
   0x7 LB: > { %s506_s18 = sadd.s32 4294967295, %s828_s17   ;;  %s507_s19 = sadd.s32 4294967294, %s828_s17   ;;  %s828_s17 = sphi %s868_s17, %s20_s17   ;;  %s824_s16 = sphi %s866_s16, %s1138_s16   ;;  %s820_s15 = sphi %s864_s15, %s1137_s15   ;;  %s816_s14 = sphi %s862_s14, %s1136_s14   ;;  %s812_s13 = sphi %s860_s13, %s1135_s13   ;;  %s808_s12 = sphi %s858_s12, %s1134_s12  }
   0x8   : > { %p61_p0 = scmp.ne.s32.totalorder %s812_s13, %s808_s12  ;;  %p892_p1 = scmp.eq.s32.totalorder %s506_s18, 0 }
   0x9   : > { %p896_p2 = scmp.eq.s32.totalorder %s506_s18, 1  ;;  %p147_p3 = scmp.eq.s32.totalorder %s507_s19, 1 }
   0xa   : > { %s1121_s20 = scalar_select %p892_p1, 1, 0 }
   0xb   : > { %p902_p4 = por %p892_p1, %p61_p0  ;;  %p508_p5 = scmp.ge.s32.totalorder %s828_s17, 1 }
   0xc   : > { %p907_p6 = por %p147_p3, %p61_p0  ;;  %p154_p7 = scmp.lt.s32.totalorder %s828_s17, 3 }
   0xd   : > { %s1123_s22 = scalar_select %p902_p4, 1, 0 }
   0xe   : > { %s1124_s23 = scalar_select %p907_p6, 1, 0 }
   0xf   : > { %p912_p8 = pnand %p508_p5, %p154_p7  ;;  %s830_s25 = smov [#allocation6]  }
  0x10   : > { %s170_s26 = sshll.u32 %s830_s25, 4  ;;  %s831_s28 = smov [#allocation8]   ;;  %s916_s26 = int_to_ptr.vmem [resolvable:$true] %s170_s26 }
  0x11   : > { %p573_p9 = pneg %p912_p8  ;;  %s186_s29 = sshll.u32 %s831_s28, 4  ;;  %s927_s29 = int_to_ptr.vmem [resolvable:$true] %s186_s29 }
  0x12   : > { %s656_s5 = scalar_lea.hbm %s1114_s1, 1024 }
  0x13   : > { %p923_p11 = pnand %p573_p9, %p892_p1  ;;  %p657_p12 = scmp.ne.s32.totalorder %s1114_s1, %s656_s5 }
  0x14   : > { %p663_p5 = scmp.lt.u32.totalorder %s656_s5, %s1114_s1 }
  0x15   : > { %p658_p13 = pneg %p923_p11 }
  0x17   : > { %p659_p0 = pnand %p658_p13, %p657_p12 }
  0x19   : > { %p660_p3 = pneg %p659_p0 }
  0x1b   : > { %p665_p7 = pnand %p663_p5, %p660_p3 }
  0x1d   : > { %668 = shalt.err (!%p665_p7)
}
  0x1e   : > { %s669_s10 = scalar_lea.vmem %s916_s26, 1024  ;;  %p677_p1 = scmp.lt.s32.totalorder %s916_s26, %s916_s26 }
  0x1f   : > { %p670_p9 = scmp.ne.s32.totalorder %s916_s26, %s669_s10  ;;  %p678_p12 = scmp.lt.s32.totalorder %s669_s10, %s669_s10 }
  0x21   : > { %p672_p10 = pnand %p670_p9, %p658_p13  ;;  %p679_p0 = por %p678_p12, %p677_p1 }
  0x23   : > { %p673_p6 = pneg %p672_p10 }
  0x25   : > { %p680_p4 = pnand %p679_p0, %p673_p6 }
  0x27   : > { %683 = shalt.err (!%p680_p4)
}
  0x28   : > { %s832_s11 = smov 64   ;;  %s833_s18 = smov 4  }
  0x29   : > { %576 = dma.hbm_to_vmem [thread:$0]  (!%p923_p11), %s1114_s1, 1024, %s916_s26, [#allocation7], %s832_s11, %s832_s11, %s833_s18  }
  0x2a   : > { %s684_s4 = scalar_lea.hbm %s1115_s2, 16 }
  0x2b   : > { %p685_p1 = scmp.ne.s32.totalorder %s1115_s2, %s684_s4  ;;  %p691_p10 = scmp.lt.u32.totalorder %s684_s4, %s1115_s2 }
  0x2d   : > { %p687_p4 = pnand %p685_p1, %p658_p13 }
  0x2f   : > { %p688_p6 = pneg %p687_p4 }
  0x31   : > { %p693_p3 = pnand %p691_p10, %p688_p6 }
  0x33   : > { %696 = shalt.err (!%p693_p3)
}
  0x34   : > { %s697_s26 = scalar_lea.vmem %s927_s29, 16  ;;  %s704_s9 = scalar_lea.vmem %s927_s29, 32 }
  0x35   : > { %p698_p5 = scmp.ne.s32.totalorder %s927_s29, %s697_s26  ;;  %p705_p12 = scmp.lt.s32.totalorder %s927_s29, %s927_s29 }
  0x36   : > { %p706_p0 = scmp.lt.s32.totalorder %s704_s9, %s697_s26 }
  0x37   : > { %p700_p7 = pnand %p698_p5, %p658_p13 }
  0x38   : > { %p707_p1 = por %p706_p0, %p705_p12 }
  0x39   : > { %p701_p9 = pneg %p700_p7 }
  0x3b   : > { %p708_p4 = pnand %p707_p1, %p701_p9 }
  0x3d   : > { %711 = shalt.err (!%p708_p4)
}
  0x3e   : > { %579 = dma.hbm_to_vmem [thread:$0]  (!%p923_p11), %s1115_s2, 16, %s927_s29, [#allocation7]  }
  0x3f   : > { %s39_s18 = sadd.s32 1, %s824_s16  ;;  %s48_s19 = sadd.s32 1, %s816_s14 }
  0x40   : > { %p41_p13 = scmp.ge.s32.totalorder %s39_s18, 2  ;;  %p55_p6 = scmp.ne.s32.totalorder %s816_s14, %s812_s13 }
  0x41   : > { %p56_p10 = scmp.eq.s32.totalorder %s828_s17, 0  ;;  %p590_p3 = scmp.lt.s32.totalorder %s828_s17, 2 }
  0x42   : > { %s1140_s18 = smov (%p41_p13, %s39_s18), 0  ;;  %p992_p7 = por %p896_p2, %p55_p6 }
  0x43   : > { %p57_p5 = por %p56_p10, %p55_p6  ;;  %s43_s25 = ssub.s32 %s824_s16, %s1140_s18 }
  0x44   : > { %s1127_s27 = scalar_select %p992_p7, 1, 0 }
  0x45   : > { %s197_s28 = sand.u32 1, %s816_s14   ;;  %p46_p9 = scmp.eq.s32.totalorder %s43_s25, 0 }
  0x46   : > { %s512_s29 = sshll.u32 %s197_s28, 2  ;;  %s513_s30 = sshll.u32 %s824_s16, 6 }
  0x47   : > { %s1001_s4 = scalar_select %p46_p9, %s816_s14, %s48_s19  }
  0x48   : > { %s1006_s7 = scalar_lea.hbm %s1113_s0, %s513_s30  ;;  %s201_s21 = scalar_lea.vmem [#allocation3], %s512_s29 }
  0x49   : > { %s209_s8 = sshll.u32 %s201_s21, 4  ;;  %p1010_p2 = pnand %p590_p3, %p57_p5  ;;  %s1014_s8 = int_to_ptr.vmem [resolvable:$true] %s209_s8 }
  0x4a   : > { %s198_s9 = scalar_lea.sflag [#allocation4], %s197_s28  ;;  %s712_s10 = scalar_lea.hbm %s1006_s7, 64 }
  0x4b   : > { %p713_p11 = scmp.ne.s32.totalorder %s1006_s7, %s712_s10  ;;  %p714_p12 = pneg %p1010_p2 }
  0x4c   : > { %s717_s25 = scalar_lea.hbm %s1113_s0, 128  ;;  %p718_p4 = scmp.lt.u32.totalorder %s1006_s7, %s1113_s0 }
  0x4d   : > { %p715_p0 = pnand %p714_p12, %p713_p11  ;;  %p719_p13 = scmp.lt.u32.totalorder %s717_s25, %s712_s10 }
  0x4e   : > { %p721_p10 = scmp.lt.u32.totalorder %s712_s10, %s1006_s7 }
  0x4f   : > { %p716_p1 = pneg %p715_p0  ;;  %p720_p6 = por %p719_p13, %p718_p4 }
  0x51   : > { %p722_p3 = por %p721_p10, %p720_p6 }
  0x53   : > { %p723_p5 = pnand %p722_p3, %p716_p1 }
  0x55   : > { %726 = shalt.err (!%p723_p5)
}
  0x56   : > { %s727_s28 = scalar_lea.vmem %s1014_s8, 64  ;;  %s834_s5 = smov [#allocation3]  }
  0x57   : > { %p728_p9 = scmp.ne.s32.totalorder %s1014_s8, %s727_s28  ;;  %s732_s6 = sshll.u32 %s834_s5, 4  ;;  %s733_s6 = int_to_ptr.vmem [resolvable:$false] %s732_s6 }
  0x58   : > { %s734_s21 = scalar_lea.vmem %s733_s6, 128  ;;  %p735_p7 = scmp.lt.s32.totalorder %s1014_s8, %s733_s6 }
  0x59   : > { %p730_p11 = pnand %p728_p9, %p714_p12  ;;  %p736_p4 = scmp.lt.s32.totalorder %s734_s21, %s727_s28 }
  0x5b   : > { %p731_p0 = pneg %p730_p11  ;;  %p737_p13 = por %p736_p4, %p735_p7 }
  0x5d   : > { %p738_p6 = pnand %p737_p13, %p731_p0 }
  0x5f   : > { %741 = shalt.err (!%p738_p6)
}
  0x60   : > { %583 = dma.hbm_to_vmem [thread:$0]  (!%p1010_p2), %s1006_s7, 64, %s1014_s8, %s198_s9  }
  0x61   : > { %218 = sbr.rel (%p912_p8) target bundleno = 369 (0x171), region = 32  ;;  %s1044_s10 = sand.u32 (!%p912_p8), 1, %s812_s13  }
  0x62   : > { %s515_s11 = sshll.u32 (!%p912_p8), %s1044_s10, 2  ;;  %s221_s19 = scalar_lea.sflag (!%p912_p8), [#allocation4], %s1044_s10 }
  0x63   : > { %s1048_s25 = scalar_lea.vmem (!%p912_p8), [#allocation3], %s515_s11  ;;  %p1129_p7 = scmp.ne.s32.totalorder (!%p912_p8), %s1123_s22, 0 }
  0x68   : > { %795 = dma.done.wait (%p1129_p7), %s221_s19, 64  }
  0x69   : > { %797 = vsyncadd (%p1129_p7), %s221_s19, 4294967232  ;;  %p1130_p2 = scmp.ne.s32.totalorder %s1121_s20, 0 }
  0x6b   : > { %799 = dma.done.wait (%p1130_p2), [#allocation7], 1040  }
  0x6c   : > { %801 = vsyncadd (%p1130_p2), [#allocation7], 4294966256  ;;  %v835_v0 = vmov 0.0   ;;  %vm836_vm0 = vmmov 0   ;;  %v648_v1 = vld [vmem:[#allocation6] sm:$0xff]   ;;  %v649_v2 = vld [vmem:[#allocation6 + $0x8] sm:$0xff]  }
  0x6d   : > { %541 = vmatprep.subr.bf16.mxu0 %v835_v0  ;;  %557 = vmatprep.mubr.msk.bf16.mxu0 %vm836_vm0, %v835_v0  ;;  %v650_v3 = vld [vmem:[#allocation6 + $0x10] sm:$0xff]   ;;  %v651_v4 = vld [vmem:[#allocation6 + $0x18] sm:$0xff]   ;;  %v652_v5 = vld [vmem:[#allocation6 + $0x20] sm:$0xff]   ;;  %s518_s20 = sshll.u32 %s1044_s10, 3  ;;  %s529_s22 = sshll.u32 %s820_s15, 7 }
  0x6e   : > { %542 = vmatpush3.bf16.msra.mxu0 %v648_v1  ;;  %v653_v6 = vld [vmem:[#allocation6 + $0x28] sm:$0xff]   ;;  %v654_v7 = vld [vmem:[#allocation6 + $0x30] sm:$0xff]   ;;  %v655_v8 = vld [vmem:[#allocation6 + $0x38] sm:$0xff]   ;;  %s254_s24 = scalar_lea.vmem [#allocation9], %s518_s20  ;;  %s1064_s9 = scalar_lea.hbm %s1116_s3, %s529_s22 }
  0x6f   : > { %543 = vmatprep.subr.bf16.mxu0 %v835_v0  ;;  %v263_v9 = vld [vmem:[%s1048_s25] sm:$0xf]  ;;  %v527_v10 = vld [vmem:[#allocation8] ss:$0 sm:$0xff]  ;;  %s398_s7 = sshll.u32 %s254_s24, 4  ;;  %s384_s29 = scalar_lea.sflag [#allocation5], %s1044_s10  ;;  %s1066_s7 = int_to_ptr.vmem [resolvable:$true] %s398_s7 }
  0x70   : > { %s742_s15 = scalar_lea.vmem %s1066_s7, 128  ;;  %p1131_p12 = scmp.ne.s32.totalorder %s1127_s27, 0 }
  0x71   : > { %p743_p8 = scmp.ne.s32.totalorder %s1066_s7, %s742_s15  ;;  %s837_s30 = smov [#allocation9]  }
  0x72   : > { %544 = vmatpush3.bf16.msra.mxu0 %v649_v2  ;;  %s746_s28 = sshll.u32 %s837_s30, 4  ;;  %s747_s28 = int_to_ptr.vmem [resolvable:$false] %s746_s28 }
  0x73   : > { %545 = vmatprep.subr.bf16.mxu0 %v835_v0  ;;  %p744_p1 = pnand %p743_p8, %p1131_p12  ;;  %s748_s5 = scalar_lea.vmem %s747_s28, 256 }
  0x74   : > { %p749_p3 = scmp.lt.s32.totalorder %s1066_s7, %s747_s28  ;;  %p750_p5 = scmp.lt.s32.totalorder %s748_s5, %s742_s15 }
  0x75   : > { %p745_p10 = pneg %p744_p1 }
  0x76   : > { %546 = vmatpush3.bf16.msra.mxu0 %v650_v3  ;;  %p751_p9 = por %p750_p5, %p749_p3 }
  0x77   : > { %547 = vmatprep.subr.bf16.mxu0 %v835_v0 }
  0x78   : > { %p752_p11 = pnand %p751_p9, %p745_p10 }
  0x7a   : > { %548 = vmatpush3.bf16.msra.mxu0 %v651_v4 }
  0x7b   : > { %549 = vmatprep.subr.bf16.mxu0 %v835_v0 }
  0x7e   : > { %550 = vmatpush3.bf16.msra.mxu0 %v652_v5 }
  0x7f   : > { %551 = vmatprep.subr.bf16.mxu0 %v835_v0 }
  0x82   : > { %552 = vmatpush3.bf16.msra.mxu0 %v653_v6 }
  0x83   : > { %553 = vmatprep.subr.bf16.mxu0 %v835_v0 }
  0x86   : > { %554 = vmatpush3.bf16.msra.mxu0 %v654_v7 }
  0x87   : > { %555 = vmatprep.subr.bf16.mxu0 %v835_v0 }
  0x8a   : > { %556 = vmatpush3.bf16.msra.mxu0 %v655_v8 }
  0x8d   : > { %558 = vmatmul.mubr.bf16.vlgmr.msra.gmra.mrb[0].mxu0 %v263_v9 }
 0x160   : > { %v362_v11 = vpop.f32.mrb[0].mxu0 }
 0x161   : > { %v381_v12 = vadd.f32 %v527_v10, %v362_v11  ;;  %v559_v13 = vpop.f32.mrb[1].mxu0 }
 0x162   : > { %v365_v14 = vpop.f32.mrb[2].mxu0 }
 0x163   : > { %382 = vst [vmem:[%s254_s24] sm:$0xff] %v381_v12  ;;  %v560_v15 = vpop.f32.mrb[3].mxu0 }
 0x164   : > { %755 = shalt.err (!%p752_p11)
}
 0x165   : > { %s756_s6 = scalar_lea.hbm %s1064_s9, 128  ;;  %s760_s11 = scalar_lea.hbm %s1116_s3, 256 }
 0x166   : > { %p757_p0 = scmp.ne.s32.totalorder %s1064_s9, %s756_s6  ;;  %p761_p6 = scmp.lt.u32.totalorder %s1064_s9, %s1116_s3 }
 0x167   : > { %p762_p7 = scmp.lt.u32.totalorder %s760_s11, %s756_s6  ;;  %p764_p8 = scmp.lt.u32.totalorder %s756_s6, %s1064_s9 }
 0x168   : > { %p758_p4 = pnand %p757_p0, %p1131_p12 }
 0x169   : > { %p763_p2 = por %p762_p7, %p761_p6 }
 0x16a   : > { %p759_p13 = pneg %p758_p4 }
 0x16b   : > { %p765_p1 = por %p764_p8, %p763_p2 }
 0x16d   : > { %p766_p10 = pnand %p765_p1, %p759_p13 }
 0x16f   : > { %769 = shalt.err (!%p766_p10)
}
 0x170   : > { %571 = dma.vmem_to_hbm [thread:$0]  (%p1131_p12), %s1066_s7, 128, %s1064_s9, %s384_s29  }
 0x171 PF: > { %s410_s20 = sand.u32 1, %s808_s12   ;;  %p1132_p3 = scmp.ne.s32.totalorder %s1124_s23, 0 }
 0x172   : > { %p1133_p5 = scmp.ge.s32.totalorder %s828_s17, 2  ;;  %s411_s22 = scalar_lea.sflag [#allocation5], %s410_s20 }
 0x174   : > { %p585_p9 = pnand %p1133_p5, %p1132_p3 }
 0x176   : > { %803 = dma.done.wait (!%p585_p9), %s411_s22, 128  }
 0x177   : > { %805 = vsyncadd (!%p585_p9), %s411_s22, 4294967168  ;;  %s20_s17 = sadd.s32 1, %s828_s17   ;;  %s1134_s12 = smov %s812_s13 }
 0x178   : > { %p17_p11 = scmp.ge.s32.totalorder %s20_s17, 4   ;;  %s1135_s13 = smov %s816_s14 }
 0x179   : > { %s1136_s14 = smov %s1001_s4  ;;  %s1137_s15 = smov %s824_s16 }
 0x17a   : > { %s1138_s16 = smov %s1140_s18  ;;  %19 = sbr.rel (!%p17_p11) target bundleno = 7 (0x7), region = 95 }
 0x181   :  { %416 = vsyncpa [#allocation4], 1 }
 0x182   :  { %418 = vsyncpa [#allocation4 + $0x1], 1 }
 0x183   :  { %419 = vsyncpa [#allocation7], 1 }
 0x184   :  { %420 = vsyncpa [#allocation5], 1 }
 0x185   :  { %422 = vsyncpa [#allocation5 + $0x1], 1 }

</bundles_post_ra>
